<compile_context>
chip_gen: v6e
topology: v6e:2x2x1
jax: 0.10.0
libtpu: 0.0.40
codegen_flags: <defaults>
</compile_context>

<pallas_src>
import functools
import math

import jax
import jax.numpy as jnp
from jax import lax
from jax.experimental import pallas as pl
from jax.experimental.pallas import tpu as pltpu


# -----------------------------------------------------------------------------
# helpers
# -----------------------------------------------------------------------------
_PADW = 8                       # tile-aligned zero pad on each side of W
_VMEM_BUDGET = 32 * 1024 * 1024  # conservative across v5e/v6e (128 MiB) & v7x (64 MiB)


def _bn_affine(gamma, beta, mean, var, eps=1e-5):
    scale = gamma / jnp.sqrt(var + eps)
    shift = beta - mean * scale
    return scale, shift


def _round_up(x, m):
    return -(-x // m) * m


def _padded_bytes(shape, dtype):
    """Approximate VMEM footprint of one buffer with (sublane, lane) padding."""
    it = jnp.dtype(dtype).itemsize
    sub = 8 * (4 // it)
    lead = 1
    for d in shape[:-2]:
        lead *= d
    return lead * _round_up(shape[-2], sub) * _round_up(shape[-1], 128) * it


def _default_dtypes():
    kind = ""
    try:
        kind = jax.devices()[0].device_kind.lower()
    except Exception:
        pass
    matmul_dtype = jnp.bfloat16          # MXU is bf16-native on every TPU gen
    # bf16 VPU only exists on v6e/v7x; keep the depthwise scratch f32 elsewhere.
    scratch_dtype = jnp.bfloat16 if ("v6" in kind or "v7" in kind) else jnp.float32
    return matmul_dtype, scratch_dtype


def _pick_row_tile(Ho, Wo, Cout, fixed_bytes, budget_bytes):
    """Largest divisor of Ho with lane-dense (t*Wo) % 128 == 0 output blocks
    that still fits the VMEM budget; whole image as fallback (output padded)."""
    lane_ok = [t for t in range(1, Ho + 1) if Ho % t == 0 and (t * Wo) % 128 == 0]
    if not lane_ok:
        return Ho
    for t in sorted(lane_ok, reverse=True):
        out_block = 2 * _padded_bytes((Cout, t * Wo), jnp.float32)   # double-buffered
        if fixed_bytes + out_block <= budget_bytes:
            return t
    return min(lane_ok)


# -----------------------------------------------------------------------------
# fused MBConv kernel
# -----------------------------------------------------------------------------
def _mbconv_kernel(x_ref, we_ref, be_ref, wd_ref, bd_ref, wp_ref, bp_ref,
                   o_ref, h_buf, *, stride, H, W, TR, Wo, out_w):
    r_idx = pl.program_id(1)
    hidden = h_buf.shape[-1]
    wbuf = W + 2 * _PADW

    # ---- Stage 1 (once per image): expand 1x1 conv (BN folded) + ReLU -> VMEM.
    # The W halo is built in-register with tile-aligned zero blocks, so every
    # h_buf store is a full-width aligned store (no masked/packed-offset stores,
    # no whole-buffer zeroing) -- valid for both f32 and bf16 scratch.
    @pl.when(r_idx == 0)
    def _():
        x2d = x_ref[...].astype(we_ref.dtype)                       # (H*W, Cin)
        hid = jnp.dot(x2d, we_ref[...], preferred_element_type=jnp.float32)
        hid = jnp.maximum(hid + be_ref[...], 0.0).reshape(H, W, hidden)
        zpad = jnp.zeros((H, _PADW, hidden), jnp.float32)
        rows = jnp.concatenate([zpad, hid, zpad], axis=1)           # (H, wbuf, hidden)
        h_buf[pl.ds(1, H)] = rows.astype(h_buf.dtype)
        zrow = jnp.zeros((1, wbuf, hidden), h_buf.dtype)
        h_buf[pl.ds(0, 1)] = zrow                                   # top halo row
        h_buf[pl.ds(H + 1, 1)] = zrow                               # bottom halo row

    # ---- Stage 2: depthwise 3x3 conv (BN folded) + ReLU on TR output rows ----
    r0 = r_idx * TR
    if TR % 8 == 0:
        r0 = pl.multiple_of(r0, 8)
    wd = wd_ref[...]                                                # (9, hidden) f32
    acc = None
    for kh in range(3):
        if stride == 1:
            rows = h_buf[pl.ds(r0 + kh, TR)]                        # (TR, wbuf, hidden)
        else:
            # TODO(synk): stride>1 (strided row gather) is implemented but not
            # exercised by the stride=1 demo below.
            rows = h_buf[pl.ds(stride * r0 + kh, TR, stride=stride)]
        rows = rows.astype(jnp.float32)
        for kw in range(3):
            c0 = _PADW - 1 + kw
            if stride == 1:
                win = rows[:, c0:c0 + Wo, :]
            else:
                win = lax.slice_in_dim(rows, c0, c0 + stride * (Wo - 1) + 1,
                                       stride=stride, axis=1)
            term = win * wd[kh * 3 + kw]
            acc = term if acc is None else acc + term               # first-tap init
    acc = jnp.maximum(acc + bd_ref[0], 0.0)                         # (TR, Wo, hidden)

    # ---- Stage 3: project 1x1 conv (BN folded) -> lane-dense (Cout, out_w) ----
    spatial = TR * Wo
    dw2d = acc.reshape(spatial, hidden)
    if out_w > spatial:
        # Pad the spatial (sublane) dim so the HBM store is an unmasked,
        # lane-dense vst; the padded tail is sliced off in the wrapper.
        dw2d = jnp.concatenate(
            [dw2d, jnp.zeros((out_w - spatial, hidden), jnp.float32)], axis=0)
    dw2d = dw2d.astype(wp_ref.dtype)
    proj = lax.dot_general(wp_ref[...], dw2d,
                           dimension_numbers=(((1,), (1,)), ((), ())),
                           preferred_element_type=jnp.float32)
    proj = proj + bp_ref[...]                                       # (Cout, out_w)
    o_ref[...] = proj.astype(o_ref.dtype)


def mbconv_block(x_nchw, params, *, stride=1, matmul_dtype=None,
                 scratch_dtype=None, bn_eps=1e-5):
    """NCHW in / NCHW out, inference-mode BN, fully fused MBConv block."""
    N, Cin, H, W = x_nchw.shape
    w_e = params["w_expand"]                  # (Cin, hidden)
    hidden = w_e.shape[1]
    w_d = params["w_depthwise"]               # (3, 3, hidden)
    w_p = params["w_project"]                 # (hidden, Cout)
    Cout = w_p.shape[1]

    mm_dt, sc_dt = _default_dtypes()
    if matmul_dtype is not None:
        mm_dt = matmul_dtype
    if scratch_dtype is not None:
        sc_dt = scratch_dtype

    s1, b1 = _bn_affine(*params["bn_expand"], eps=bn_eps)
    s2, b2 = _bn_affine(*params["bn_depthwise"], eps=bn_eps)
    s3, b3 = _bn_affine(*params["bn_project"], eps=bn_eps)

    # Fold BN scales into the conv weights; kernel only adds the shift.
    we_s = (w_e * s1[None, :]).astype(mm_dt)                        # (Cin, hidden)
    wd_s = (w_d * s2[None, None, :]).reshape(9, hidden).astype(jnp.float32)
    wpT_s = (w_p * s3[None, :]).T.astype(mm_dt)                     # (Cout, hidden)
    be = b1.reshape(1, hidden).astype(jnp.float32)
    bd = b2.reshape(1, hidden).astype(jnp.float32)
    bp = b3.reshape(Cout, 1).astype(jnp.float32)

    Ho = (H + 2 - 3) // stride + 1
    Wo = (W + 2 - 3) // stride + 1
    wbuf = W + 2 * _PADW

    # VMEM footprint (scratch + double-buffered streamed operands) -> tile pick.
    fixed = (_padded_bytes((H + 2, wbuf, hidden), sc_dt)
             + 2 * _padded_bytes((H * W, Cin), x_nchw.dtype)
             + 2 * (_padded_bytes((Cin, hidden), mm_dt)
                    + _padded_bytes((9, hidden), jnp.float32)
                    + 2 * _padded_bytes((1, hidden), jnp.float32)
                    + _padded_bytes((Cout, hidden), mm_dt)
                    + _padded_bytes((Cout, 1), jnp.float32)))
    TR = _pick_row_tile(Ho, Wo, Cout, fixed, _VMEM_BUDGET)
    R = Ho // TR
    spatial = TR * Wo
    out_w = spatial if spatial % 128 == 0 else _round_up(spatial, 128)
    # out_w > spatial only happens in the R == 1 fallback, so tiles never overlap.

    est = fixed + 2 * _padded_bytes((Cout, out_w), jnp.float32)
    vmem_limit = int(min(max(3 * est, 16 * 2**20), 64 * 2**20))     # v7x-aware cap

    # NCHW -> (N, H*W, Cin) once at the XLA level; output needs no transpose.
    x_flat = jnp.transpose(x_nchw, (0, 2, 3, 1)).reshape(N, H * W, Cin)

    kernel = functools.partial(_mbconv_kernel, stride=stride, H=H, W=W,
                               TR=TR, Wo=Wo, out_w=out_w)

    out = pl.pallas_call(
        kernel,
        out_shape=jax.ShapeDtypeStruct((N, Cout, R * out_w), x_nchw.dtype),
        grid_spec=pltpu.PrefetchScalarGridSpec(
            num_scalar_prefetch=0,
            grid=(N, R),
            in_specs=[
                pl.BlockSpec((None, H * W, Cin), lambda n, r: (n, 0, 0)),
                pl.BlockSpec((Cin, hidden), lambda n, r: (0, 0)),
                pl.BlockSpec((1, hidden), lambda n, r: (0, 0)),
                pl.BlockSpec((9, hidden), lambda n, r: (0, 0)),
                pl.BlockSpec((1, hidden), lambda n, r: (0, 0)),
                pl.BlockSpec((Cout, hidden), lambda n, r: (0, 0)),
                pl.BlockSpec((Cout, 1), lambda n, r: (0, 0)),
            ],
            out_specs=pl.BlockSpec((None, Cout, out_w), lambda n, r: (n, 0, r)),
            scratch_shapes=[pltpu.VMEM((H + 2, wbuf, hidden), sc_dt)],
        ),
        compiler_params=pltpu.CompilerParams(
            dimension_semantics=("parallel", "arbitrary"),
            vmem_limit_bytes=vmem_limit,
        ),
    )(x_flat, we_s, be, wd_s, bd, wpT_s, bp)

    out = out[..., : Ho * Wo]                 # drop lane padding (no-op if dense)
    return out.reshape(N, Cout, Ho, Wo)       # channel-major already -> free reshape


# -----------------------------------------------------------------------------
# Pure-JAX reference (lax.conv) for correctness checking
# -----------------------------------------------------------------------------
def mbconv_reference(x_nchw, params, *, stride):
    x = jnp.transpose(x_nchw, (0, 2, 3, 1)).astype(jnp.float32)
    dn = ("NHWC", "HWIO", "NHWC")

    w1 = params["w_expand"].reshape(1, 1, *params["w_expand"].shape)
    x = lax.conv_general_dilated(x, w1, (1, 1), "VALID", dimension_numbers=dn)
    s1, b1 = _bn_affine(*params["bn_expand"])
    x = jnp.maximum(x * s1 + b1, 0.0)

    C = params["w_depthwise"].shape[-1]
    w2 = params["w_depthwise"].reshape(3, 3, 1, C)
    x = lax.conv_general_dilated(
        x, w2, (stride, stride), ((1, 1), (1, 1)),
        dimension_numbers=dn, feature_group_count=C)
    s2, b2 = _bn_affine(*params["bn_depthwise"])
    x = jnp.maximum(x * s2 + b2, 0.0)

    w3 = params["w_project"].reshape(1, 1, *params["w_project"].shape)
    x = lax.conv_general_dilated(x, w3, (1, 1), "VALID", dimension_numbers=dn)
    s3, b3 = _bn_affine(*params["bn_project"])
    x = x * s3 + b3

    return jnp.transpose(x, (0, 3, 1, 2))


# -----------------------------------------------------------------------------
# demo / self-test
# -----------------------------------------------------------------------------
def _bn_params(k, c):
    k1, k2, k3, k4 = jax.random.split(k, 4)
    gamma = jax.random.uniform(k1, (c,), jnp.float32, 0.5, 1.5)
    beta = jax.random.normal(k2, (c,), jnp.float32) * 0.1
    mean = jax.random.normal(k3, (c,), jnp.float32) * 0.1
    var = jax.random.uniform(k4, (c,), jnp.float32, 0.5, 1.5)
    return (gamma, beta, mean, var)


def _make_params(key, Cin, Cout, expand_ratio):
    hidden = round(Cin * expand_ratio)
    ks = jax.random.split(key, 6)
    return {
        # torch conv_expand weight (hidden, Cin, 1, 1) stored as (Cin, hidden)
        "w_expand": jax.random.normal(ks[0], (Cin, hidden), jnp.float32)
                    * (1.0 / math.sqrt(Cin)),
        "bn_expand": _bn_params(ks[1], hidden),
        # torch depthwise weight (hidden, 1, 3, 3) stored as (3, 3, hidden)
        "w_depthwise": jax.random.normal(ks[2], (3, 3, hidden), jnp.float32)
                       * (1.0 / 3.0),
        "bn_depthwise": _bn_params(ks[3], hidden),
        # torch conv_project weight (Cout, hidden, 1, 1) stored as (hidden, Cout)
        "w_project": jax.random.normal(ks[4], (hidden, Cout), jnp.float32)
                     * (1.0 / math.sqrt(hidden)),
        "bn_project": _bn_params(ks[5], Cout),
    }


def _run_case(key, *, N, Cin, Cout, H, W, expand_ratio, stride,
              matmul_dtype=None, scratch_dtype=None, rtol=1e-4, atol=1e-4):
    kp, kx = jax.random.split(key)
    params = _make_params(kp, Cin, Cout, expand_ratio)
    x = jax.random.normal(kx, (N, Cin, H, W), jnp.float32)

    out = jax.block_until_ready(
        mbconv_block(x, params, stride=stride,
                     matmul_dtype=matmul_dtype, scratch_dtype=scratch_dtype))
    ref = jax.block_until_ready(mbconv_reference(x, params, stride=stride))

    assert out.shape == ref.shape, (out.shape, ref.shape)
    err = float(jnp.max(jnp.abs(out - ref)))
    assert jnp.allclose(out, ref, rtol=rtol, atol=atol), (
        "max abs err = %g" % err)


if __name__ == "__main__":
    key = jax.random.PRNGKey(0)
    k1, k2, k3 = jax.random.split(key, 3)

    # 1) Structural check in full f32 (tight tolerance): batch=2, Cin=4, 16x16,
    #    expand 6x -> TR=Ho=16, grid (2,1), lane-dense (Cout, 256) stores.
    _run_case(k1, N=2, Cin=4, Cout=8, H=16, W=16, expand_ratio=6, stride=1,
              matmul_dtype=jnp.float32, scratch_dtype=jnp.float32,
              rtol=1e-4, atol=1e-4)

    # 2) Non-lane-dense fallback path (8x8 -> output padded 64->128), f32 tight.
    _run_case(k2, N=1, Cin=8, Cout=16, H=8, W=8, expand_ratio=6, stride=1,
              matmul_dtype=jnp.float32, scratch_dtype=jnp.float32,
              rtol=1e-4, atol=1e-4)

    # 3) Default per-generation dtypes (bf16 MXU; bf16 scratch on v6e/v7x),
    #    loose tolerance for the bf16 numerics.
    _run_case(k3, N=2, Cin=4, Cout=8, H=16, W=16, expand_ratio=6, stride=1,
              rtol=1e-1, atol=1e-1)

    print("KERNEL_OK")
</pallas_src>

<mosaic_0001>
module attributes {stable_mosaic.version = 11 : i64} {
  func.func @_mbconv_kernel(%arg0: i32, %arg1: i32, %arg2: memref<1x256x4xf32, #tpu.memory_space<vmem>>, %arg3: memref<4x24xf32, #tpu.memory_space<vmem>>, %arg4: memref<1x24xf32, #tpu.memory_space<vmem>>, %arg5: memref<9x24xf32, #tpu.memory_space<vmem>>, %arg6: memref<1x24xf32, #tpu.memory_space<vmem>>, %arg7: memref<8x24xf32, #tpu.memory_space<vmem>>, %arg8: memref<8x1xf32, #tpu.memory_space<vmem>>, %arg9: memref<1x8x256xf32, #tpu.memory_space<vmem>>, %arg10: memref<18x32x24xf32, #tpu.memory_space<vmem>>) attributes {dimension_semantics = [#tpu.dimension_semantics<parallel>, #tpu.dimension_semantics<arbitrary>], iteration_bounds = array<i64: 2, 1>, scalar_prefetch = 0 : i64, scratch_operands = 1 : i64, tpu.core_type = #tpu.core_type<tc>, window_params = [{transform_indices = @transform_0, window_bounds = array<i64: 1, 256, 4>}, {pipeline_mode = #tpu.pipeline_mode<synchronous>, transform_indices = @transform_1, window_bounds = array<i64: 4, 24>}, {pipeline_mode = #tpu.pipeline_mode<synchronous>, transform_indices = @transform_2, window_bounds = array<i64: 1, 24>}, {pipeline_mode = #tpu.pipeline_mode<synchronous>, transform_indices = @transform_3, window_bounds = array<i64: 9, 24>}, {pipeline_mode = #tpu.pipeline_mode<synchronous>, transform_indices = @transform_4, window_bounds = array<i64: 1, 24>}, {pipeline_mode = #tpu.pipeline_mode<synchronous>, transform_indices = @transform_5, window_bounds = array<i64: 8, 24>}, {pipeline_mode = #tpu.pipeline_mode<synchronous>, transform_indices = @transform_6, window_bounds = array<i64: 8, 1>}, {transform_indices = @transform_7, window_bounds = array<i64: 1, 8, 256>}]} {
    %c0_i32 = arith.constant 0 : i32
    %0 = arith.cmpi eq, %arg1, %c0_i32 : i32
    %1 = arith.extui %0 : i1 to i32
    %c0_i32_0 = arith.constant 0 : i32
    %2 = arith.cmpi ne, %1, %c0_i32_0 : i32
    scf.if %2 {
      %c0_19 = arith.constant 0 : index
      %c0_20 = arith.constant 0 : index
      %c0_21 = arith.constant 0 : index
      %93 = vector.load %arg2[%c0_19, %c0_20, %c0_21] : memref<1x256x4xf32, #tpu.memory_space<vmem>>, vector<1x256x4xf32>
      %94 = vector.shape_cast %93 : vector<1x256x4xf32> to vector<256x4xf32>
      %c0_22 = arith.constant 0 : index
      %c0_23 = arith.constant 0 : index
      %95 = vector.load %arg3[%c0_22, %c0_23] : memref<4x24xf32, #tpu.memory_space<vmem>>, vector<4x24xf32>
      %cst_24 = arith.constant dense<0.000000e+00> : vector<256x24xf32>
      %96 = tpu.matmul %94, %95, %cst_24 {dimension_numbers = #tpu.dot_dimension_numbers<[1], [0], [0], [1], [0, 0, 1, 1], [], []>} : vector<256x4xf32>, vector<4x24xf32>, vector<256x24xf32> -> vector<256x24xf32>
      %c0_25 = arith.constant 0 : index
      %c0_26 = arith.constant 0 : index
      %97 = vector.load %arg4[%c0_25, %c0_26] : memref<1x24xf32, #tpu.memory_space<vmem>>, vector<1x24xf32>
      %98 = vector.broadcast %97 : vector<1x24xf32> to vector<256x24xf32>
      %99 = arith.addf %96, %98 : vector<256x24xf32>
      %cst_27 = arith.constant 0.000000e+00 : f32
      %100 = vector.broadcast %cst_27 : f32 to vector<256x24xf32>
      %101 = arith.maximumf %99, %100 : vector<256x24xf32>
      %102 = vector.shape_cast %101 : vector<256x24xf32> to vector<16x16x24xf32>
      %cst_28 = arith.constant 0.000000e+00 : f32
      %103 = vector.broadcast %cst_28 : f32 to vector<16x8x24xf32>
      %104 = tpu.concatenate %103, %102, %103 in 1 : vector<16x8x24xf32>, vector<16x16x24xf32>, vector<16x8x24xf32> -> vector<16x32x24xf32>
      %c1 = arith.constant 1 : index
      %c0_29 = arith.constant 0 : index
      %c0_30 = arith.constant 0 : index
      %105 = vector.load %arg10[%c1, %c0_29, %c0_30] : memref<18x32x24xf32, #tpu.memory_space<vmem>>, vector<16x32x24xf32>
      tpu.vector_store %arg10[%c1, %c0_29, %c0_30], %104 {strides = array<i32>} : memref<18x32x24xf32, #tpu.memory_space<vmem>>, vector<16x32x24xf32>,
      %cst_31 = arith.constant 0.000000e+00 : f32
      %106 = vector.broadcast %cst_31 : f32 to vector<1x32x24xf32>
      %c0_32 = arith.constant 0 : index
      %c0_33 = arith.constant 0 : index
      %c0_34 = arith.constant 0 : index
      %107 = vector.load %arg10[%c0_32, %c0_33, %c0_34] : memref<18x32x24xf32, #tpu.memory_space<vmem>>, vector<1x32x24xf32>
      tpu.vector_store %arg10[%c0_32, %c0_33, %c0_34], %106 {strides = array<i32>} : memref<18x32x24xf32, #tpu.memory_space<vmem>>, vector<1x32x24xf32>,
      %c17 = arith.constant 17 : index
      %c0_35 = arith.constant 0 : index
      %c0_36 = arith.constant 0 : index
      %108 = vector.load %arg10[%c17, %c0_35, %c0_36] : memref<18x32x24xf32, #tpu.memory_space<vmem>>, vector<1x32x24xf32>
      tpu.vector_store %arg10[%c17, %c0_35, %c0_36], %106 {strides = array<i32>} : memref<18x32x24xf32, #tpu.memory_space<vmem>>, vector<1x32x24xf32>,
    } else {
    }
    %c16_i32 = arith.constant 16 : i32
    %3 = arith.muli %arg1, %c16_i32 : i32
    %4 = tpu.assume_multiple %3, 8 : i32
    %c0 = arith.constant 0 : index
    %c0_1 = arith.constant 0 : index
    %5 = vector.load %arg5[%c0, %c0_1] : memref<9x24xf32, #tpu.memory_space<vmem>>, vector<9x24xf32>
    %c0_i32_2 = arith.constant 0 : i32
    %6 = arith.addi %4, %c0_i32_2 : i32
    %7 = arith.index_cast %6 : i32 to index
    %c0_3 = arith.constant 0 : index
    %c0_4 = arith.constant 0 : index
    %8 = vector.load %arg10[%7, %c0_3, %c0_4] : memref<18x32x24xf32, #tpu.memory_space<vmem>>, vector<16x32x24xf32>
    %9 = vector.extract_strided_slice %8 {offsets = [0, 7, 0], sizes = [16, 16, 24], strides = [1, 1, 1]} : vector<16x32x24xf32> to vector<16x16x24xf32>
    %10 = vector.extract_strided_slice %5 {offsets = [0, 0], sizes = [1, 24], strides = [1, 1]} : vector<9x24xf32> to vector<1x24xf32>
    %11 = vector.shape_cast %10 : vector<1x24xf32> to vector<24xf32>
    %12 = vector.shape_cast %11 : vector<24xf32> to vector<1x1x24xf32>
    %13 = vector.broadcast %12 : vector<1x1x24xf32> to vector<16x16x24xf32>
    %14 = arith.mulf %9, %13 : vector<16x16x24xf32>
    %15 = vector.extract_strided_slice %8 {offsets = [0, 8, 0], sizes = [16, 16, 24], strides = [1, 1, 1]} : vector<16x32x24xf32> to vector<16x16x24xf32>
    %16 = vector.extract_strided_slice %5 {offsets = [1, 0], sizes = [1, 24], strides = [1, 1]} : vector<9x24xf32> to vector<1x24xf32>
    %17 = vector.shape_cast %16 : vector<1x24xf32> to vector<24xf32>
    %18 = vector.shape_cast %17 : vector<24xf32> to vector<1x1x24xf32>
    %19 = vector.broadcast %18 : vector<1x1x24xf32> to vector<16x16x24xf32>
    %20 = arith.mulf %15, %19 : vector<16x16x24xf32>
    %21 = arith.addf %14, %20 : vector<16x16x24xf32>
    %22 = vector.extract_strided_slice %8 {offsets = [0, 9, 0], sizes = [16, 16, 24], strides = [1, 1, 1]} : vector<16x32x24xf32> to vector<16x16x24xf32>
    %23 = vector.extract_strided_slice %5 {offsets = [2, 0], sizes = [1, 24], strides = [1, 1]} : vector<9x24xf32> to vector<1x24xf32>
    %24 = vector.shape_cast %23 : vector<1x24xf32> to vector<24xf32>
    %25 = vector.shape_cast %24 : vector<24xf32> to vector<1x1x24xf32>
    %26 = vector.broadcast %25 : vector<1x1x24xf32> to vector<16x16x24xf32>
    %27 = arith.mulf %22, %26 : vector<16x16x24xf32>
    %28 = arith.addf %21, %27 : vector<16x16x24xf32>
    %c1_i32 = arith.constant 1 : i32
    %29 = arith.addi %4, %c1_i32 : i32
    %30 = arith.index_cast %29 : i32 to index
    %c0_5 = arith.constant 0 : index
    %c0_6 = arith.constant 0 : index
    %31 = vector.load %arg10[%30, %c0_5, %c0_6] : memref<18x32x24xf32, #tpu.memory_space<vmem>>, vector<16x32x24xf32>
    %32 = vector.extract_strided_slice %31 {offsets = [0, 7, 0], sizes = [16, 16, 24], strides = [1, 1, 1]} : vector<16x32x24xf32> to vector<16x16x24xf32>
    %33 = vector.extract_strided_slice %5 {offsets = [3, 0], sizes = [1, 24], strides = [1, 1]} : vector<9x24xf32> to vector<1x24xf32>
    %34 = vector.shape_cast %33 : vector<1x24xf32> to vector<24xf32>
    %35 = vector.shape_cast %34 : vector<24xf32> to vector<1x1x24xf32>
    %36 = vector.broadcast %35 : vector<1x1x24xf32> to vector<16x16x24xf32>
    %37 = arith.mulf %32, %36 : vector<16x16x24xf32>
    %38 = arith.addf %28, %37 : vector<16x16x24xf32>
    %39 = vector.extract_strided_slice %31 {offsets = [0, 8, 0], sizes = [16, 16, 24], strides = [1, 1, 1]} : vector<16x32x24xf32> to vector<16x16x24xf32>
    %40 = vector.extract_strided_slice %5 {offsets = [4, 0], sizes = [1, 24], strides = [1, 1]} : vector<9x24xf32> to vector<1x24xf32>
    %41 = vector.shape_cast %40 : vector<1x24xf32> to vector<24xf32>
    %42 = vector.shape_cast %41 : vector<24xf32> to vector<1x1x24xf32>
    %43 = vector.broadcast %42 : vector<1x1x24xf32> to vector<16x16x24xf32>
    %44 = arith.mulf %39, %43 : vector<16x16x24xf32>
    %45 = arith.addf %38, %44 : vector<16x16x24xf32>
    %46 = vector.extract_strided_slice %31 {offsets = [0, 9, 0], sizes = [16, 16, 24], strides = [1, 1, 1]} : vector<16x32x24xf32> to vector<16x16x24xf32>
    %47 = vector.extract_strided_slice %5 {offsets = [5, 0], sizes = [1, 24], strides = [1, 1]} : vector<9x24xf32> to vector<1x24xf32>
    %48 = vector.shape_cast %47 : vector<1x24xf32> to vector<24xf32>
    %49 = vector.shape_cast %48 : vector<24xf32> to vector<1x1x24xf32>
    %50 = vector.broadcast %49 : vector<1x1x24xf32> to vector<16x16x24xf32>
    %51 = arith.mulf %46, %50 : vector<16x16x24xf32>
    %52 = arith.addf %45, %51 : vector<16x16x24xf32>
    %c2_i32 = arith.constant 2 : i32
    %53 = arith.addi %4, %c2_i32 : i32
    %54 = arith.index_cast %53 : i32 to index
    %c0_7 = arith.constant 0 : index
    %c0_8 = arith.constant 0 : index
    %55 = vector.load %arg10[%54, %c0_7, %c0_8] : memref<18x32x24xf32, #tpu.memory_space<vmem>>, vector<16x32x24xf32>
    %56 = vector.extract_strided_slice %55 {offsets = [0, 7, 0], sizes = [16, 16, 24], strides = [1, 1, 1]} : vector<16x32x24xf32> to vector<16x16x24xf32>
    %57 = vector.extract_strided_slice %5 {offsets = [6, 0], sizes = [1, 24], strides = [1, 1]} : vector<9x24xf32> to vector<1x24xf32>
    %58 = vector.shape_cast %57 : vector<1x24xf32> to vector<24xf32>
    %59 = vector.shape_cast %58 : vector<24xf32> to vector<1x1x24xf32>
    %60 = vector.broadcast %59 : vector<1x1x24xf32> to vector<16x16x24xf32>
    %61 = arith.mulf %56, %60 : vector<16x16x24xf32>
    %62 = arith.addf %52, %61 : vector<16x16x24xf32>
    %63 = vector.extract_strided_slice %55 {offsets = [0, 8, 0], sizes = [16, 16, 24], strides = [1, 1, 1]} : vector<16x32x24xf32> to vector<16x16x24xf32>
    %64 = vector.extract_strided_slice %5 {offsets = [7, 0], sizes = [1, 24], strides = [1, 1]} : vector<9x24xf32> to vector<1x24xf32>
    %65 = vector.shape_cast %64 : vector<1x24xf32> to vector<24xf32>
    %66 = vector.shape_cast %65 : vector<24xf32> to vector<1x1x24xf32>
    %67 = vector.broadcast %66 : vector<1x1x24xf32> to vector<16x16x24xf32>
    %68 = arith.mulf %63, %67 : vector<16x16x24xf32>
    %69 = arith.addf %62, %68 : vector<16x16x24xf32>
    %70 = vector.extract_strided_slice %55 {offsets = [0, 9, 0], sizes = [16, 16, 24], strides = [1, 1, 1]} : vector<16x32x24xf32> to vector<16x16x24xf32>
    %71 = vector.extract_strided_slice %5 {offsets = [8, 0], sizes = [1, 24], strides = [1, 1]} : vector<9x24xf32> to vector<1x24xf32>
    %72 = vector.shape_cast %71 : vector<1x24xf32> to vector<24xf32>
    %73 = vector.shape_cast %72 : vector<24xf32> to vector<1x1x24xf32>
    %74 = vector.broadcast %73 : vector<1x1x24xf32> to vector<16x16x24xf32>
    %75 = arith.mulf %70, %74 : vector<16x16x24xf32>
    %76 = arith.addf %69, %75 : vector<16x16x24xf32>
    %c0_9 = arith.constant 0 : index
    %c0_10 = arith.constant 0 : index
    %77 = vector.load %arg6[%c0_9, %c0_10] : memref<1x24xf32, #tpu.memory_space<vmem>>, vector<1x24xf32>
    %78 = vector.shape_cast %77 : vector<1x24xf32> to vector<24xf32>
    %79 = vector.shape_cast %78 : vector<24xf32> to vector<1x1x24xf32>
    %80 = vector.broadcast %79 : vector<1x1x24xf32> to vector<16x16x24xf32>
    %81 = arith.addf %76, %80 : vector<16x16x24xf32>
    %cst = arith.constant 0.000000e+00 : f32
    %82 = vector.broadcast %cst : f32 to vector<16x16x24xf32>
    %83 = arith.maximumf %81, %82 : vector<16x16x24xf32>
    %84 = vector.shape_cast %83 : vector<16x16x24xf32> to vector<256x24xf32>
    %c0_11 = arith.constant 0 : index
    %c0_12 = arith.constant 0 : index
    %85 = vector.load %arg7[%c0_11, %c0_12] : memref<8x24xf32, #tpu.memory_space<vmem>>, vector<8x24xf32>
    %cst_13 = arith.constant dense<0.000000e+00> : vector<8x256xf32>
    %86 = tpu.matmul %85, %84, %cst_13 {dimension_numbers = #tpu.dot_dimension_numbers<[1], [1], [0], [0], [0, 0, 1, 0], [], []>} : vector<8x24xf32>, vector<256x24xf32>, vector<8x256xf32> -> vector<8x256xf32>
    %c0_14 = arith.constant 0 : index
    %c0_15 = arith.constant 0 : index
    %87 = vector.load %arg8[%c0_14, %c0_15] : memref<8x1xf32, #tpu.memory_space<vmem>>, vector<8x1xf32>
    %88 = vector.broadcast %87 : vector<8x1xf32> to vector<8x256xf32>
    %89 = arith.addf %86, %88 : vector<8x256xf32>
    %c0_16 = arith.constant 0 : index
    %c0_17 = arith.constant 0 : index
    %c0_18 = arith.constant 0 : index
    %90 = vector.load %arg9[%c0_16, %c0_17, %c0_18] : memref<1x8x256xf32, #tpu.memory_space<vmem>>, vector<1x8x256xf32>
    %91 = vector.shape_cast %90 : vector<1x8x256xf32> to vector<8x256xf32>
    %92 = vector.shape_cast %89 : vector<8x256xf32> to vector<1x8x256xf32>
    tpu.vector_store %arg9[%c0_16, %c0_17, %c0_18], %92 {strides = array<i32>} : memref<1x8x256xf32, #tpu.memory_space<vmem>>, vector<1x8x256xf32>,
    return
  }
  func.func @transform_0(%arg0: i32, %arg1: i32) -> (i32, i32, i32) {
    %c0_i32 = arith.constant 0 : i32
    %c0_i32_0 = arith.constant 0 : i32
    %c0_i32_1 = arith.constant 0 : i32
    return %arg0, %c0_i32, %c0_i32_0 : i32, i32, i32
  }
  func.func @transform_1(%arg0: i32, %arg1: i32) -> (i32, i32) {
    %c0_i32 = arith.constant 0 : i32
    %c0_i32_0 = arith.constant 0 : i32
    %c0_i32_1 = arith.constant 0 : i32
    return %c0_i32, %c0_i32_0 : i32, i32
  }
  func.func @transform_2(%arg0: i32, %arg1: i32) -> (i32, i32) {
    %c0_i32 = arith.constant 0 : i32
    %c0_i32_0 = arith.constant 0 : i32
    %c0_i32_1 = arith.constant 0 : i32
    return %c0_i32, %c0_i32_0 : i32, i32
  }
  func.func @transform_3(%arg0: i32, %arg1: i32) -> (i32, i32) {
    %c0_i32 = arith.constant 0 : i32
    %c0_i32_0 = arith.constant 0 : i32
    %c0_i32_1 = arith.constant 0 : i32
    return %c0_i32, %c0_i32_0 : i32, i32
  }
  func.func @transform_4(%arg0: i32, %arg1: i32) -> (i32, i32) {
    %c0_i32 = arith.constant 0 : i32
    %c0_i32_0 = arith.constant 0 : i32
    %c0_i32_1 = arith.constant 0 : i32
    return %c0_i32, %c0_i32_0 : i32, i32
  }
  func.func @transform_5(%arg0: i32, %arg1: i32) -> (i32, i32) {
    %c0_i32 = arith.constant 0 : i32
    %c0_i32_0 = arith.constant 0 : i32
    %c0_i32_1 = arith.constant 0 : i32
    return %c0_i32, %c0_i32_0 : i32, i32
  }
  func.func @transform_6(%arg0: i32, %arg1: i32) -> (i32, i32) {
    %c0_i32 = arith.constant 0 : i32
    %c0_i32_0 = arith.constant 0 : i32
    %c0_i32_1 = arith.constant 0 : i32
    return %c0_i32, %c0_i32_0 : i32, i32
  }
  func.func @transform_7(%arg0: i32, %arg1: i32) -> (i32, i32, i32) {
    %c0_i32 = arith.constant 0 : i32
    %c0_i32_0 = arith.constant 0 : i32
    return %arg0, %c0_i32, %arg1 : i32, i32, i32
  }
}

</mosaic_0001>

<bundles_post_ra>
// kernel: tpu_custom_call.1
= control target key start
LH: loop header
LB: loop body
LE: loop exit
PB: predicated region body
PF: predicated region fallthrough
CT: control target
= control target key end

     0   :  { %12 = vsyncpa [#allocation4], 0  ;;  %s6005_s0 = inlined_call_operand.vmem [shape: f32[2,256,4], index: 0, kind: input, shape index: {}]   ;;  %s6006_s1 = inlined_call_operand.vmem [shape: f32[4,24], index: 1, kind: input, shape index: {}]   ;;  %s6007_s2 = inlined_call_operand.vmem [shape: f32[1,24], index: 2, kind: input, shape index: {}]   ;;  %s6008_s3 = inlined_call_operand.vmem [shape: f32[9,24], index: 3, kind: input, shape index: {}]   ;;  %s6009_s4 = inlined_call_operand.vmem [shape: f32[1,24], index: 4, kind: input, shape index: {}]   ;;  %s6010_s5 = inlined_call_operand.vmem [shape: f32[8,24], index: 5, kind: input, shape index: {}]   ;;  %s6011_s6 = inlined_call_operand.vmem [shape: f32[8,1], index: 6, kind: input, shape index: {}]   ;;  %s6012_s7 = inlined_call_operand.hbm [shape: f32[2,8,256], index: 7, kind: output, shape index: {}]  }
   0x1   :  { %14 = vsyncpa [#allocation4 + $0x1], 0  ;;  %s3695_s24 = smov 0   ;;  %s3697_s25 = smov 0  }
   0x2   :  { %s3699_s26 = smov 0   ;;  %s3701_s27 = smov 0  }
   0x3   :  { %s3703_s28 = smov 0   ;;  %s3705_s29 = smov 0  }
   0x4 LB: > { %s3167_s30 = sadd.s32 4294967295, %s3650_s29   ;;  %s3168_s8 = sadd.s32 4294967294, %s3650_s29   ;;  %s3650_s29 = sphi %s3705_s29, %s20_s29   ;;  %s3646_s28 = sphi %s3703_s28, %s6287_s28   ;;  %s3642_s27 = sphi %s3701_s27, %s6286_s27   ;;  %s3638_s26 = sphi %s3699_s26, %s6285_s26   ;;  %s3634_s25 = sphi %s3697_s25, %s6284_s25   ;;  %s3630_s24 = sphi %s3695_s24, %s6283_s24  }
   0x5   : > { %s32_s9 = sadd.s32 1, %s3646_s28  ;;  %s193_s10 = sadd.s32 1, %s3638_s26 }
   0x6   : > { %p34_p0 = scmp.ge.s32.totalorder %s32_s9, 2  ;;  %p203_p1 = scmp.ne.s32.totalorder %s3638_s26, %s3634_s25 }
   0x7   : > { %p204_p2 = scmp.eq.s32.totalorder %s3167_s30, 1  ;;  %p209_p3 = scmp.ne.s32.totalorder %s3634_s25, %s3630_s24 }
   0x8   : > { %s6289_s9 = smov (%p34_p0, %s32_s9), 0  ;;  %p210_p5 = scmp.eq.s32.totalorder %s3168_s8, 1 }
   0x9   : > { %p3735_p4 = por %p204_p2, %p203_p1  ;;  %s188_s12 = ssub.s32 %s3646_s28, %s6289_s9 }
   0xa   : > { %p3171_p6 = scmp.ge.s32.totalorder %s3650_s29, 1  ;;  %p191_p7 = scmp.eq.s32.totalorder %s188_s12, 0 }
   0xb   : > { %p3742_p8 = por %p210_p5, %p209_p3  ;;  %p254_p9 = scmp.lt.s32.totalorder %s3650_s29, 3 }
   0xc   : > { %s3748_s14 = scalar_select %p191_p7, %s3638_s26, %s193_s10  }
   0xd   : > { %p255_p10 = pnand %p3171_p6, %p254_p9 }
   0xf   : > { %258 = sbr.rel (%p255_p10) target bundleno = 818 (0x332), region = 48 }
  0x14   : > { %v328_v0 = vld [vmem:[%s6006_s1] sm:$0xf]  ;;  %vm433_vm0 = vcmask 1043456   ;;  %p286_p11 = scmp.lt.s32.totalorder %s3642_s27, 1  ;;  %vm336_vm1 = vcmask 31744   ;;  %vm695_vm2 = vcmask 195584   ;;  %v838_v34 = vlaneseq }
  0x15   : > { %3446 = vmatprep.subr.msk.mxu0 %vm433_vm0, %v328_v0  ;;  %v3652_v33 = vmov 0.0   ;;  %v770_v38 = vld [vmem:[%s6008_s3] sm:$0xff]  ;;  %v3894_v57 = vld [vmem:[%s6008_s3 + $0x8] ss:$0 sm:$0xff]  ;;  %vm1203_vm3 = vcmask 1045504   ;;  %vm958_vm4 = vcmask 1046528  }
  0x16   : > { %3447 = vmatpush3.msk.msra.mxu0 %vm433_vm0, %v328_v0  ;;  %s287_s17 = scalar_select %p286_p11, %s3642_s27, 1  ;;  %755 = vst.msk [vmem:[#allocation2 + $0x1f8] sm:$0xff] %vm695_vm2, %v3652_v33  ;;  %759 = vst.msk [vmem:[#allocation2 + $0x218] sm:$0xff] %vm695_vm2, %v3652_v33  ;;  %v839_v35 = vshrl.u32 %v838_v34, 7  ;;  %v3870_v39 = vld [vmem:[%s6007_s2] ss:$0 sm:$0xff] }
  0x17   : > { %766 = vst.msk [vmem:[#allocation2 + $0x228] sm:$0xff] %vm695_vm2, %v3652_v33  ;;  %767 = vst.msk [vmem:[#allocation2 + $0x230] sm:$0xff] %vm695_vm2, %v3652_v33  ;;  %vm2841_vm5 = vcmask 1040384   ;;  %s283_s16 = sand.u32 1, %s3634_s25   ;;  %s3654_s10 = smov [#allocation3]  }
  0x18   : > { %s3377_s18 = sshll.u32 %s287_s17, 8  ;;  %768 = vst.msk [vmem:[#allocation2 + $0x238] sm:$0xff] %vm695_vm2, %v3652_v33  ;;  %696 = vst.msk [vmem:[#allocation2 + $0x20] sm:$0xff] %vm695_vm2, %v3652_v33  ;;  %v1105_v36 = vsub.s32 2, %v839_v35  ;;  %v1761_v37 = vsub.s32 5, %v839_v35  ;;  %v840_v40 = vsub.s32 0, %v839_v35 }
  0x19   : > { %s3758_s21 = scalar_lea.vmem %s6005_s0, %s3377_s18  ;;  %699 = vst.msk [vmem:[#allocation2 + $0x38] sm:$0xff] %vm695_vm2, %v3652_v33  ;;  %700 = vst.msk [vmem:[#allocation2 + $0x40] sm:$0xff] %vm695_vm2, %v3652_v33  ;;  %v892_v41 = vsub.s32 1, %v839_v35  ;;  %v1449_v45 = vsub.s32 3, %v839_v35  ;;  %v1549_v48 = vsub.s32 4, %v839_v35  ;;  %v2104_v49 = vsub.s32 6, %v839_v35 }
  0x1a   : > { %v296_v1 = vld [vmem:[%s3758_s21] sm:$0xff]  ;;  %v297_v2 = vld [vmem:[%s3758_s21 + $0x8] sm:$0xff]  ;;  %v298_v3 = vld [vmem:[%s3758_s21 + $0x10] sm:$0xff]  ;;  %703 = vst.msk [vmem:[#allocation2 + $0x58] sm:$0xff] %vm695_vm2, %v3652_v33  ;;  %v3876_v44 = vrot.slane %v770_v38, %v1105_v36  ;;  %v3878_v46 = vrot.slane %v770_v38, %v1761_v37  ;;  %v2204_v50 = vsub.s32 7, %v839_v35  ;;  %v3896_v58 = vrot.slane %v770_v38, %v840_v40  ;;  %s3172_s17 = sshll.u32 %s283_s16, 4 }
  0x1b   : > { %3448 = vmatprep.mubr.msk.f32.mxu0 %vm336_vm1, %v296_v1  ;;  %v299_v4 = vld [vmem:[%s3758_s21 + $0x18] sm:$0xff]  ;;  %v300_v5 = vld [vmem:[%s3758_s21 + $0x20] sm:$0xff]  ;;  %v301_v6 = vld [vmem:[%s3758_s21 + $0x28] sm:$0xff]  ;;  %704 = vst.msk [vmem:[#allocation2 + $0x60] sm:$0xff] %vm695_vm2, %v3652_v33  ;;  %v3898_v59 = vrot.slane %v770_v38, %v892_v41  ;;  %v3905_v1 = vrot.slane %v770_v38, %v1449_v45  ;;  %s3378_s18 = sshll.u32 %s3642_s27, 8  ;;  %s285_s19 = scalar_lea.vmem [#allocation3], %s3172_s17 }
  0x1c   : > { %3449 = vmatmul.mubr.msk.f32.vlgmr.msra.gmra.mxu0 %vm336_vm1, %v297_v2  ;;  %v302_v7 = vld [vmem:[%s3758_s21 + $0x30] sm:$0xff]  ;;  %v303_v8 = vld [vmem:[%s3758_s21 + $0x38] sm:$0xff]  ;;  %v304_v9 = vld [vmem:[%s3758_s21 + $0x40] sm:$0xff]  ;;  %707 = vst.msk [vmem:[#allocation2 + $0x78] sm:$0xff] %vm695_vm2, %v3652_v33  ;;  %s3087_s20 = sshll.u32 %s285_s19, 4  ;;  %s3085_s23 = scalar_lea.hbm %s6012_s7, %s3378_s18  ;;  %s3088_s20 = int_to_ptr.vmem [resolvable:$true] %s3087_s20 }
  0x1d   : > { %3451 = vmatprep.mubr.msk.f32.mxu0 %vm336_vm1, %v298_v3  ;;  %v305_v10 = vld [vmem:[%s3758_s21 + $0x48] sm:$0xff]  ;;  %v306_v11 = vld [vmem:[%s3758_s21 + $0x50] sm:$0xff]  ;;  %v307_v12 = vld [vmem:[%s3758_s21 + $0x58] sm:$0xff]  ;;  %708 = vst.msk [vmem:[#allocation2 + $0x80] sm:$0xff] %vm695_vm2, %v3652_v33  ;;  %s3071_s30 = scalar_lea.sflag [#allocation4], %s283_s16  ;;  %s3574_s8 = scalar_lea.vmem %s3088_s20, 256 }
  0x1e   : > { %v308_v13 = vld [vmem:[%s3758_s21 + $0x60] sm:$0xff]  ;;  %v309_v14 = vld [vmem:[%s3758_s21 + $0x68] sm:$0xff]  ;;  %v310_v15 = vld [vmem:[%s3758_s21 + $0x70] sm:$0xff]  ;;  %711 = vst.msk [vmem:[#allocation2 + $0x98] sm:$0xff] %vm695_vm2, %v3652_v33  ;;  %p3575_p12 = scmp.ne.s32.totalorder %s3088_s20, %s3574_s8  ;;  %s3578_s27 = sshll.u32 %s3654_s10, 4  ;;  %s3579_s27 = int_to_ptr.vmem [resolvable:$false] %s3578_s27 }
  0x1f   : > { %v311_v16 = vld [vmem:[%s3758_s21 + $0x78] sm:$0xff]  ;;  %v312_v17 = vld [vmem:[%s3758_s21 + $0x80] sm:$0xff]  ;;  %v313_v18 = vld [vmem:[%s3758_s21 + $0x88] sm:$0xff]  ;;  %712 = vst.msk [vmem:[#allocation2 + $0xa0] sm:$0xff] %vm695_vm2, %v3652_v33  ;;  %s3580_s12 = scalar_lea.vmem %s3579_s27, 512  ;;  %p3581_p1 = scmp.lt.s32.totalorder %s3088_s20, %s3579_s27 }
  0x20   : > { %3452 = vmatmul.mubr.msk.f32.gmra.mxu0 %vm336_vm1, %v299_v4  ;;  %v314_v19 = vld [vmem:[%s3758_s21 + $0x90] sm:$0xff]  ;;  %v315_v20 = vld [vmem:[%s3758_s21 + $0x98] sm:$0xff]  ;;  %v316_v21 = vld [vmem:[%s3758_s21 + $0xa0] sm:$0xff]  ;;  %715 = vst.msk [vmem:[#allocation2 + $0xb8] sm:$0xff] %vm695_vm2, %v3652_v33  ;;  %p3576_p13 = pnand %p3575_p12, %p3735_p4  ;;  %p3582_p2 = scmp.lt.s32.totalorder %s3580_s12, %s3574_s8 }
  0x21   : > { %3454 = vmatprep.mubr.msk.f32.mxu0 %vm336_vm1, %v300_v5  ;;  %v317_v22 = vld [vmem:[%s3758_s21 + $0xa8] sm:$0xff]  ;;  %v318_v23 = vld [vmem:[%s3758_s21 + $0xb0] sm:$0xff]  ;;  %v319_v24 = vld [vmem:[%s3758_s21 + $0xb8] sm:$0xff]  ;;  %716 = vst.msk [vmem:[#allocation2 + $0xc0] sm:$0xff] %vm695_vm2, %v3652_v33  ;;  %v3912_v5 = vrot.slane %v770_v38, %v1549_v48 }
  0x22   : > { %v320_v25 = vld [vmem:[%s3758_s21 + $0xc0] sm:$0xff]  ;;  %v321_v26 = vld [vmem:[%s3758_s21 + $0xc8] sm:$0xff]  ;;  %v322_v27 = vld [vmem:[%s3758_s21 + $0xd0] sm:$0xff]  ;;  %719 = vst.msk [vmem:[#allocation2 + $0xd8] sm:$0xff] %vm695_vm2, %v3652_v33  ;;  %p3577_p0 = pneg %p3576_p13  ;;  %p3583_p3 = por %p3582_p2, %p3581_p1 }
  0x23   : > { %v323_v28 = vld [vmem:[%s3758_s21 + $0xd8] sm:$0xff]  ;;  %v324_v29 = vld [vmem:[%s3758_s21 + $0xe0] sm:$0xff]  ;;  %v325_v30 = vld [vmem:[%s3758_s21 + $0xe8] sm:$0xff]  ;;  %720 = vst.msk [vmem:[#allocation2 + $0xe0] sm:$0xff] %vm695_vm2, %v3652_v33 }
  0x24   : > { %3455 = vmatmul.mubr.msk.f32.gmra.mxu0 %vm336_vm1, %v301_v6  ;;  %v326_v31 = vld [vmem:[%s3758_s21 + $0xf0] sm:$0xff]  ;;  %v327_v32 = vld [vmem:[%s3758_s21 + $0xf8] sm:$0xff]  ;;  %723 = vst.msk [vmem:[#allocation2 + $0xf8] sm:$0xff] %vm695_vm2, %v3652_v33  ;;  %724 = vst.msk [vmem:[#allocation2 + $0x100] sm:$0xff] %vm695_vm2, %v3652_v33  ;;  %p3584_p5 = pnand %p3583_p3, %p3577_p0 }
  0x25   : > { %3457 = vmatprep.mubr.msk.f32.mxu0 %vm336_vm1, %v302_v7  ;;  %727 = vst.msk [vmem:[#allocation2 + $0x118] sm:$0xff] %vm695_vm2, %v3652_v33  ;;  %728 = vst.msk [vmem:[#allocation2 + $0x120] sm:$0xff] %vm695_vm2, %v3652_v33  ;;  %v3903_v63 = vld [vmem:[#allocation2 + $0x1f8] sm:$0xff]  ;;  %v3907_v2 = vld [vmem:[#allocation2 + $0x230] sm:$0xff]  ;;  %v3914_v7 = vrot.slane %v770_v38, %v2104_v49 }
  0x26   : > { %731 = vst.msk [vmem:[#allocation2 + $0x138] sm:$0xff] %vm695_vm2, %v3652_v33  ;;  %732 = vst.msk [vmem:[#allocation2 + $0x140] sm:$0xff] %vm695_vm2, %v3652_v33  ;;  %v3272_v0 = vld [vmem:[#allocation2 + $0x218] sm:$0xff] }
  0x27   : > { %735 = vst.msk [vmem:[#allocation2 + $0x158] sm:$0xff] %vm695_vm2, %v3652_v33  ;;  %736 = vst.msk [vmem:[#allocation2 + $0x160] sm:$0xff] %vm695_vm2, %v3652_v33  ;;  %v3336_v6 = vld [vmem:[#allocation2 + $0x238] sm:$0xff] }
  0x28   : > { %3458 = vmatmul.mubr.msk.f32.gmra.mxu0 %vm336_vm1, %v303_v8  ;;  %739 = vst.msk [vmem:[#allocation2 + $0x178] sm:$0xff] %vm695_vm2, %v3652_v33  ;;  %740 = vst.msk [vmem:[#allocation2 + $0x180] sm:$0xff] %vm695_vm2, %v3652_v33  ;;  %v3916_v8 = vrot.slane %v770_v38, %v2204_v50  ;;  %v794_v38 = vld [vmem:[#allocation2 + $0xa0] sm:$0xff] }
  0x29   : > { %3460 = vmatprep.mubr.msk.f32.mxu0 %vm336_vm1, %v304_v9  ;;  %743 = vst.msk [vmem:[#allocation2 + $0x198] sm:$0xff] %vm695_vm2, %v3652_v33  ;;  %744 = vst.msk [vmem:[#allocation2 + $0x1a0] sm:$0xff] %vm695_vm2, %v3652_v33  ;;  %v3889_v55 = vld [vmem:[#allocation2 + $0xd8] sm:$0xff] }
  0x2a   : > { %747 = vst.msk [vmem:[#allocation2 + $0x1b8] sm:$0xff] %vm695_vm2, %v3652_v33  ;;  %748 = vst.msk [vmem:[#allocation2 + $0x1c0] sm:$0xff] %vm695_vm2, %v3652_v33  ;;  %v3900_v60 = vld [vmem:[#allocation2 + $0xe0] sm:$0xff]  ;;  %v3920_v9 = vmul.f32 %v3876_v44, %v3889_v55  ;;  %v3973_v41 = vmul.f32 %v3907_v2, %v3916_v8 }
  0x2b   : > { %751 = vst.msk [vmem:[#allocation2 + $0x1d8] sm:$0xff] %vm695_vm2, %v3652_v33  ;;  %752 = vst.msk [vmem:[#allocation2 + $0x1e0] sm:$0xff] %vm695_vm2, %v3652_v33  ;;  %v3872_v42 = vld [vmem:[#allocation2 + $0xf8] sm:$0xff] }
  0x2c   : > { %3461 = vmatmul.mubr.msk.f32.gmra.mxu0 %vm336_vm1, %v305_v10  ;;  %756 = vst.msk [vmem:[#allocation2 + $0x200] sm:$0xff] %vm695_vm2, %v3652_v33  ;;  %760 = vst.msk [vmem:[#allocation2] sm:$0xff] %vm695_vm2, %v3652_v33  ;;  %v3874_v43 = vld [vmem:[#allocation2 + $0x118] sm:$0xff]  ;;  %v3883_v53 = vmul.f32 %v3876_v44, %v3872_v42 }
  0x2d   : > { %3463 = vmatprep.mubr.msk.f32.mxu0 %vm336_vm1, %v306_v11  ;;  %761 = vst.msk [vmem:[#allocation2 + $0x8] sm:$0xff] %vm695_vm2, %v3652_v33  ;;  %762 = vst.msk [vmem:[#allocation2 + $0x10] sm:$0xff] %vm695_vm2, %v3652_v33  ;;  %v3304_v51 = vld [vmem:[#allocation2 + $0x138] sm:$0xff]  ;;  %v3887_v54 = vmul.f32 %v3874_v43, %v3878_v46 }
  0x2e   : > { %763 = vst.msk [vmem:[#allocation2 + $0x18] sm:$0xff] %vm695_vm2, %v3652_v33  ;;  %765 = vst.msk [vmem:[#allocation2 + $0x220] sm:$0xff] %vm695_vm2, %v3652_v33  ;;  %v3910_v3 = vmul.f32 %v3894_v57, %v3304_v51  ;;  %v3979_v51 = vmul.f32 %v3878_v46, %v3903_v63 }
  0x2f   : > { %6100 = vst [vmem:[#allocation6_spill] sm:$0xff] %v3876_v44  ;;  %6101 = vst [vmem:[#allocation7_spill] sm:$0xff] %v3898_v59 }
  0x30   : > { %3464 = vmatmul.mubr.msk.f32.gmra.mxu0 %vm336_vm1, %v307_v12  ;;  %v3334_v12 = vld [vmem:[#allocation2 + $0x228] sm:$0xff] }
  0x31   : > { %3466 = vmatprep.mubr.msk.f32.mxu0 %vm336_vm1, %v308_v13 }
  0x32   : > { %v3960_v34 = vld [vmem:[#allocation2 + $0x1e0] sm:$0xff] }
  0x33   : > { %v3269_v50 = vld [vmem:[#allocation2 + $0x200] sm:$0xff] }
  0x34   : > { %3467 = vmatmul.mubr.msk.f32.gmra.mxu0 %vm336_vm1, %v309_v14  ;;  %v826_v14 = vld [vmem:[#allocation2 + $0x1a0] sm:$0xff] }
  0x35   : > { %3469 = vmatprep.mubr.msk.f32.mxu0 %vm336_vm1, %v310_v15  ;;  %v3926_v15 = vld [vmem:[#allocation2 + $0x1d8] sm:$0xff] }
  0x38   : > { %3470 = vmatmul.mubr.msk.f32.gmra.mxu0 %vm336_vm1, %v311_v16 }
  0x39   : > { %3472 = vmatprep.mubr.msk.f32.mxu0 %vm336_vm1, %v312_v17  ;;  %v3930_v17 = vmul.f32 %v3876_v44, %v3903_v63 }
  0x3c   : > { %3473 = vmatmul.mubr.msk.f32.gmra.mxu0 %vm336_vm1, %v313_v18  ;;  %v3933_v18 = vmul.f32 %v3272_v0, %v3878_v46 }
  0x3d   : > { %3475 = vmatprep.mubr.msk.f32.mxu0 %vm336_vm1, %v314_v19  ;;  %v2464_v19 = vmul.f32 %v3894_v57, %v3907_v2 }
  0x3f   : > { %v2590_v45 = vrot.slane %v2464_v19, 2  ;;  %v3995_v19 = vmul.f32 %v3878_v46, %v3872_v42 }
  0x40   : > { %3476 = vmatmul.mubr.msk.f32.gmra.mxu0 %vm336_vm1, %v315_v20  ;;  %v3939_v20 = vmul.f32 %v3896_v58, %v3900_v60 }
  0x41   : > { %3478 = vmatprep.mubr.msk.f32.mxu0 %vm336_vm1, %v316_v21  ;;  %v3941_v21 = vld [vmem:[#allocation2 + $0x100] sm:$0xff]  ;;  %6104 = vst [vmem:[#allocation10_spill] sm:$0xff] %v3995_v19 }
  0x42   : > { %v3964_v35 = vmul.f32 %v3941_v21, %v3905_v1 }
  0x44   : > { %3479 = vmatmul.mubr.msk.f32.gmra.mxu0 %vm336_vm1, %v317_v22  ;;  %v3301_v22 = vld [vmem:[#allocation2 + $0x120] sm:$0xff] }
  0x45   : > { %3481 = vmatprep.mubr.msk.f32.mxu0 %vm336_vm1, %v318_v23  ;;  %v3967_v36 = vmul.f32 %v3301_v22, %v3914_v7 }
  0x48   : > { %3482 = vmatmul.mubr.msk.f32.gmra.mxu0 %vm336_vm1, %v319_v24 }
  0x49   : > { %3484 = vmatprep.mubr.msk.f32.mxu0 %vm336_vm1, %v320_v25  ;;  %v2465_v25 = vmul.f32 %v3894_v57, %v3336_v6 }
  0x4b   : > { %v2592_v49 = vrot.slane %v2465_v25, 2  ;;  %v6014_v25 = vrot.slane %v3973_v41, 1 }
  0x4c   : > { %3485 = vmatmul.mubr.msk.f32.gmra.mxu0 %vm336_vm1, %v321_v26 }
  0x4d   : > { %3487 = vmatprep.mubr.msk.f32.mxu0 %vm336_vm1, %v322_v27 }
  0x50   : > { %3488 = vmatmul.mubr.msk.f32.gmra.mxu0 %vm336_vm1, %v323_v28  ;;  %v3948_v28 = vmul.f32 %v3334_v12, %v3916_v8 }
  0x51   : > { %3490 = vmatprep.mubr.msk.f32.mxu0 %vm336_vm1, %v324_v29  ;;  %v3951_v29 = vmul.f32 %v3894_v57, %v3334_v12 }
  0x53   : > { %6102 = vst [vmem:[#allocation8_spill] sm:$0xff] %v3951_v29 }
  0x54   : > { %3491 = vmatmul.mubr.msk.f32.gmra.mxu0 %vm336_vm1, %v325_v30  ;;  %v3955_v30 = vmul.f32 %v3876_v44, %v3926_v15 }
  0x55   : > { %3493 = vmatprep.mubr.msk.f32.mxu0 %vm336_vm1, %v326_v31 }
  0x58   : > { %3494 = vmatmul.mubr.msk.f32.gmra.mxu0 %vm336_vm1, %v327_v32 }
  0xdc   : > { %v3450_v47 = vpop.f32.mrf.mxu0 }
  0xdd   : > { %v509_v52 = vadd.f32 %v3450_v47, %v3870_v39 }
  0xde   : > { %v503_v56 = vpop.f32.mrf.mxu0 }
  0xdf   : > { %v663_v61 = vmax.f32 %v509_v52, 0.0  ;;  %v504_v62 = vadd.f32 %v3870_v39, %v503_v56  ;;  %v6013_v56 = vrot.slane %v3948_v28, 1 }
  0xe0   : > { %v3453_v4 = vpop.f32.mrf.mxu0 }
  0xe1   : > { %698 = vst.msk [vmem:[#allocation2 + $0x30] sm:$0xff] %vm695_vm2, %v663_v61  ;;  %v662_v10 = vmax.f32 %v504_v62, 0.0  ;;  %v519_v11 = vadd.f32 %v3453_v4, %v3870_v39  ;;  %v6015_v61 = vrot.slane %v3951_v29, 2  ;;  %v3985_v62 = vmul.f32 %v3896_v58, %v3960_v34 }
  0xe2   : > { %v513_v16 = vpop.f32.mrf.mxu0 }
  0xe3   : > { %697 = vst.msk [vmem:[#allocation2 + $0x28] sm:$0xff] %vm695_vm2, %v662_v10  ;;  %v665_v23 = vmax.f32 %v519_v11, 0.0  ;;  %v514_v24 = vadd.f32 %v3870_v39, %v513_v16  ;;  %v3333_v11 = vld [vmem:[#allocation2 + $0x220] sm:$0xff]  ;;  %v3991_v16 = vmul.f32 %v3894_v57, %v3272_v0 }
  0xe4   : > { %v3456_v27 = vpop.f32.mrf.mxu0 }
  0xe5   : > { %702 = vst.msk [vmem:[#allocation2 + $0x50] sm:$0xff] %vm695_vm2, %v665_v23  ;;  %v664_v32 = vmax.f32 %v514_v24, 0.0  ;;  %v529_v33 = vadd.f32 %v3456_v27, %v3870_v39  ;;  %6103 = vst [vmem:[#allocation9_spill] sm:$0xff] %v3991_v16  ;;  %v3998_v23 = vmul.f32 %v3334_v12, %v3914_v7  ;;  %v4002_v24 = vmul.f32 %v3907_v2, %v3914_v7 }
  0xe6   : > { %v523_v37 = vpop.f32.mrf.mxu0  ;;  %v4006_v27 = vmul.f32 %v3269_v50, %v3905_v1 }
  0xe7   : > { %701 = vst.msk [vmem:[#allocation2 + $0x48] sm:$0xff] %vm695_vm2, %v664_v32  ;;  %v667_v47 = vmax.f32 %v529_v33, 0.0  ;;  %v524_v48 = vadd.f32 %v3870_v39, %v523_v37  ;;  %v4011_v33 = vsel %vm1203_vm3, %v2590_v45, %v2592_v49  ;;  %v798_v37 = vld [vmem:[#allocation2 + $0xc0] sm:$0xff]  ;;  %v4027_v49 = vmul.f32 %v3333_v11, %v3914_v7 }
  0xe8   : > { %v3459_v52 = vpop.f32.mrf.mxu0  ;;  %v4097_v31 = vmul.f32 %v3905_v1, %v798_v37 }
  0xe9   : > { %706 = vst.msk [vmem:[#allocation2 + $0x70] sm:$0xff] %vm695_vm2, %v667_v47  ;;  %v666_v6 = vmax.f32 %v524_v48, 0.0  ;;  %v539_v10 = vadd.f32 %v3459_v52, %v3870_v39  ;;  %v829_v47 = vld [vmem:[#allocation2 + $0x1b8] sm:$0xff]  ;;  %v4019_v52 = vsel %vm958_vm4, %v6013_v56, %v6014_v25  ;;  %v830_v25 = vld [vmem:[#allocation2 + $0x1c0] sm:$0xff]  ;;  %v4054_v56 = vmul.f32 %v3894_v57, %v3903_v63 }
  0xea   : > { %v533_v22 = vpop.f32.mrf.mxu0  ;;  %v797_v48 = vld [vmem:[#allocation2 + $0xb8] sm:$0xff]  ;;  %v4041_v11 = vmul.f32 %v3876_v44, %v829_v47  ;;  %v4058_v47 = vmul.f32 %v3878_v46, %v3889_v55  ;;  %6120 = vst [vmem:[#allocation26_spill] sm:$0xff] %v4097_v31 }
  0xeb   : > { %705 = vst.msk [vmem:[#allocation2 + $0x68] sm:$0xff] %vm695_vm2, %v666_v6  ;;  %v669_v0 = vmax.f32 %v539_v10, 0.0  ;;  %v534_v32 = vadd.f32 %v3870_v39, %v533_v22  ;;  %v4024_v6 = vsel %vm1203_vm3, %v6015_v61, %v2590_v45  ;;  %v4031_v10 = vmul.f32 %v3894_v57, %v3874_v43  ;;  %6111 = vst [vmem:[#allocation17_spill] sm:$0xff] %v4054_v56 }
  0xec   : > { %v3462_v2 = vpop.f32.mrf.mxu0  ;;  %6105 = vst [vmem:[#allocation11_spill] sm:$0xff] %v4024_v6  ;;  %v4038_v45 = vmul.f32 %v3896_v58, %v798_v37  ;;  %6108 = vst [vmem:[#allocation14_spill] sm:$0xff] %v4041_v11  ;;  %v4045_v43 = vmul.f32 %v3878_v46, %v3926_v15  ;;  %v4080_v15 = vmul.f32 %v3269_v50, %v3914_v7 }
  0xed   : > { %6106 = vst [vmem:[#allocation12_spill] sm:$0xff] %v4031_v10  ;;  %710 = vst.msk [vmem:[#allocation2 + $0x90] sm:$0xff] %vm695_vm2, %v669_v0  ;;  %v668_v22 = vmax.f32 %v534_v32, 0.0  ;;  %v549_v12 = vadd.f32 %v3462_v2, %v3870_v39  ;;  %v4048_v0 = vmul.f32 %v3876_v44, %v797_v48  ;;  %v4063_v48 = vmul.f32 %v3905_v1, %v3900_v60 }
  0xee   : > { %v543_v40 = vpop.f32.mrf.mxu0  ;;  %6107 = vst [vmem:[#allocation13_spill] sm:$0xff] %v4038_v45  ;;  %6109 = vst [vmem:[#allocation15_spill] sm:$0xff] %v4045_v43  ;;  %v4112_v37 = vmul.f32 %v3896_v58, %v826_v14  ;;  %v6147_v10 = vrot.slane %v3883_v53, 2 }
  0xef   : > { %6110 = vst [vmem:[#allocation16_spill] sm:$0xff] %v4048_v0  ;;  %709 = vst.msk [vmem:[#allocation2 + $0x88] sm:$0xff] %vm695_vm2, %v668_v22  ;;  %v671_v32 = vmax.f32 %v549_v12, 0.0  ;;  %v544_v2 = vadd.f32 %v3870_v39, %v543_v40  ;;  %v4067_v12 = vmul.f32 %v3941_v21, %v3914_v7  ;;  %v4071_v40 = vmul.f32 %v3894_v57, %v3872_v42 }
  0xf0   : > { %6112 = vst [vmem:[#allocation18_spill] sm:$0xff] %v4058_v47  ;;  %v3465_v61 = vpop.f32.mrf.mxu0  ;;  %6113 = vst [vmem:[#allocation19_spill] sm:$0xff] %v4063_v48  ;;  %v4077_v22 = vmul.f32 %v3905_v1, %v3960_v34  ;;  %v4083_v21 = vmul.f32 %v3896_v58, %v830_v25 }
  0xf1   : > { %6114 = vst [vmem:[#allocation20_spill] sm:$0xff] %v4067_v12  ;;  %6115 = vst [vmem:[#allocation21_spill] sm:$0xff] %v4071_v40  ;;  %v670_v63 = vmax.f32 %v544_v2, 0.0  ;;  %v559_v55 = vadd.f32 %v3465_v61, %v3870_v39 }
  0xf2   : > { %714 = vst.msk [vmem:[#allocation2 + $0xb0] sm:$0xff] %vm695_vm2, %v671_v32  ;;  %6116 = vst [vmem:[#allocation22_spill] sm:$0xff] %v4077_v22  ;;  %v553_v4 = vpop.f32.mrf.mxu0  ;;  %v4106_v32 = vmul.f32 %v3905_v1, %v830_v25 }
  0xf3   : > { %6117 = vst [vmem:[#allocation23_spill] sm:$0xff] %v4080_v15  ;;  %6118 = vst [vmem:[#allocation24_spill] sm:$0xff] %v4083_v21  ;;  %v673_v61 = vmax.f32 %v559_v55, 0.0  ;;  %v554_v2 = vadd.f32 %v3870_v39, %v553_v4  ;;  %v4094_v15 = vmul.f32 %v3896_v58, %v794_v38  ;;  %v793_v4 = vld [vmem:[#allocation2 + $0x98] sm:$0xff] }
  0xf4   : > { %713 = vst.msk [vmem:[#allocation2 + $0xa8] sm:$0xff] %vm695_vm2, %v670_v63  ;;  %v3468_v13 = vpop.f32.mrf.mxu0  ;;  %v4101_v63 = vmul.f32 %v3914_v7, %v3900_v60  ;;  %v792_v55 = vld [vmem:[#allocation2 + $0x90] sm:$0xff]  ;;  %6122 = vst [vmem:[#allocation28_spill] sm:$0xff] %v4106_v32  ;;  %v4116_v60 = vmul.f32 %v3914_v7, %v3960_v34  ;;  %v4128_v14 = vmul.f32 %v3876_v44, %v793_v4  ;;  %v825_v32 = vld [vmem:[#allocation2 + $0x198] sm:$0xff] }
  0xf5   : > { %6119 = vst [vmem:[#allocation25_spill] sm:$0xff] %v4094_v15  ;;  %718 = vst.msk [vmem:[#allocation2 + $0xd0] sm:$0xff] %vm695_vm2, %v673_v61  ;;  %v672_v26 = vmax.f32 %v554_v2, 0.0  ;;  %v569_v50 = vadd.f32 %v3468_v13, %v3870_v39  ;;  %v4109_v38 = vmul.f32 %v3898_v59, %v792_v55  ;;  %v856_v61 = vmul.f32 %v3896_v58, %v792_v55 }
  0xf6   : > { %6121 = vst [vmem:[#allocation27_spill] sm:$0xff] %v4101_v63  ;;  %v563_v12 = vpop.f32.mrf.mxu0  ;;  %6124 = vst [vmem:[#allocation30_spill] sm:$0xff] %v4112_v37  ;;  %v791_v42 = vld [vmem:[#allocation2 + $0x88] sm:$0xff]  ;;  %v4120_v2 = vmul.f32 %v3876_v44, %v792_v55 }
  0xf7   : > { %6123 = vst [vmem:[#allocation29_spill] sm:$0xff] %v4109_v38  ;;  %6125 = vst [vmem:[#allocation31_spill] sm:$0xff] %v4116_v60  ;;  %v675_v13 = vmax.f32 %v569_v50, 0.0  ;;  %v564_v25 = vadd.f32 %v3870_v39, %v563_v12  ;;  %v4125_v63 = vmul.f32 %v3898_v59, %v791_v42  ;;  %v4131_v60 = vmul.f32 %v3896_v58, %v791_v42 }
  0xf8   : > { %6126 = vst [vmem:[#allocation32_spill] sm:$0xff] %v4120_v2  ;;  %717 = vst.msk [vmem:[#allocation2 + $0xc8] sm:$0xff] %vm695_vm2, %v672_v26  ;;  %v3471_v31 = vpop.f32.mrf.mxu0  ;;  %v4135_v55 = vmul.f32 %v3876_v44, %v791_v42  ;;  %v6132_v37 = vrot.slane %v4109_v38, 1 }
  0xf9   : > { %6127 = vst [vmem:[#allocation33_spill] sm:$0xff] %v4125_v63  ;;  %6128 = vst [vmem:[#allocation34_spill] sm:$0xff] %v4128_v14  ;;  %v796_v34 = vld [vmem:[#allocation2 + $0xb0] sm:$0xff]  ;;  %v674_v12 = vmax.f32 %v564_v25, 0.0  ;;  %v579_v50 = vadd.f32 %v3471_v31, %v3870_v39 }
  0xfa   : > { %6129 = vst [vmem:[#allocation35_spill] sm:$0xff] %v4131_v60  ;;  %6130 = vst [vmem:[#allocation36_spill] sm:$0xff] %v4135_v55  ;;  %v859_v4 = vmul.f32 %v3896_v58, %v796_v34  ;;  %v905_v14 = vmul.f32 %v3898_v59, %v796_v34  ;;  %v573_v40 = vpop.f32.mrf.mxu0  ;;  %v4143_v60 = vmul.f32 %v3876_v44, %v796_v34 }
  0xfb   : > { %722 = vst.msk [vmem:[#allocation2 + $0xf0] sm:$0xff] %vm695_vm2, %v675_v13  ;;  %v795_v15 = vld [vmem:[#allocation2 + $0xa8] sm:$0xff]  ;;  %v4148_v26 = vadd.f32 %v6132_v37, %v856_v61  ;;  %721 = vst.msk [vmem:[#allocation2 + $0xe8] sm:$0xff] %vm695_vm2, %v674_v12  ;;  %v677_v31 = vmax.f32 %v579_v50, 0.0  ;;  %v574_v25 = vadd.f32 %v3870_v39, %v573_v40  ;;  %v4166_v12 = vmul.f32 %v3876_v44, %v825_v32 }
  0xfc   : > { %6131 = vst [vmem:[#allocation37_spill] sm:$0xff] %v4143_v60  ;;  %v4154_v2 = vmul.f32 %v3896_v58, %v795_v15  ;;  %v4157_v34 = vmul.f32 %v3898_v59, %v795_v15  ;;  %v3474_v47 = vpop.f32.mrf.mxu0  ;;  %v4159_v56 = vld [vmem:[#allocation2 + $0xd0] sm:$0xff]  ;;  %v975_v42 = vrot.slane %v905_v14, 1  ;;  %v4162_v37 = vmul.f32 %v3876_v44, %v795_v15 }
  0xfd   : > { %6133 = vst [vmem:[#allocation38_spill] sm:$0xff] %v4148_v26  ;;  %6136 = vst [vmem:[#allocation41_spill] sm:$0xff] %v4159_v56  ;;  %v676_v40 = vmax.f32 %v574_v25, 0.0  ;;  %v589_v50 = vadd.f32 %v3474_v47, %v3870_v39  ;;  %v862_v13 = vmul.f32 %v3896_v58, %v4159_v56  ;;  %v907_v26 = vmul.f32 %v3898_v59, %v4159_v56 }
  0xfe   : > { %6134 = vst [vmem:[#allocation39_spill] sm:$0xff] %v4154_v2  ;;  %6135 = vst [vmem:[#allocation40_spill] sm:$0xff] %v4157_v34  ;;  %v583_v14 = vpop.f32.mrf.mxu0  ;;  %v4178_v15 = vmul.f32 %v3876_v44, %v4159_v56  ;;  %v6033_v32 = vrot.slane %v4157_v34, 1  ;;  %v4181_v61 = vadd.f32 %v975_v42, %v859_v4 }
  0xff   : > { %6137 = vst [vmem:[#allocation42_spill] sm:$0xff] %v4162_v37  ;;  %6138 = vst [vmem:[#allocation43_spill] sm:$0xff] %v4166_v12  ;;  %v4174_v55 = vld [vmem:[#allocation2 + $0xc8] sm:$0xff]  ;;  %v679_v47 = vmax.f32 %v589_v50, 0.0  ;;  %v584_v25 = vadd.f32 %v3870_v39, %v583_v14  ;;  %v978_v4 = vrot.slane %v907_v26, 1 }
 0x100   : > { %726 = vst.msk [vmem:[#allocation2 + $0x110] sm:$0xff] %vm695_vm2, %v677_v31  ;;  %6139 = vst [vmem:[#allocation44_spill] sm:$0xff] %v4174_v55  ;;  %v4188_v63 = vmul.f32 %v3896_v58, %v4174_v55  ;;  %v4192_v38 = vmul.f32 %v3898_v59, %v4174_v55  ;;  %v3477_v12 = vpop.f32.mrf.mxu0  ;;  %v4198_v31 = vmul.f32 %v3876_v44, %v4174_v55 }
 0x101   : > { %6140 = vst [vmem:[#allocation45_spill] sm:$0xff] %v4181_v61  ;;  %725 = vst.msk [vmem:[#allocation2 + $0x108] sm:$0xff] %vm695_vm2, %v676_v40  ;;  %v4204_v50 = vsel %vm958_vm4, %v6033_v32, %v975_v42  ;;  %v678_v14 = vmax.f32 %v584_v25, 0.0  ;;  %v599_v61 = vadd.f32 %v3477_v12, %v3870_v39  ;;  %v4217_v32 = vadd.f32 %v978_v4, %v862_v13 }
 0x102   : > { %6141 = vst [vmem:[#allocation46_spill] sm:$0xff] %v4192_v38  ;;  %v4194_v56 = vld [vmem:[#allocation2 + $0xf0] sm:$0xff]  ;;  %6143 = vst [vmem:[#allocation48_spill] sm:$0xff] %v4204_v50  ;;  %v593_v55 = vpop.f32.mrf.mxu0  ;;  %v4212_v37 = vld [vmem:[#allocation2 + $0xe8] sm:$0xff] }
 0x103   : > { %6142 = vst [vmem:[#allocation47_spill] sm:$0xff] %v4194_v56  ;;  %730 = vst.msk [vmem:[#allocation2 + $0x130] sm:$0xff] %vm695_vm2, %v679_v47  ;;  %v865_v0 = vmul.f32 %v3896_v58, %v4194_v56  ;;  %v909_v26 = vmul.f32 %v3898_v59, %v4194_v56  ;;  %v1129_v40 = vmul.f32 %v3876_v44, %v4194_v56  ;;  %v681_v12 = vmax.f32 %v599_v61, 0.0 }
 0x104   : > { %6144 = vst [vmem:[#allocation49_spill] sm:$0xff] %v4212_v37  ;;  %729 = vst.msk [vmem:[#allocation2 + $0x128] sm:$0xff] %vm695_vm2, %v678_v14  ;;  %v594_v25 = vadd.f32 %v3870_v39, %v593_v55  ;;  %v864_v34 = vmul.f32 %v3896_v58, %v4212_v37  ;;  %v4226_v60 = vmul.f32 %v3898_v59, %v4212_v37  ;;  %v3480_v50 = vpop.f32.mrf.mxu0  ;;  %v6146_v61 = vrot.slane %v4192_v38, 1 }
 0x105   : > { %v981_v2 = vrot.slane %v909_v26, 1  ;;  %v4230_v13 = vmul.f32 %v3876_v44, %v4212_v37  ;;  %v1240_v42 = vrot.slane %v1129_v40, 2  ;;  %734 = vst.msk [vmem:[#allocation2 + $0x150] sm:$0xff] %vm695_vm2, %v681_v12  ;;  %v609_v43 = vadd.f32 %v3480_v50, %v3870_v39 }
 0x106   : > { %v4237_v55 = vsel %vm958_vm4, %v6146_v61, %v978_v4  ;;  %v680_v14 = vmax.f32 %v594_v25, 0.0  ;;  %v6041_v11 = vrot.slane %v4226_v60, 1  ;;  %v603_v48 = vpop.f32.mrf.mxu0 }
 0x107   : > { %v4232_v47 = vld [vmem:[#allocation2 + $0x110] sm:$0xff]  ;;  %v1078_v22 = vadd.f32 %v981_v2, %v865_v0  ;;  %v1243_v38 = vsel %vm1203_vm3, %v1240_v42, %v6147_v10  ;;  %v683_v50 = vmax.f32 %v609_v43, 0.0  ;;  %v604_v25 = vadd.f32 %v3870_v39, %v603_v48 }
 0x108   : > { %6145 = vst [vmem:[#allocation50_spill] sm:$0xff] %v4232_v47  ;;  %v1474_v26 = vmul.f32 %v4232_v47, %v3905_v1  ;;  %v4248_v4 = vld [vmem:[#allocation2 + $0x108] sm:$0xff]  ;;  %v1566_v12 = vmul.f32 %v4232_v47, %v3912_v5  ;;  %733 = vst.msk [vmem:[#allocation2 + $0x148] sm:$0xff] %vm695_vm2, %v680_v14  ;;  %v982_v0 = vsel %vm958_vm4, %v6041_v11, %v981_v2  ;;  %v3483_v53 = vpop.f32.mrf.mxu0  ;;  %v6149_v10 = vrot.slane %v4230_v13, 2 }
 0x109   : > { %6148 = vst [vmem:[#allocation51_spill] sm:$0xff] %v4248_v4  ;;  %v1473_v61 = vmul.f32 %v4248_v4, %v3905_v1  ;;  %v1077_v40 = vadd.f32 %v982_v0, %v864_v34  ;;  %v1355_v21 = vadd.f32 %v1243_v38, %v1078_v22  ;;  %v4264_v14 = vmul.f32 %v4248_v4, %v3912_v5 }
 0x10a   : > { %v1241_v45 = vsel %vm1203_vm3, %v6149_v10, %v1240_v42  ;;  %738 = vst.msk [vmem:[#allocation2 + $0x170] sm:$0xff] %vm695_vm2, %v683_v50  ;;  %v682_v43 = vmax.f32 %v604_v25, 0.0  ;;  %v619_v48 = vadd.f32 %v3483_v53, %v3870_v39  ;;  %v1637_v2 = vrot.slane %v1566_v12, 1  ;;  %v613_v34 = vpop.f32.mrf.mxu0  ;;  %v3303_v10 = vld [vmem:[#allocation2 + $0x130] sm:$0xff] }
 0x10b   : > { %v4270_v11 = vmul.f32 %v4248_v4, %v3878_v46  ;;  %v1354_v0 = vadd.f32 %v1241_v45, %v1077_v40  ;;  %v1522_v19 = vadd.f32 %v1474_v26, %v1355_v21  ;;  %v6048_v42 = vrot.slane %v4264_v14, 1  ;;  %v3302_v38 = vld [vmem:[#allocation2 + $0x128] sm:$0xff] }
 0x10c   : > { %v1785_v22 = vmul.f32 %v4232_v47, %v3878_v46  ;;  %737 = vst.msk [vmem:[#allocation2 + $0x168] sm:$0xff] %vm695_vm2, %v682_v43  ;;  %v685_v50 = vmax.f32 %v619_v48, 0.0  ;;  %v614_v25 = vadd.f32 %v3870_v39, %v613_v34  ;;  %v2128_v53 = vmul.f32 %v3302_v38, %v3914_v7  ;;  %v3486_v16 = vpop.f32.mrf.mxu0 }
 0x10d   : > { %v1521_v4 = vadd.f32 %v1473_v61, %v1354_v0  ;;  %v1638_v45 = vsel %vm958_vm4, %v6048_v42, %v1637_v2  ;;  %v1734_v21 = vadd.f32 %v1637_v2, %v1522_v19  ;;  %v629_v43 = vadd.f32 %v3486_v16, %v3870_v39 }
 0x10e   : > { %v1895_v26 = vrot.slane %v1785_v22, 2  ;;  %742 = vst.msk [vmem:[#allocation2 + $0x190] sm:$0xff] %vm695_vm2, %v685_v50  ;;  %v684_v40 = vmax.f32 %v614_v25, 0.0  ;;  %v2129_v48 = vmul.f32 %v3303_v10, %v3914_v7  ;;  %v4286_v34 = vmul.f32 %v3302_v38, %v3916_v8  ;;  %v623_v12 = vpop.f32.mrf.mxu0 }
 0x10f   : > { %v1733_v47 = vadd.f32 %v1638_v45, %v1521_v4  ;;  %v6150_v61 = vrot.slane %v4270_v11, 2  ;;  %v6151_v42 = vrot.slane %v3887_v54, 2  ;;  %v2221_v2 = vmul.f32 %v3303_v10, %v3916_v8 }
 0x110   : > { %741 = vst.msk [vmem:[#allocation2 + $0x188] sm:$0xff] %vm695_vm2, %v684_v40  ;;  %v687_v16 = vmax.f32 %v629_v43, 0.0  ;;  %v624_v22 = vadd.f32 %v3870_v39, %v623_v12  ;;  %v2291_v25 = vrot.slane %v4286_v34, 1  ;;  %v3489_v29 = vpop.f32.mrf.mxu0  ;;  %v4299_v6 = vmul.f32 %v3894_v57, %v3302_v38 }
 0x111   : > { %v1896_v0 = vsel %vm1203_vm3, %v6150_v61, %v1895_v26  ;;  %v1898_v19 = vsel %vm1203_vm3, %v1895_v26, %v6151_v42  ;;  %v2292_v45 = vrot.slane %v2221_v2, 1  ;;  %v2440_v54 = vmul.f32 %v3894_v57, %v3303_v10 }
 0x112   : > { %v2010_v50 = vadd.f32 %v1898_v19, %v1734_v21  ;;  %v2009_v4 = vadd.f32 %v1896_v0, %v1733_v47  ;;  %746 = vst.msk [vmem:[#allocation2 + $0x1b0] sm:$0xff] %vm695_vm2, %v687_v16  ;;  %v686_v42 = vmax.f32 %v624_v22, 0.0  ;;  %v639_v26 = vadd.f32 %v3489_v29, %v3870_v39  ;;  %v633_v43 = vpop.f32.mrf.mxu0 }
 0x113   : > { %v6152_v12 = vrot.slane %v4226_v60, 1  ;;  %v2293_v47 = vsel %vm958_vm4, %v2291_v25, %v2292_v45  ;;  %v2549_v38 = vrot.slane %v4299_v6, 2  ;;  %v2550_v0 = vrot.slane %v2440_v54, 2 }
 0x114   : > { %v2177_v40 = vadd.f32 %v2129_v48, %v2010_v50  ;;  %v2176_v61 = vadd.f32 %v2128_v53, %v2009_v4  ;;  %745 = vst.msk [vmem:[#allocation2 + $0x1a8] sm:$0xff] %vm695_vm2, %v686_v42  ;;  %v689_v10 = vmax.f32 %v639_v26, 0.0  ;;  %v634_v19 = vadd.f32 %v3870_v39, %v633_v43  ;;  %v3492_v60 = vpop.f32.mrf.mxu0  ;;  %v4329_v26 = vld [vmem:[%s6009_s4] ss:$0 sm:$0xff] }
 0x115   : > { %v1076_v21 = vadd.f32 %v6152_v12, %v3939_v20  ;;  %v6153_v48 = vrot.slane %v4230_v13, 2  ;;  %v2551_v53 = vsel %vm1203_vm3, %v2549_v38, %v2550_v0  ;;  %v6154_v16 = vrot.slane %v3910_v3, 2 }
 0x116   : > { %v2389_v29 = vadd.f32 %v2292_v45, %v2177_v40  ;;  %v2388_v20 = vadd.f32 %v2293_v47, %v2176_v61  ;;  %v1074_v50 = vadd.f32 %v4237_v55, %v4188_v63  ;;  %750 = vst.msk [vmem:[#allocation2 + $0x1d0] sm:$0xff] %vm695_vm2, %v689_v10  ;;  %v688_v4 = vmax.f32 %v634_v19, 0.0  ;;  %v643_v42 = vpop.f32.mrf.mxu0 }
 0x117   : > { %v1353_v2 = vadd.f32 %v6153_v48, %v1076_v21  ;;  %v2553_v22 = vsel %vm1203_vm3, %v2550_v0, %v6154_v16  ;;  %v649_v45 = vadd.f32 %v3492_v60, %v3870_v39  ;;  %v6155_v40 = vrot.slane %v4178_v15, 2 }
 0x118   : > { %v2665_v13 = vadd.f32 %v2553_v22, %v2389_v29  ;;  %v2664_v3 = vadd.f32 %v2551_v53, %v2388_v20  ;;  %v6156_v63 = vrot.slane %v4198_v31, 2  ;;  %v6157_v12 = vrot.slane %v3920_v9, 2  ;;  %749 = vst.msk [vmem:[#allocation2 + $0x1c8] sm:$0xff] %vm695_vm2, %v688_v4  ;;  %v3495_v29 = vpop.f32.mrf.mxu0 }
 0x119   : > { %v1520_v54 = vadd.f32 %v3964_v35, %v1353_v2  ;;  %v6158_v21 = vmov %v6155_v40  ;;  %v1470_v35 = vmul.f32 %v3905_v1, %v4212_v37  ;;  %v691_v61 = vmax.f32 %v649_v45, 0.0 }
 0x11a   : > { %v1236_v55 = vsel %vm1203_vm3, %v6156_v63, %v6155_v40  ;;  %v1238_v43 = vsel %vm1203_vm3, %v6158_v21, %v6157_v12  ;;  %v644_v47 = vadd.f32 %v3870_v39, %v643_v42  ;;  %v2720_v0 = vadd.f32 %v4329_v26, %v2665_v13 }
 0x11b   : > { %v6159_v10 = vrot.slane %v4264_v14, 1  ;;  %v2719_v9 = vadd.f32 %v4329_v26, %v2664_v3  ;;  %v1351_v48 = vadd.f32 %v1236_v55, %v1074_v50  ;;  %v1352_v15 = vadd.f32 %v1238_v43, %v4217_v32  ;;  %754 = vst.msk [vmem:[#allocation2 + $0x1f0] sm:$0xff] %vm695_vm2, %v691_v61  ;;  %v653_v14 = vpop.f32.mrf.mxu0 }
 0x11c   : > { %v1471_v2 = vmul.f32 %v3905_v1, %v4194_v56  ;;  %v690_v60 = vmax.f32 %v644_v47, 0.0  ;;  %v659_v20 = vadd.f32 %v3495_v29, %v3870_v39  ;;  %v2768_v53 = vmax.f32 %v2720_v0, 0.0 }
 0x11d   : > { %v1732_v19 = vadd.f32 %v6159_v10, %v1520_v54  ;;  %v6160_v16 = vrot.slane %v4270_v11, 2  ;;  %v2767_v4 = vmax.f32 %v2719_v9, 0.0  ;;  %v4356_v45 = vadd.f32 %v1470_v35, %v1351_v48  ;;  %v4367_v11 = vld [vmem:[#allocation2 + $0x1d0] sm:$0xff] }
 0x11e   : > { %v1519_v13 = vadd.f32 %v1471_v2, %v1352_v15  ;;  %v4360_v32 = vmul.f32 %v3912_v5, %v4212_v37  ;;  %753 = vst.msk [vmem:[#allocation2 + $0x1e8] sm:$0xff] %vm695_vm2, %v690_v60  ;;  %v693_v50 = vmax.f32 %v659_v20, 0.0  ;;  %v654_v54 = vadd.f32 %v3870_v39, %v653_v14  ;;  %6162 = vst [vmem:[#allocation53_spill] sm:$0xff] %v4367_v11 }
 0x11f   : > { %v2008_v22 = vadd.f32 %v6160_v16, %v1732_v19  ;;  %v2880_v42 = vrot.slane %v2768_v53, 7  ;;  %v4365_v40 = vrot.slane %v2767_v4, 7  ;;  %v1564_v63 = vmul.f32 %v3912_v5, %v4194_v56  ;;  %v4387_v61 = vld [vmem:[#allocation2 + $0x1c8] sm:$0xff] }
 0x120   : > { %6161 = vst [vmem:[#allocation52_spill] sm:$0xff] %v4360_v32  ;;  %v6050_v55 = vrot.slane %v4360_v32, 1  ;;  %v4374_v12 = vmul.f32 %v3878_v46, %v4212_v37  ;;  %758 = vst.msk [vmem:[#allocation2 + $0x210] sm:$0xff] %vm695_vm2, %v693_v50  ;;  %v692_v21 = vmax.f32 %v654_v54, 0.0  ;;  %v923_v43 = vmul.f32 %v3898_v59, %v4367_v11 }
 0x121   : > { %v2175_v3 = vadd.f32 %v3967_v36, %v2008_v22  ;;  %v886_v36 = vmul.f32 %v3896_v58, %v4367_v11  ;;  %v4385_v35 = vsel %vm2841_vm5, %v4365_v40, %v2880_v42  ;;  %6163 = vst [vmem:[#allocation54_spill] sm:$0xff] %v4387_v61  ;;  %v1150_v47 = vmul.f32 %v3876_v44, %v4367_v11 }
 0x122   : > { %v1634_v0 = vrot.slane %v1564_v63, 1  ;;  %v4393_v34 = vmul.f32 %v3878_v46, %v4194_v56  ;;  %757 = vst.msk [vmem:[#allocation2 + $0x208] sm:$0xff] %vm695_vm2, %v692_v21  ;;  %v885_v10 = vmul.f32 %v3896_v58, %v4387_v61  ;;  %v4402_v19 = vmul.f32 %v3898_v59, %v4387_v61  ;;  %v4404_v9 = vld [vmem:[#allocation2 + $0x1f0] sm:$0xff] }
 0x123   : > { %v2387_v39 = vadd.f32 %v2291_v25, %v2175_v3  ;;  %v1002_v29 = vrot.slane %v923_v43, 1  ;;  %v4408_v48 = vmul.f32 %v3876_v44, %v4387_v61  ;;  %v1275_v15 = vrot.slane %v1150_v47, 2 }
 0x124   : > { %v4413_v6 = vsel %vm958_vm4, %v6050_v55, %v1634_v0  ;;  %v889_v2 = vmul.f32 %v3896_v58, %v4404_v9  ;;  %v925_v60 = vmul.f32 %v3898_v59, %v4404_v9  ;;  %v1153_v20 = vmul.f32 %v3876_v44, %v4404_v9 }
 0x125   : > { %v2663_v25 = vadd.f32 %v2549_v38, %v2387_v39  ;;  %v4415_v38 = vadd.f32 %v1634_v0, %v1519_v13  ;;  %v4424_v16 = vld [vmem:[#allocation2 + $0x1e8] sm:$0xff]  ;;  %v6051_v22 = vrot.slane %v4402_v19, 1  ;;  %v1099_v14 = vadd.f32 %v1002_v29, %v886_v36 }
 0x126   : > { %v6052_v4 = vrot.slane %v4408_v48, 2  ;;  %v6164_v13 = vrot.slane %v3955_v30, 2  ;;  %v888_v54 = vmul.f32 %v3896_v58, %v4424_v16  ;;  %v924_v42 = vmul.f32 %v3898_v59, %v4424_v16 }
 0x127   : > { %v2718_v53 = vadd.f32 %v4329_v26, %v2663_v25  ;;  %v1005_v3 = vrot.slane %v925_v60, 1  ;;  %v1152_v63 = vmul.f32 %v3876_v44, %v4424_v16  ;;  %v1280_v21 = vrot.slane %v1153_v20, 2  ;;  %v4437_v39 = vld [vmem:[#allocation2 + $0x210] sm:$0xff] }
 0x128   : > { %v1278_v50 = vsel %vm1203_vm3, %v1275_v15, %v6164_v13  ;;  %v1003_v30 = vsel %vm958_vm4, %v6051_v22, %v1002_v29  ;;  %v1276_v43 = vsel %vm1203_vm3, %v6052_v4, %v1275_v15  ;;  %v1004_v47 = vrot.slane %v924_v42, 1 }
 0x129   : > { %v2766_v36 = vmax.f32 %v2718_v53, 0.0  ;;  %v1102_v0 = vadd.f32 %v1005_v3, %v889_v2  ;;  %v1279_v25 = vrot.slane %v1152_v63, 2  ;;  %v1498_v60 = vmul.f32 %v4437_v39, %v3905_v1  ;;  %v4450_v55 = vld [vmem:[#allocation2 + $0x208] sm:$0xff] }
 0x12a   : > { %v6165_v13 = vrot.slane %v3930_v17, 2  ;;  %v1582_v53 = vmul.f32 %v4437_v39, %v3912_v5  ;;  %v1809_v29 = vmul.f32 %v4437_v39, %v3878_v46  ;;  %v1006_v15 = vsel %vm958_vm4, %v1004_v47, %v1005_v3 }
 0x12b   : > { %v2877_v22 = vrot.slane %v2766_v36, 7  ;;  %v1281_v2 = vsel %vm1203_vm3, %v1279_v25, %v1280_v21  ;;  %v1497_v63 = vmul.f32 %v4450_v55, %v3905_v1  ;;  %v1101_v17 = vadd.f32 %v1006_v15, %v888_v54 }
 0x12c   : > { %v1283_v20 = vsel %vm1203_vm3, %v1280_v21, %v6165_v13  ;;  %v1581_v13 = vmul.f32 %v4450_v55, %v3912_v5  ;;  %v1661_v4 = vrot.slane %v1582_v53, 1  ;;  %v1808_v56 = vmul.f32 %v4450_v55, %v3878_v46 }
 0x12d   : > { %v1379_v42 = vadd.f32 %v1283_v20, %v1102_v0  ;;  %v1935_v11 = vrot.slane %v1809_v29, 2  ;;  %v1100_v36 = vadd.f32 %v1004_v47, %v3985_v62  ;;  %v4467_v3 = vsel %vm2841_vm5, %v2877_v22, %v4365_v40 }
 0x12e   : > { %v1378_v21 = vadd.f32 %v1281_v2, %v1101_v17  ;;  %v1660_v0 = vrot.slane %v1581_v13, 1  ;;  %v1934_v20 = vrot.slane %v1808_v56, 2  ;;  %v1098_v61 = vadd.f32 %v1003_v30, %v885_v10 }
 0x12f   : > { %v1546_v37 = vadd.f32 %v1498_v60, %v1379_v42  ;;  %v6166_v15 = vrot.slane %v3933_v18, 2  ;;  %v1377_v32 = vadd.f32 %v1279_v25, %v1100_v36  ;;  %v1376_v44 = vadd.f32 %v1278_v50, %v1099_v14 }
 0x130   : > { %v1545_v59 = vadd.f32 %v1497_v63, %v1378_v21  ;;  %v1662_v60 = vsel %vm958_vm4, %v1660_v0, %v1661_v4  ;;  %v1936_v62 = vsel %vm1203_vm3, %v1934_v20, %v1935_v11  ;;  %v1375_v47 = vadd.f32 %v1276_v43, %v1098_v61 }
 0x131   : > { %v1758_v54 = vadd.f32 %v1661_v4, %v1546_v37  ;;  %v1938_v53 = vsel %vm1203_vm3, %v1935_v11, %v6166_v15  ;;  %v1544_v40 = vadd.f32 %v4006_v27, %v1377_v32  ;;  %v1494_v56 = vmul.f32 %v3905_v1, %v4424_v16 }
 0x132   : > { %v1495_v37 = vmul.f32 %v3905_v1, %v4404_v9  ;;  %v1757_v18 = vadd.f32 %v1662_v60, %v1545_v59  ;;  %v4481_v10 = vmul.f32 %v3912_v5, %v4424_v16  ;;  %v1580_v22 = vmul.f32 %v3912_v5, %v4404_v9 }
 0x133   : > { %v2034_v29 = vadd.f32 %v1938_v53, %v1758_v54  ;;  %v4487_v11 = vmul.f32 %v3878_v46, %v4424_v16  ;;  %v1756_v32 = vadd.f32 %v1660_v0, %v1544_v40  ;;  %v1542_v61 = vadd.f32 %v1494_v56, %v1375_v47 }
 0x134   : > { %v1543_v14 = vadd.f32 %v1495_v37, %v1376_v44  ;;  %v2033_v4 = vadd.f32 %v1936_v62, %v1757_v18  ;;  %v1657_v50 = vrot.slane %v4481_v10, 1  ;;  %v1658_v59 = vrot.slane %v1580_v22, 1  ;;  %v6171_v18 = vld [vmem:[#allocation8_spill] sm:$0xff] }
 0x135   : > { %v2201_v27 = vadd.f32 %v4002_v24, %v2034_v29  ;;  %v1806_v30 = vmul.f32 %v3878_v46, %v4404_v9  ;;  %v6167_v43 = vrot.slane %v3973_v41, 1  ;;  %v2032_v2 = vadd.f32 %v1934_v20, %v1756_v32 }
 0x136   : > { %v1929_v42 = vrot.slane %v4487_v11, 2  ;;  %v2149_v63 = vmul.f32 %v4450_v55, %v3914_v7  ;;  %v2200_v24 = vadd.f32 %v3998_v23, %v2033_v4  ;;  %v1659_v44 = vsel %vm958_vm4, %v1657_v50, %v1658_v59 }
 0x137   : > { %v2413_v25 = vadd.f32 %v6167_v43, %v2201_v27  ;;  %v1755_v17 = vadd.f32 %v1658_v59, %v1543_v14  ;;  %v1930_v13 = vrot.slane %v1806_v30, 2  ;;  %v2199_v21 = vadd.f32 %v4027_v49, %v2032_v2 }
 0x138   : > { %v1754_v41 = vadd.f32 %v1659_v44, %v1542_v61  ;;  %v2150_v0 = vmul.f32 %v4437_v39, %v3914_v7  ;;  %v2412_v20 = vadd.f32 %v4019_v52, %v2200_v24  ;;  %v6168_v54 = vrot.slane %v3979_v51, 2  ;;  %v6170_v52 = vld [vmem:[#allocation11_spill] sm:$0xff] }
 0x139   : > { %v2689_v36 = vadd.f32 %v4011_v33, %v2413_v25  ;;  %v1931_v23 = vsel %vm1203_vm3, %v1929_v42, %v1930_v13  ;;  %v4515_v53 = vmul.f32 %v4450_v55, %v3916_v8  ;;  %v6169_v49 = vrot.slane %v3948_v28, 1 }
 0x13a   : > { %v1933_v15 = vsel %vm1203_vm3, %v1930_v13, %v6168_v54  ;;  %v2030_v62 = vadd.f32 %v1931_v23, %v1754_v41  ;;  %v2688_v29 = vadd.f32 %v6170_v52, %v2412_v20  ;;  %v2235_v40 = vmul.f32 %v4437_v39, %v3916_v8  ;;  %v6176_v23 = vld [vmem:[#allocation50_spill] sm:$0xff] }
 0x13b   : > { %v2744_v33 = vadd.f32 %v4329_v26, %v2689_v36  ;;  %v2411_v60 = vadd.f32 %v6169_v49, %v2199_v21  ;;  %v2031_v47 = vadd.f32 %v1933_v15, %v1755_v17  ;;  %v2312_v51 = vrot.slane %v4515_v53, 1  ;;  %v6173_v36 = vld [vmem:[#allocation51_spill] sm:$0xff] }
 0x13c   : > { %v4526_v56 = vmul.f32 %v3894_v57, %v4450_v55  ;;  %v6172_v22 = vrot.slane %v6171_v18, 2  ;;  %v2197_v32 = vadd.f32 %v2149_v63, %v2030_v62  ;;  %v2743_v61 = vadd.f32 %v4329_v26, %v2688_v29  ;;  %v6177_v62 = vld [vmem:[#allocation10_spill] sm:$0xff] }
 0x13d   : > { %v2792_v37 = vmax.f32 %v2744_v33, 0.0  ;;  %v2198_v28 = vadd.f32 %v2150_v0, %v2031_v47  ;;  %v2313_v14 = vrot.slane %v2235_v40, 1  ;;  %v2461_v4 = vmul.f32 %v3894_v57, %v4437_v39 }
 0x13e   : > { %v2687_v27 = vadd.f32 %v6172_v22, %v2411_v60  ;;  %v2584_v59 = vrot.slane %v4526_v56, 2  ;;  %v1730_v55 = vadd.f32 %v4413_v6, %v4356_v45  ;;  %v1889_v25 = vrot.slane %v4374_v12, 2  ;;  %v6174_v6 = vld [vmem:[#allocation9_spill] sm:$0xff] }
 0x13f   : > { %v2920_v30 = vrot.slane %v2792_v37, 7  ;;  %v2791_v2 = vmax.f32 %v2743_v61, 0.0  ;;  %v2314_v63 = vsel %vm958_vm4, %v2312_v51, %v2313_v14  ;;  %v2410_v24 = vadd.f32 %v2313_v14, %v2198_v28 }
 0x140   : > { %v2742_v43 = vadd.f32 %v4329_v26, %v2687_v27  ;;  %v2585_v44 = vrot.slane %v2461_v4, 2  ;;  %v2409_v13 = vadd.f32 %v2314_v63, %v2197_v32  ;;  %v1890_v39 = vrot.slane %v4393_v34, 2  ;;  %v4577_v4 = vld [vmem:[#allocation2 + $0x1a8] sm:$0xff]  ;;  %v6179_v63 = vld [vmem:[#allocation24_spill] sm:$0xff] }
 0x141   : > { %v2125_v21 = vmul.f32 %v6173_v36, %v3914_v7  ;;  %v2918_v41 = vrot.slane %v2791_v2, 7  ;;  %v6175_v0 = vrot.slane %v6174_v6, 2  ;;  %v2126_v54 = vmul.f32 %v6176_v23, %v3914_v7  ;;  %v4591_v6 = vld [vmem:[#allocation2 + $0x1b0] sm:$0xff] }
 0x142   : > { %v2790_v17 = vmax.f32 %v2742_v43, 0.0  ;;  %v2586_v45 = vsel %vm1203_vm3, %v2584_v59, %v2585_v44  ;;  %v1891_v34 = vsel %vm1203_vm3, %v1889_v25, %v1890_v39  ;;  %v6178_v47 = vrot.slane %v6177_v62, 2 }
 0x143   : > { %v2588_v20 = vsel %vm1203_vm3, %v2585_v44, %v6175_v0  ;;  %v2685_v33 = vadd.f32 %v2586_v45, %v2409_v13  ;;  %v2921_v60 = vsel %vm2841_vm5, %v2918_v41, %v2920_v30  ;;  %v2006_v29 = vadd.f32 %v1891_v34, %v1730_v55  ;;  %v6182_v13 = vld [vmem:[#allocation46_spill] sm:$0xff] }
 0x144   : > { %v2917_v15 = vrot.slane %v2790_v17, 7  ;;  %v2686_v49 = vadd.f32 %v2588_v20, %v2410_v24  ;;  %v1893_v52 = vsel %vm1203_vm3, %v1890_v39, %v6178_v47  ;;  %v4561_v40 = vmul.f32 %v6173_v36, %v3916_v8  ;;  %3412 = vmatprep.subr.msk.mxu1 %vm695_vm2, %v2921_v60  ;;  %v6181_v17 = vld [vmem:[#allocation13_spill] sm:$0xff]  ;;  %v6186_v60 = vld [vmem:[#allocation12_spill] sm:$0xff] }
 0x145   : > { %v2740_v18 = vadd.f32 %v4329_v26, %v2685_v33  ;;  %v2007_v27 = vadd.f32 %v1893_v52, %v4415_v38  ;;  %3413 = vmatpush3.xpose.msk.msra.mxu1 %vm695_vm2, %v4385_v35  ;;  %v2173_v32 = vadd.f32 %v2125_v21, %v2006_v29  ;;  %v2219_v28 = vmul.f32 %v6176_v23, %v3916_v8  ;;  %v6188_v52 = vld [vmem:[#allocation22_spill] sm:$0xff] }
 0x146   : > { %v2919_v37 = vsel %vm2841_vm5, %v2917_v15, %v2918_v41  ;;  %v2741_v22 = vadd.f32 %v4329_v26, %v2686_v49  ;;  %v2288_v61 = vrot.slane %v4561_v40, 1  ;;  %v4575_v14 = vmul.f32 %v3894_v57, %v6173_v36 }
 0x147   : > { %3414 = vmatprep.subr.msk.mxu1 %vm695_vm2, %v2919_v37  ;;  %v2788_v30 = vmax.f32 %v2740_v18, 0.0  ;;  %v2174_v38 = vadd.f32 %v2126_v54, %v2007_v27  ;;  %v2437_v35 = vmul.f32 %v3894_v57, %v6176_v23  ;;  %v2289_v55 = vrot.slane %v2219_v28, 1  ;;  %v6190_v18 = vld [vmem:[#allocation7_spill] sm:$0xff] }
 0x148   : > { %v2789_v43 = vmax.f32 %v2741_v22, 0.0  ;;  %v2544_v2 = vrot.slane %v4575_v14, 2  ;;  %v6180_v24 = vrot.slane %v4402_v19, 1  ;;  %v6183_v39 = vrot.slane %v6182_v13, 1 }
 0x149   : > { %v4589_v21 = vrot.slane %v2788_v30, 7  ;;  %v2545_v45 = vrot.slane %v2437_v35, 2  ;;  %v882_v57 = vmul.f32 %v3896_v58, %v4577_v4  ;;  %3415 = vmatpush3.xpose.msk.msra.mxu1 %vm695_vm2, %v4467_v3  ;;  %v2290_v0 = vsel %vm958_vm4, %v2288_v61, %v2289_v55 }
 0x14a   : > { %v1097_v44 = vadd.f32 %v6180_v24, %v6179_v63  ;;  %v1073_v36 = vadd.f32 %v6183_v39, %v6181_v17  ;;  %v2915_v41 = vrot.slane %v2789_v43, 7  ;;  %v2386_v19 = vadd.f32 %v2289_v55, %v2174_v38  ;;  %v6192_v43 = vld [vmem:[#allocation52_spill] sm:$0xff] }
 0x14b   : > { %v6184_v20 = vrot.slane %v4408_v48, 2  ;;  %v6185_v54 = vrot.slane %v4198_v31, 2  ;;  %v2385_v49 = vadd.f32 %v2290_v0, %v2173_v32  ;;  %v2546_v34 = vsel %vm1203_vm3, %v2544_v2, %v2545_v45  ;;  %v6189_v48 = vld [vmem:[#allocation19_spill] sm:$0xff]  ;;  %v6191_v32 = vld [vmem:[#allocation6_spill] sm:$0xff] }
 0x14c   : > { %v2916_v33 = vsel %vm2841_vm5, %v4589_v21, %v2915_v41  ;;  %v6187_v62 = vrot.slane %v6186_v60, 2  ;;  %v883_v31 = vmul.f32 %v3896_v58, %v4591_v6  ;;  %v4615_v22 = vmul.f32 %v6190_v18, %v4577_v4  ;;  %v6194_v0 = vld [vmem:[#allocation54_spill] sm:$0xff]  ;;  %v6199_v60 = vld [vmem:[#allocation53_spill] sm:$0xff] }
 0x14d   : > { %v1374_v23 = vadd.f32 %v6184_v20, %v1097_v44  ;;  %v1350_v15 = vadd.f32 %v6185_v54, %v1073_v36  ;;  %3416 = vmatprep.subr.msk.mxu1 %vm695_vm2, %v2916_v33  ;;  %v2661_v37 = vadd.f32 %v2546_v34, %v2385_v49  ;;  %v921_v27 = vmul.f32 %v6190_v18, %v4591_v6 }
 0x14e   : > { %v2548_v47 = vsel %vm1203_vm3, %v2545_v45, %v6187_v62  ;;  %v4621_v28 = vmul.f32 %v6191_v32, %v4577_v4  ;;  %v6193_v38 = vrot.slane %v6192_v43, 1  ;;  %v1147_v55 = vmul.f32 %v6191_v32, %v4591_v6 }
 0x14f   : > { %v2662_v3 = vadd.f32 %v2548_v47, %v2386_v19  ;;  %v1541_v29 = vadd.f32 %v6188_v52, %v1374_v23  ;;  %v1517_v40 = vadd.f32 %v6189_v48, %v1350_v15  ;;  %v2716_v63 = vadd.f32 %v4329_v26, %v2661_v37  ;;  %v6195_v23 = vld [vmem:[#allocation23_spill] sm:$0xff]  ;;  %v6196_v15 = vld [vmem:[#allocation20_spill] sm:$0xff] }
 0x150   : > { %v998_v24 = vrot.slane %v4615_v22, 1  ;;  %v999_v44 = vrot.slane %v921_v27, 1  ;;  %v1269_v17 = vrot.slane %v4621_v28, 2  ;;  %v1491_v19 = vmul.f32 %v3905_v1, %v6194_v0 }
 0x151   : > { %v2717_v14 = vadd.f32 %v4329_v26, %v2662_v3  ;;  %v1753_v30 = vadd.f32 %v1657_v50, %v1541_v29  ;;  %v1729_v35 = vadd.f32 %v6193_v38, %v1517_v40  ;;  %v1270_v50 = vrot.slane %v1147_v55, 2 }
 0x152   : > { %v2764_v36 = vmax.f32 %v2716_v63, 0.0  ;;  %v1000_v41 = vsel %vm958_vm4, %v998_v24, %v999_v44  ;;  %v1096_v45 = vadd.f32 %v999_v44, %v883_v31  ;;  %v1492_v62 = vmul.f32 %v3905_v1, %v6199_v60 }
 0x153   : > { %v2765_v13 = vmax.f32 %v2717_v14, 0.0  ;;  %v2029_v39 = vadd.f32 %v1929_v42, %v1753_v30  ;;  %v2005_v10 = vadd.f32 %v1889_v25, %v1729_v35  ;;  %v1095_v11 = vadd.f32 %v1000_v41, %v882_v57  ;;  %v6197_v25 = vld [vmem:[#allocation14_spill] sm:$0xff]  ;;  %v6200_v41 = vld [vmem:[#allocation15_spill] sm:$0xff] }
 0x154   : > { %v2873_v42 = vrot.slane %v2764_v36, 7  ;;  %v1271_v12 = vsel %vm1203_vm3, %v1269_v17, %v1270_v50  ;;  %v6198_v49 = vrot.slane %v6197_v25, 2  ;;  %v4657_v48 = vmul.f32 %v3912_v5, %v6194_v0 }
 0x155   : > { %v2875_v20 = vrot.slane %v2765_v13, 7  ;;  %v2196_v54 = vadd.f32 %v6195_v23, %v2029_v39  ;;  %v2172_v33 = vadd.f32 %v6196_v15, %v2005_v10  ;;  %v1372_v52 = vadd.f32 %v1271_v12, %v1095_v11  ;;  %v4697_v23 = vld [vmem:[%s6008_s3 + $0x8] ss:$0 sm:$0xff] }
 0x156   : > { %v1273_v34 = vsel %vm1203_vm3, %v1270_v50, %v6198_v49  ;;  %v1578_v40 = vmul.f32 %v3912_v5, %v6199_v60  ;;  %v4663_v31 = vmul.f32 %v3878_v46, %v6194_v0  ;;  %v1654_v27 = vrot.slane %v4657_v48, 1 }
 0x157   : > { %v2408_v47 = vadd.f32 %v2312_v51, %v2196_v54  ;;  %v2384_v3 = vadd.f32 %v2288_v61, %v2172_v33  ;;  %v1373_v29 = vadd.f32 %v1273_v34, %v1096_v45  ;;  %v2876_v57 = vsel %vm2841_vm5, %v2873_v42, %v2875_v20 }
 0x158   : > { %3417 = vmatpush3.xpose.msk.msra.mxu1 %vm695_vm2, %v2876_v57  ;;  %v1539_v61 = vadd.f32 %v1491_v19, %v1372_v52  ;;  %v1655_v14 = vrot.slane %v1578_v40, 1  ;;  %v1803_v30 = vmul.f32 %v3878_v46, %v6199_v60  ;;  %v1924_v43 = vrot.slane %v4663_v31, 2 }
 0x159   : > { %v2684_v53 = vadd.f32 %v2584_v59, %v2408_v47  ;;  %v2660_v51 = vadd.f32 %v2544_v2, %v2384_v3  ;;  %v1540_v37 = vadd.f32 %v1492_v62, %v1373_v29  ;;  %v2146_v55 = vmul.f32 %v3914_v7, %v4424_v16  ;;  %v6202_v62 = vld [vmem:[#allocation39_spill] sm:$0xff]  ;;  %v6203_v47 = vld [vmem:[#allocation48_spill] sm:$0xff] }
 0x15a   : > { %v2147_v56 = vmul.f32 %v3914_v7, %v4404_v9  ;;  %v1656_v59 = vsel %vm958_vm4, %v1654_v27, %v1655_v14  ;;  %v1925_v63 = vrot.slane %v1803_v30, 2  ;;  %v4683_v44 = vmul.f32 %v3916_v8, %v4424_v16  ;;  %v6208_v30 = vld [vmem:[#allocation16_spill] sm:$0xff] }
 0x15b   : > { %v2739_v38 = vadd.f32 %v4329_v26, %v2684_v53  ;;  %v2715_v35 = vadd.f32 %v4329_v26, %v2660_v51  ;;  %v1752_v2 = vadd.f32 %v1655_v14, %v1540_v37  ;;  %v1751_v10 = vadd.f32 %v1656_v59, %v1539_v61  ;;  %v6206_v61 = vld [vmem:[#allocation42_spill] sm:$0xff]  ;;  %v6211_v59 = vld [vmem:[#allocation45_spill] sm:$0xff] }
 0x15c   : > { %v2233_v50 = vmul.f32 %v3916_v8, %v4404_v9  ;;  %v1926_v36 = vsel %vm1203_vm3, %v1924_v43, %v1925_v63  ;;  %v6201_v45 = vrot.slane %v6200_v41, 2  ;;  %v2309_v20 = vrot.slane %v4683_v44, 1  ;;  %v6215_v41 = vld [vmem:[#allocation41_spill] sm:$0xff] }
 0x15d   : > { %v2787_v13 = vmax.f32 %v2739_v38, 0.0  ;;  %v2763_v39 = vmax.f32 %v2715_v35, 0.0  ;;  %v4701_v54 = vmul.f32 %v4697_v23, %v4424_v16  ;;  %v2027_v11 = vadd.f32 %v1926_v36, %v1751_v10 }
 0x15e   : > { %v1928_v19 = vsel %vm1203_vm3, %v1925_v63, %v6201_v45  ;;  %v2310_v25 = vrot.slane %v2233_v50, 1  ;;  %v2458_v49 = vmul.f32 %v4697_v23, %v4404_v9  ;;  %v1071_v3 = vadd.f32 %v6203_v47, %v6202_v62  ;;  %v6204_v9 = vld [vmem:[#allocation37_spill] sm:$0xff]  ;;  %v6214_v50 = vld [vmem:[#allocation44_spill] sm:$0xff] }
 0x15f   : > { %v2912_v15 = vrot.slane %v2787_v13, 7  ;;  %v2872_v33 = vrot.slane %v2763_v39, 7  ;;  %v2028_v12 = vadd.f32 %v1928_v19, %v1752_v2  ;;  %v2579_v34 = vrot.slane %v4701_v54, 2  ;;  %v6212_v13 = vld [vmem:[#allocation17_spill] sm:$0xff] }
 0x160   : > { %v2194_v16 = vadd.f32 %v2146_v55, %v2027_v11  ;;  %v2311_v40 = vsel %vm958_vm4, %v2309_v20, %v2310_v25  ;;  %v2580_v53 = vrot.slane %v2458_v49, 2  ;;  %v6205_v51 = vrot.slane %v6204_v9, 2  ;;  %v6217_v9 = vld [vmem:[#allocation47_spill] sm:$0xff] }
 0x161   : > { %v2914_v52 = vsel %vm2841_vm5, %v2912_v15, %v4589_v21  ;;  %v2874_v29 = vsel %vm2841_vm5, %v2872_v33, %v2873_v42  ;;  %v2195_v57 = vadd.f32 %v2147_v56, %v2028_v12  ;;  %v6207_v37 = vrot.slane %v6206_v61, 2 }
 0x162   : > { %3418 = vmatprep.subr.msk.mxu1 %vm695_vm2, %v2914_v52  ;;  %v6209_v38 = vrot.slane %v6208_v30, 2  ;;  %v6210_v21 = vmov %v6205_v51  ;;  %v2406_v35 = vadd.f32 %v2311_v40, %v2194_v16  ;;  %v2581_v63 = vsel %vm1203_vm3, %v2579_v34, %v2580_v53  ;;  %v6216_v40 = vld [vmem:[#allocation49_spill] sm:$0xff] }
 0x163   : > { %v1231_v14 = vsel %vm1203_vm3, %v6207_v37, %v6205_v51  ;;  %3419 = vmatpush3.xpose.msk.msra.mxu1 %vm695_vm2, %v2874_v29  ;;  %v2407_v55 = vadd.f32 %v2310_v25, %v2195_v57  ;;  %v6213_v39 = vrot.slane %v6212_v13, 2  ;;  %v1467_v36 = vmul.f32 %v3905_v1, %v6214_v50 }
 0x164   : > { %v1233_v42 = vsel %vm1203_vm3, %v6210_v21, %v6209_v38  ;;  %v1348_v56 = vadd.f32 %v1231_v14, %v1071_v3  ;;  %v1468_v45 = vmul.f32 %v3905_v1, %v6215_v41  ;;  %v2682_v19 = vadd.f32 %v2581_v63, %v2406_v35  ;;  %v6218_v35 = vld [vmem:[#allocation18_spill] sm:$0xff] }
 0x165   : > { %v1349_v2 = vadd.f32 %v1233_v42, %v6211_v59  ;;  %v2583_v10 = vsel %vm1203_vm3, %v2580_v53, %v6213_v39  ;;  %v4739_v33 = vmul.f32 %v3912_v5, %v6214_v50  ;;  %v1562_v11 = vmul.f32 %v3912_v5, %v6215_v41 }
 0x166   : > { %v2683_v15 = vadd.f32 %v2583_v10, %v2407_v55  ;;  %v1515_v12 = vadd.f32 %v1467_v36, %v1348_v56  ;;  %v4745_v49 = vmul.f32 %v3878_v46, %v6214_v50  ;;  %v1779_v62 = vmul.f32 %v3878_v46, %v6215_v41 }
 0x167   : > { %v1516_v25 = vadd.f32 %v1468_v45, %v1349_v2  ;;  %v2737_v47 = vadd.f32 %v4329_v26, %v2682_v19  ;;  %v1630_v52 = vrot.slane %v4739_v33, 1  ;;  %v1631_v29 = vrot.slane %v1562_v11, 1  ;;  %v4777_v45 = vld [vmem:[#allocation2 + $0x188] sm:$0xff]  ;;  %v6220_v11 = vld [vmem:[#allocation30_spill] sm:$0xff] }
 0x168   : > { %v2738_v3 = vadd.f32 %v4329_v26, %v2683_v15  ;;  %v1884_v16 = vrot.slane %v4745_v49, 2  ;;  %v1885_v57 = vrot.slane %v1779_v62, 2  ;;  %v2122_v53 = vmul.f32 %v3914_v7, %v6216_v40 }
 0x169   : > { %v2123_v51 = vmul.f32 %v3914_v7, %v6217_v9  ;;  %v2785_v37 = vmax.f32 %v2737_v47, 0.0  ;;  %v1632_v30 = vsel %vm958_vm4, %v1630_v52, %v1631_v29  ;;  %v1728_v38 = vadd.f32 %v1631_v29, %v1516_v25  ;;  %v6221_v47 = vld [vmem:[#allocation25_spill] sm:$0xff] }
 0x16a   : > { %v2786_v14 = vmax.f32 %v2738_v3, 0.0  ;;  %v1727_v21 = vadd.f32 %v1632_v30, %v1515_v12  ;;  %v1886_v42 = vsel %vm1203_vm3, %v1884_v16, %v1885_v57  ;;  %v6219_v55 = vrot.slane %v6218_v35, 2  ;;  %v6222_v3 = vld [vmem:[#allocation40_spill] sm:$0xff] }
 0x16b   : > { %v4764_v59 = vmul.f32 %v3916_v8, %v6216_v40  ;;  %v4766_v2 = vrot.slane %v2785_v37, 7  ;;  %v2217_v39 = vmul.f32 %v3916_v8, %v6217_v9  ;;  %v4773_v36 = vmul.f32 %v4697_v23, %v6216_v40  ;;  %v4789_v40 = vld [vmem:[#allocation2 + $0x190] sm:$0xff] }
 0x16c   : > { %v1888_v56 = vsel %vm1203_vm3, %v1885_v57, %v6219_v55  ;;  %v2910_v63 = vrot.slane %v2786_v14, 7  ;;  %v2003_v10 = vadd.f32 %v1886_v42, %v1727_v21  ;;  %v2434_v41 = vmul.f32 %v4697_v23, %v6217_v9  ;;  %v6224_v14 = vld [vmem:[#allocation21_spill] sm:$0xff]  ;;  %v6227_v55 = vld [vmem:[#allocation28_spill] sm:$0xff] }
 0x16d   : > { %v2004_v13 = vadd.f32 %v1888_v56, %v1728_v38  ;;  %v2285_v50 = vrot.slane %v4764_v59, 1  ;;  %v2286_v33 = vrot.slane %v2217_v39, 1  ;;  %v1094_v12 = vadd.f32 %v998_v24, %v6220_v11 }
 0x16e   : > { %v2911_v19 = vsel %vm2841_vm5, %v4766_v2, %v2910_v63  ;;  %v2170_v25 = vadd.f32 %v2122_v53, %v2003_v10  ;;  %v2539_v49 = vrot.slane %v4773_v36, 2  ;;  %v2540_v62 = vrot.slane %v2434_v41, 2  ;;  %v6228_v63 = vld [vmem:[#allocation26_spill] sm:$0xff] }
 0x16f   : > { %v2171_v15 = vadd.f32 %v2123_v51, %v2004_v13  ;;  %3420 = vmatprep.subr.msk.mxu1 %vm695_vm2, %v2911_v19  ;;  %v6223_v29 = vrot.slane %v6222_v3, 1  ;;  %v2287_v9 = vsel %vm958_vm4, %v2285_v50, %v2286_v33  ;;  %v1371_v37 = vadd.f32 %v1269_v17, %v1094_v12  ;;  %v6229_v3 = vld [vmem:[#allocation43_spill] sm:$0xff] }
 0x170   : > { %v879_v22 = vmul.f32 %v3896_v58, %v4777_v45  ;;  %v2382_v24 = vadd.f32 %v2287_v9, %v2170_v25  ;;  %v2541_v53 = vsel %vm1203_vm3, %v2539_v49, %v2540_v62  ;;  %v6225_v30 = vrot.slane %v6224_v14, 2 }
 0x171   : > { %v1070_v57 = vadd.f32 %v6223_v29, %v6221_v47  ;;  %v2383_v51 = vadd.f32 %v2286_v33, %v2171_v15  ;;  %v6226_v21 = vrot.slane %v6206_v61, 2  ;;  %v1538_v56 = vadd.f32 %v6227_v55, %v1371_v37  ;;  %v6230_v37 = vld [vmem:[#allocation31_spill] sm:$0xff] }
 0x172   : > { %v2543_v38 = vsel %vm1203_vm3, %v2540_v62, %v6225_v30  ;;  %v880_v28 = vmul.f32 %v3896_v58, %v4789_v40  ;;  %v4807_v17 = vmul.f32 %v6190_v18, %v4777_v45  ;;  %v2658_v59 = vadd.f32 %v2541_v53, %v2382_v24 }
 0x173   : > { %v1347_v42 = vadd.f32 %v6226_v21, %v1070_v57  ;;  %v2659_v35 = vadd.f32 %v2543_v38, %v2383_v51  ;;  %v919_v39 = vmul.f32 %v6190_v18, %v4789_v40  ;;  %v4814_v61 = vmul.f32 %v6191_v32, %v4777_v45 }
 0x174   : > { %v1750_v36 = vadd.f32 %v1654_v27, %v1538_v56  ;;  %v995_v41 = vrot.slane %v4807_v17, 1  ;;  %v1144_v19 = vmul.f32 %v6191_v32, %v4789_v40  ;;  %v2713_v15 = vadd.f32 %v4329_v26, %v2658_v59 }
 0x175   : > { %v1514_v13 = vadd.f32 %v6228_v63, %v1347_v42  ;;  %v2714_v10 = vadd.f32 %v4329_v26, %v2659_v35  ;;  %v996_v11 = vrot.slane %v919_v39, 1  ;;  %v1264_v12 = vrot.slane %v4814_v61, 2  ;;  %v5019_v61 = vld [vmem:[%s6009_s4] ss:$0 sm:$0xff] }
 0x176   : > { %v2026_v62 = vadd.f32 %v1924_v43, %v1750_v36  ;;  %v1265_v47 = vrot.slane %v1144_v19, 2  ;;  %v1267_v29 = vrot.slane %v6229_v3, 2  ;;  %v2761_v48 = vmax.f32 %v2713_v15, 0.0  ;;  %v6231_v43 = vld [vmem:[#allocation27_spill] sm:$0xff]  ;;  %v4860_v19 = vld [vmem:[#allocation2 + $0x1b8] sm:$0xff] }
 0x177   : > { %v1726_v33 = vadd.f32 %v1630_v52, %v1514_v13  ;;  %v2762_v25 = vmax.f32 %v2714_v10, 0.0  ;;  %v997_v57 = vsel %vm958_vm4, %v995_v41, %v996_v11  ;;  %v1093_v9 = vadd.f32 %v996_v11, %v880_v28 }
 0x178   : > { %v2193_v52 = vadd.f32 %v6230_v37, %v2026_v62  ;;  %v1092_v24 = vadd.f32 %v997_v57, %v879_v22  ;;  %v1266_v53 = vsel %vm1203_vm3, %v1264_v12, %v1265_v47  ;;  %v2868_v31 = vrot.slane %v2761_v48, 7 }
 0x179   : > { %v2002_v27 = vadd.f32 %v1884_v16, %v1726_v33  ;;  %v2870_v51 = vrot.slane %v2762_v25, 7  ;;  %v1268_v30 = vsel %vm1203_vm3, %v1265_v47, %v1267_v29  ;;  %v1488_v16 = vmul.f32 %v3905_v1, %v4577_v4 }
 0x17a   : > { %v2405_v38 = vadd.f32 %v2309_v20, %v2193_v52  ;;  %v1369_v21 = vadd.f32 %v1266_v53, %v1092_v24  ;;  %v1370_v42 = vadd.f32 %v1268_v30, %v1093_v9  ;;  %v1489_v22 = vmul.f32 %v3905_v1, %v4591_v6 }
 0x17b   : > { %v2169_v14 = vadd.f32 %v6231_v43, %v2002_v27  ;;  %v2871_v35 = vsel %vm2841_vm5, %v2868_v31, %v2870_v51  ;;  %v4845_v56 = vmul.f32 %v3912_v5, %v4577_v4  ;;  %v1576_v28 = vmul.f32 %v3912_v5, %v4591_v6 }
 0x17c   : > { %3421 = vmatpush3.xpose.msk.msra.mxu1 %vm695_vm2, %v2871_v35  ;;  %v2681_v44 = vadd.f32 %v2579_v34, %v2405_v38  ;;  %v1536_v20 = vadd.f32 %v1488_v16, %v1369_v21  ;;  %v1537_v59 = vadd.f32 %v1489_v22, %v1370_v42  ;;  %v4854_v63 = vmul.f32 %v3878_v46, %v4577_v4  ;;  %v3556_v42 = vld [vmem:[#allocation2 + $0x1d8] sm:$0xff] }
 0x17d   : > { %v2381_v55 = vadd.f32 %v2285_v50, %v2169_v14  ;;  %v1651_v50 = vrot.slane %v4845_v56, 1  ;;  %v1652_v39 = vrot.slane %v1576_v28, 1  ;;  %v1800_v10 = vmul.f32 %v3878_v46, %v4591_v6 }
 0x17e   : > { %v2736_v36 = vadd.f32 %v4329_v26, %v2681_v44  ;;  %v1801_v54 = vmul.f32 %v4860_v19, %v3878_v46  ;;  %v1919_v34 = vrot.slane %v4854_v63, 2  ;;  %v2143_v15 = vmul.f32 %v3914_v7, %v6194_v0 }
 0x17f   : > { %v2657_v13 = vadd.f32 %v2539_v49, %v2381_v55  ;;  %v1653_v33 = vsel %vm958_vm4, %v1651_v50, %v1652_v39  ;;  %v1749_v11 = vadd.f32 %v1652_v39, %v1537_v59  ;;  %v1920_v25 = vrot.slane %v1800_v10, 2 }
 0x180   : > { %v2784_v62 = vmax.f32 %v2736_v36, 0.0  ;;  %v1748_v47 = vadd.f32 %v1653_v33, %v1536_v20  ;;  %v1922_v3 = vrot.slane %v1801_v54, 2  ;;  %v2144_v29 = vmul.f32 %v3914_v7, %v6199_v60  ;;  %v6239_v33 = vld [vmem:[#allocation36_spill] sm:$0xff] }
 0x181   : > { %v2712_v49 = vadd.f32 %v4329_v26, %v2657_v13  ;;  %v1921_v27 = vsel %vm1203_vm3, %v1919_v34, %v1920_v25  ;;  %v4878_v57 = vmul.f32 %v3916_v8, %v6194_v0  ;;  %v2231_v9 = vmul.f32 %v3916_v8, %v6199_v60  ;;  %v6234_v13 = vld [vmem:[#allocation33_spill] sm:$0xff] }
 0x182   : > { %v2907_v51 = vrot.slane %v2784_v62, 7  ;;  %v1923_v37 = vsel %vm1203_vm3, %v1920_v25, %v1922_v3  ;;  %v2024_v52 = vadd.f32 %v1921_v27, %v1748_v47  ;;  %v4885_v24 = vmul.f32 %v4697_v23, %v6194_v0  ;;  %v6241_v62 = vld [vmem:[#allocation34_spill] sm:$0xff] }
 0x183   : > { %v2760_v48 = vmax.f32 %v2712_v49, 0.0  ;;  %v2025_v43 = vadd.f32 %v1923_v37, %v1749_v11  ;;  %v2306_v14 = vrot.slane %v4878_v57, 1  ;;  %v2307_v30 = vrot.slane %v2231_v9, 1  ;;  %v4920_v9 = vld [vmem:[#allocation2 + $0xb0] sm:$0xff] }
 0x184   : > { %v2909_v16 = vsel %vm2841_vm5, %v2907_v51, %v4766_v2  ;;  %v2191_v38 = vadd.f32 %v2143_v15, %v2024_v52  ;;  %v2455_v21 = vmul.f32 %v4697_v23, %v6199_v60  ;;  %v2456_v22 = vmul.f32 %v3556_v42, %v4697_v23  ;;  %v6232_v60 = vld [vmem:[#allocation29_spill] sm:$0xff]  ;;  %v6237_v15 = vld [vmem:[#allocation32_spill] sm:$0xff] }
 0x185   : > { %v2867_v53 = vrot.slane %v2760_v48, 7  ;;  %3422 = vmatprep.subr.msk.mxu1 %vm695_vm2, %v2909_v16  ;;  %v2192_v35 = vadd.f32 %v2144_v29, %v2025_v43  ;;  %v2308_v55 = vsel %vm958_vm4, %v2306_v14, %v2307_v30  ;;  %v6068_v28 = vrot.slane %v4885_v24, 2  ;;  %v4916_v48 = vld [vmem:[#allocation2 + $0xa8] sm:$0xff]  ;;  %v6243_v16 = vld [vmem:[#allocation38_spill] sm:$0xff] }
 0x186   : > { %v2403_v2 = vadd.f32 %v2308_v55, %v2191_v38  ;;  %v2575_v44 = vrot.slane %v2455_v21, 2  ;;  %v2577_v20 = vrot.slane %v2456_v22, 2  ;;  %v6233_v59 = vrot.slane %v6232_v60, 1 }
 0x187   : > { %v2869_v0 = vsel %vm2841_vm5, %v2867_v53, %v2868_v31  ;;  %v6235_v39 = vrot.slane %v6234_v13, 1  ;;  %v2404_v36 = vadd.f32 %v2307_v30, %v2192_v35  ;;  %v6236_v31 = vld [vmem:[#allocation35_spill] sm:$0xff]  ;;  %v6238_v49 = vrot.slane %v6237_v15, 2 }
 0x188   : > { %3423 = vmatpush3.xpose.msk.msra.mxu1 %vm695_vm2, %v2869_v0  ;;  %v6240_v11 = vrot.slane %v6239_v33, 2  ;;  %v1227_v47 = vrot.slane %v6241_v62, 2  ;;  %v2576_v3 = vsel %vm1203_vm3, %v6068_v28, %v2575_v44  ;;  %v2578_v29 = vsel %vm1203_vm3, %v2575_v44, %v2577_v20 }
 0x189   : > { %v973_v10 = vsel %vm958_vm4, %v6235_v39, %v6233_v59  ;;  %v1464_v27 = vmul.f32 %v4916_v48, %v3905_v1  ;;  %v1465_v51 = vmul.f32 %v4920_v9, %v3905_v1  ;;  %v2679_v37 = vadd.f32 %v2576_v3, %v2403_v2  ;;  %v4943_v59 = vld [vmem:[#allocation2 + $0xb8] sm:$0xff] }
 0x18a   : > { %v1068_v54 = vadd.f32 %v973_v10, %v6236_v31  ;;  %v1226_v25 = vsel %vm1203_vm3, %v6240_v11, %v6238_v49  ;;  %v2680_v52 = vadd.f32 %v2578_v29, %v2404_v36  ;;  %v6242_v53 = vmov %v6238_v49  ;;  %v3560_v11 = vld [vmem:[#allocation2 + $0xc8] sm:$0xff] }
 0x18b   : > { %v1228_v43 = vsel %vm1203_vm3, %v6242_v53, %v1227_v47  ;;  %v4930_v21 = vmul.f32 %v4916_v48, %v3912_v5  ;;  %v1560_v42 = vmul.f32 %v4920_v9, %v3912_v5  ;;  %v4936_v22 = vmul.f32 %v4916_v48, %v3878_v46 }
 0x18c   : > { %v1345_v30 = vadd.f32 %v1226_v25, %v1068_v54  ;;  %v1346_v38 = vadd.f32 %v1228_v43, %v6243_v16  ;;  %v2734_v0 = vadd.f32 %v4329_v26, %v2679_v37  ;;  %v2735_v35 = vadd.f32 %v4329_v26, %v2680_v52  ;;  %v4963_v43 = vld [vmem:[#allocation2 + $0x180] sm:$0xff] }
 0x18d   : > { %v1776_v2 = vmul.f32 %v4920_v9, %v3878_v46  ;;  %v1627_v20 = vrot.slane %v4930_v21, 1  ;;  %v1628_v60 = vrot.slane %v1560_v42, 1  ;;  %v1777_v39 = vmul.f32 %v4943_v59, %v3878_v46 }
 0x18e   : > { %v1512_v55 = vadd.f32 %v1464_v27, %v1345_v30  ;;  %v1513_v44 = vadd.f32 %v1465_v51, %v1346_v38  ;;  %v2782_v10 = vmax.f32 %v2734_v0, 0.0  ;;  %v2783_v36 = vmax.f32 %v2735_v35, 0.0  ;;  %v3561_v51 = vld [vmem:[#allocation2 + $0xd0] sm:$0xff] }
 0x18f   : > { %v1879_v31 = vrot.slane %v4936_v22, 2  ;;  %v1880_v54 = vrot.slane %v1776_v2, 2  ;;  %v1629_v26 = vsel %vm958_vm4, %v1627_v20, %v1628_v60  ;;  %v1882_v49 = vrot.slane %v1777_v39, 2  ;;  %v3562_v2 = vld [vmem:[#allocation2 + $0xd8] sm:$0xff] }
 0x190   : > { %v1725_v15 = vadd.f32 %v1628_v60, %v1513_v44  ;;  %v2119_v25 = vmul.f32 %v3560_v11, %v3914_v7  ;;  %v4952_v62 = vrot.slane %v2782_v10, 7  ;;  %v2905_v47 = vrot.slane %v2783_v36, 7 }
 0x191   : > { %v1724_v3 = vadd.f32 %v1629_v26, %v1512_v55  ;;  %v1881_v29 = vsel %vm1203_vm3, %v1879_v31, %v1880_v54  ;;  %v1883_v27 = vsel %vm1203_vm3, %v1880_v54, %v1882_v49  ;;  %v2120_v37 = vmul.f32 %v3561_v51, %v3914_v7  ;;  %v4977_v54 = vld [vmem:[#allocation2 + $0x80] sm:$0xff] }
 0x192   : > { %v4960_v52 = vmul.f32 %v3560_v11, %v3916_v8  ;;  %v2215_v53 = vmul.f32 %v3561_v51, %v3916_v8  ;;  %v2906_v30 = vsel %vm2841_vm5, %v4952_v62, %v2905_v47  ;;  %v2001_v38 = vadd.f32 %v1883_v27, %v1725_v15  ;;  %v3564_v27 = vld [vmem:[#allocation2 + $0x1c0] sm:$0xff] }
 0x193   : > { %v2000_v16 = vadd.f32 %v1881_v29, %v1724_v3  ;;  %v4968_v42 = vmul.f32 %v3560_v11, %v4697_v23  ;;  %3424 = vmatprep.subr.msk.mxu1 %vm695_vm2, %v2906_v30  ;;  %v2431_v55 = vmul.f32 %v3561_v51, %v4697_v23  ;;  %v2432_v44 = vmul.f32 %v3562_v2, %v4697_v23  ;;  %v4982_v11 = vld [vmem:[#allocation2 + $0x1a0] sm:$0xff] }
 0x194   : > { %v6067_v0 = vrot.slane %v4960_v52, 1  ;;  %v2283_v35 = vrot.slane %v2215_v53, 1  ;;  %v2168_v39 = vadd.f32 %v2120_v37, %v2001_v38  ;;  %v878_v36 = vmul.f32 %v3896_v58, %v4963_v43  ;;  %v4989_v37 = vld [vmem:[#allocation2 + $0x168] sm:$0xff]  ;;  %v4991_v53 = vld [vmem:[#allocation2 + $0x170] sm:$0xff] }
 0x195   : > { %v2167_v60 = vadd.f32 %v2119_v25, %v2000_v16  ;;  %v6066_v10 = vrot.slane %v4968_v42, 2  ;;  %v2535_v15 = vrot.slane %v2431_v55, 2  ;;  %v2537_v49 = vrot.slane %v2432_v44, 2  ;;  %v3566_v44 = vld [vmem:[#allocation2 + $0xc0] sm:$0xff] }
 0x196   : > { %v2284_v26 = vsel %vm958_vm4, %v6067_v0, %v2283_v35  ;;  %v1487_v47 = vmul.f32 %v4982_v11, %v3905_v1  ;;  %v2380_v3 = vadd.f32 %v2283_v35, %v2168_v39  ;;  %v1091_v29 = vadd.f32 %v995_v41, %v878_v36  ;;  %v4999_v35 = vld [vmem:[#allocation2 + $0xa0] sm:$0xff] }
 0x197   : > { %v2379_v25 = vadd.f32 %v2284_v26, %v2167_v60  ;;  %v2142_v51 = vmul.f32 %v3564_v27, %v3914_v7  ;;  %v2536_v30 = vsel %vm1203_vm3, %v6066_v10, %v2535_v15  ;;  %v2538_v16 = vsel %vm1203_vm3, %v2535_v15, %v2537_v49 }
 0x198   : > { %v854_v38 = vmul.f32 %v3896_v58, %v4977_v54  ;;  %v1463_v17 = vmul.f32 %v4999_v35, %v3905_v1  ;;  %v2656_v55 = vadd.f32 %v2538_v16, %v2380_v3  ;;  %v1368_v2 = vadd.f32 %v1264_v12, %v1091_v29  ;;  %v5023_v3 = vld [vmem:[#allocation2 + $0x178] sm:$0xff] }
 0x199   : > { %v2655_v41 = vadd.f32 %v2536_v30, %v2379_v25  ;;  %v2118_v60 = vmul.f32 %v3566_v44, %v3914_v7  ;;  %v6244_v39 = vrot.slane %v6234_v13, 1  ;;  %v876_v26 = vmul.f32 %v3896_v58, %v4989_v37 }
 0x19a   : > { %v877_v15 = vmul.f32 %v3896_v58, %v4991_v53  ;;  %v5014_v49 = vmul.f32 %v6190_v18, %v4989_v37  ;;  %v2711_v13 = vadd.f32 %v5019_v61, %v2656_v55  ;;  %v1535_v25 = vadd.f32 %v1487_v47, %v1368_v2 }
 0x19b   : > { %v1067_v36 = vadd.f32 %v6244_v39, %v854_v38  ;;  %v2710_v12 = vadd.f32 %v5019_v61, %v2655_v41  ;;  %v917_v29 = vmul.f32 %v6190_v18, %v4991_v53  ;;  %v6245_v27 = vrot.slane %v6239_v33, 2 }
 0x19c   : > { %v992_v16 = vrot.slane %v5014_v49, 1  ;;  %v5032_v38 = vmul.f32 %v6191_v32, %v4989_v37  ;;  %v1141_v41 = vmul.f32 %v6191_v32, %v4991_v53  ;;  %v2759_v55 = vmax.f32 %v2711_v13, 0.0 }
 0x19d   : > { %v1344_v30 = vadd.f32 %v6245_v27, %v1067_v36  ;;  %v2758_v44 = vmax.f32 %v2710_v12, 0.0  ;;  %v1747_v47 = vadd.f32 %v1651_v50, %v1535_v25  ;;  %v993_v2 = vrot.slane %v917_v29, 1 }
 0x19e   : > { %v1142_v33 = vmul.f32 %v6191_v32, %v5023_v3  ;;  %v1259_v36 = vrot.slane %v5032_v38, 2  ;;  %v1260_v27 = vrot.slane %v1141_v41, 2  ;;  %v2865_v0 = vrot.slane %v2759_v55, 7 }
 0x19f   : > { %v1511_v39 = vadd.f32 %v1463_v17, %v1344_v30  ;;  %v5041_v10 = vrot.slane %v2758_v44, 7  ;;  %v2023_v28 = vadd.f32 %v1919_v34, %v1747_v47  ;;  %v994_v12 = vsel %vm958_vm4, %v992_v16, %v993_v2 }
 0x1a0   : > { %v1089_v50 = vadd.f32 %v994_v12, %v876_v26  ;;  %v1090_v17 = vadd.f32 %v993_v2, %v877_v15  ;;  %v1261_v13 = vsel %vm1203_vm3, %v1259_v36, %v1260_v27  ;;  %v1262_v30 = vrot.slane %v1142_v33, 2 }
 0x1a1   : > { %v1723_v56 = vadd.f32 %v1627_v20, %v1511_v39  ;;  %v2866_v25 = vsel %vm2841_vm5, %v5041_v10, %v2865_v0  ;;  %v2190_v29 = vadd.f32 %v2142_v51, %v2023_v28  ;;  %v1485_v63 = vmul.f32 %v3905_v1, %v4777_v45 }
 0x1a2   : > { %3425 = vmatpush3.xpose.msk.msra.mxu1 %vm695_vm2, %v2866_v25  ;;  %v1366_v21 = vadd.f32 %v1261_v13, %v1089_v50  ;;  %v1486_v20 = vmul.f32 %v3905_v1, %v4789_v40  ;;  %v5064_v26 = vmul.f32 %v3912_v5, %v4777_v45  ;;  %v1263_v0 = vsel %vm1203_vm3, %v1260_v27, %v1262_v30 }
 0x1a3   : > { %v1999_v34 = vadd.f32 %v1879_v31, %v1723_v56  ;;  %v2402_v28 = vadd.f32 %v2306_v14, %v2190_v29  ;;  %v1574_v51 = vmul.f32 %v3912_v5, %v4789_v40  ;;  %v5073_v22 = vmul.f32 %v3878_v46, %v4777_v45  ;;  %v5080_v14 = vld [vmem:[#allocation2 + $0x198] sm:$0xff] }
 0x1a4   : > { %v1367_v15 = vadd.f32 %v1263_v0, %v1090_v17  ;;  %v1533_v41 = vadd.f32 %v1485_v63, %v1366_v21  ;;  %v6075_v44 = vrot.slane %v5064_v26, 1  ;;  %v6246_v55 = vrot.slane %v4885_v24, 2 }
 0x1a5   : > { %v2166_v31 = vadd.f32 %v2118_v60, %v1999_v34  ;;  %v1649_v2 = vrot.slane %v1574_v51, 1  ;;  %v1797_v57 = vmul.f32 %v3878_v46, %v4789_v40  ;;  %v1798_v39 = vmul.f32 %v5080_v14, %v3878_v46 }
 0x1a6   : > { %v2678_v47 = vadd.f32 %v6246_v55, %v2402_v28  ;;  %v6247_v33 = vrot.slane %v4960_v52, 1  ;;  %v1534_v60 = vadd.f32 %v1486_v20, %v1367_v15  ;;  %v6073_v12 = vrot.slane %v5073_v22, 2 }
 0x1a7   : > { %v2140_v56 = vmul.f32 %v3914_v7, %v4577_v4  ;;  %v1650_v50 = vsel %vm958_vm4, %v6075_v44, %v1649_v2  ;;  %v1915_v17 = vrot.slane %v1797_v57, 2  ;;  %v1917_v13 = vrot.slane %v1798_v39, 2 }
 0x1a8   : > { %v2378_v27 = vadd.f32 %v6247_v33, %v2166_v31  ;;  %v2733_v24 = vadd.f32 %v5019_v61, %v2678_v47  ;;  %v6248_v25 = vrot.slane %v4968_v42, 2  ;;  %v1745_v30 = vadd.f32 %v1650_v50, %v1533_v41 }
 0x1a9   : > { %v1746_v52 = vadd.f32 %v1649_v2, %v1534_v60  ;;  %v2141_v63 = vmul.f32 %v3914_v7, %v4591_v6  ;;  %v1916_v21 = vsel %vm1203_vm3, %v6073_v12, %v1915_v17  ;;  %v1918_v20 = vsel %vm1203_vm3, %v1915_v17, %v1917_v13  ;;  %v5115_v2 = vld [vmem:[#allocation2 + $0x68] sm:$0xff]  ;;  %v5117_v60 = vld [vmem:[#allocation2 + $0x70] sm:$0xff] }
 0x1aa   : > { %v2654_v29 = vadd.f32 %v6248_v25, %v2378_v27  ;;  %v2781_v34 = vmax.f32 %v2733_v24, 0.0  ;;  %v5103_v28 = vmul.f32 %v3916_v8, %v4577_v4  ;;  %v2021_v42 = vadd.f32 %v1916_v21, %v1745_v30  ;;  %v5128_v25 = vld [vmem:[#allocation2 + $0x78] sm:$0xff] }
 0x1ab   : > { %v2022_v51 = vadd.f32 %v1918_v20, %v1746_v52  ;;  %v2229_v31 = vmul.f32 %v3916_v8, %v4591_v6  ;;  %v5111_v55 = vmul.f32 %v4697_v23, %v4577_v4  ;;  %v2452_v47 = vmul.f32 %v4697_v23, %v4591_v6 }
 0x1ac   : > { %v2709_v0 = vadd.f32 %v5019_v61, %v2654_v29  ;;  %v2902_v15 = vrot.slane %v2781_v34, 7  ;;  %v6071_v41 = vrot.slane %v5103_v28, 1  ;;  %v2188_v39 = vadd.f32 %v2140_v56, %v2021_v42 }
 0x1ad   : > { %v2189_v33 = vadd.f32 %v2141_v63, %v2022_v51  ;;  %v2304_v27 = vrot.slane %v2229_v31, 1  ;;  %v2453_v50 = vmul.f32 %v4860_v19, %v4697_v23  ;;  %v6069_v4 = vrot.slane %v5111_v55, 2 }
 0x1ae   : > { %v2757_v57 = vmax.f32 %v2709_v0, 0.0  ;;  %v2904_v24 = vsel %vm2841_vm5, %v2902_v15, %v4952_v62  ;;  %v2570_v17 = vrot.slane %v2452_v47, 2  ;;  %v852_v29 = vmul.f32 %v3896_v58, %v5115_v2 }
 0x1af   : > { %3426 = vmatprep.subr.msk.mxu1 %vm695_vm2, %v2904_v24  ;;  %v2305_v56 = vsel %vm958_vm4, %v6071_v41, %v2304_v27  ;;  %v2401_v13 = vadd.f32 %v2304_v27, %v2189_v33  ;;  %v2572_v30 = vrot.slane %v2453_v50, 2  ;;  %v853_v52 = vmul.f32 %v3896_v58, %v5117_v60  ;;  %v5158_v24 = vld [vmem:[#allocation2 + $0x88] sm:$0xff] }
 0x1b0   : > { %v2862_v6 = vrot.slane %v2757_v57, 7  ;;  %v2400_v62 = vadd.f32 %v2305_v56, %v2188_v39  ;;  %v2571_v19 = vsel %vm1203_vm3, %v6069_v4, %v2570_v17  ;;  %v5141_v34 = vmul.f32 %v6190_v18, %v5115_v2 }
 0x1b1   : > { %v901_v21 = vmul.f32 %v6190_v18, %v5117_v60  ;;  %v5147_v20 = vmul.f32 %v6191_v32, %v5115_v2  ;;  %v2573_v0 = vsel %vm1203_vm3, %v2570_v17, %v2572_v30  ;;  %v1117_v51 = vmul.f32 %v6191_v32, %v5117_v60 }
 0x1b2   : > { %v2864_v63 = vsel %vm2841_vm5, %v2862_v6, %v5041_v10  ;;  %v2676_v42 = vadd.f32 %v2571_v19, %v2400_v62  ;;  %v1118_v10 = vmul.f32 %v6191_v32, %v5128_v25  ;;  %v2677_v31 = vadd.f32 %v2573_v0, %v2401_v13  ;;  %v5166_v13 = vld [vmem:[#allocation2 + $0x90] sm:$0xff] }
 0x1b3   : > { %3427 = vmatpush3.xpose.msk.msra.mxu1 %vm695_vm2, %v2864_v63  ;;  %v6076_v15 = vrot.slane %v5141_v34, 1  ;;  %v969_v47 = vrot.slane %v901_v21, 1  ;;  %v6074_v57 = vrot.slane %v5147_v20, 2  ;;  %v1220_v33 = vrot.slane %v1117_v51, 2 }
 0x1b4   : > { %v2731_v39 = vadd.f32 %v5019_v61, %v2676_v42  ;;  %v1222_v27 = vrot.slane %v1118_v10, 2  ;;  %v1461_v50 = vmul.f32 %v5158_v24, %v3905_v1  ;;  %v2732_v17 = vadd.f32 %v5019_v61, %v2677_v31 }
 0x1b5   : > { %v970_v6 = vsel %vm958_vm4, %v6076_v15, %v969_v47  ;;  %v1066_v56 = vadd.f32 %v969_v47, %v853_v52  ;;  %v1462_v62 = vmul.f32 %v5166_v13, %v3905_v1  ;;  %v1221_v63 = vsel %vm1203_vm3, %v6074_v57, %v1220_v33 }
 0x1b6   : > { %v2779_v19 = vmax.f32 %v2731_v39, 0.0  ;;  %v1065_v30 = vadd.f32 %v970_v6, %v852_v29  ;;  %v1223_v21 = vsel %vm1203_vm3, %v1220_v33, %v1222_v27  ;;  %v2780_v0 = vmax.f32 %v2732_v17, 0.0 }
 0x1b7   : > { %v1343_v42 = vadd.f32 %v1223_v21, %v1066_v56  ;;  %v5176_v51 = vmul.f32 %v5158_v24, %v3912_v5  ;;  %v1558_v52 = vmul.f32 %v5166_v13, %v3912_v5  ;;  %v5184_v29 = vmul.f32 %v5158_v24, %v3878_v46  ;;  %v5189_v56 = vld [vmem:[#allocation2 + $0x98] sm:$0xff] }
 0x1b8   : > { %v5180_v10 = vrot.slane %v2779_v19, 7  ;;  %v1342_v31 = vadd.f32 %v1221_v63, %v1065_v30  ;;  %v1773_v47 = vmul.f32 %v5166_v13, %v3878_v46  ;;  %v2900_v39 = vrot.slane %v2780_v0, 7 }
 0x1b9   : > { %v1510_v33 = vadd.f32 %v1462_v62, %v1343_v42  ;;  %v6072_v27 = vrot.slane %v5176_v51, 1  ;;  %v1625_v17 = vrot.slane %v1558_v52, 1  ;;  %v1774_v19 = vmul.f32 %v5189_v56, %v3878_v46 }
 0x1ba   : > { %v1509_v6 = vadd.f32 %v1461_v50, %v1342_v31  ;;  %v6070_v30 = vrot.slane %v5184_v29, 2  ;;  %v1875_v63 = vrot.slane %v1773_v47, 2  ;;  %v2901_v21 = vsel %vm2841_vm5, %v5180_v10, %v2900_v39  ;;  %v5201_v50 = vld [vmem:[#allocation2 + $0x160] sm:$0xff] }
 0x1bb   : > { %v1626_v0 = vsel %vm958_vm4, %v6072_v27, %v1625_v17  ;;  %v1722_v62 = vadd.f32 %v1625_v17, %v1510_v33  ;;  %v2116_v42 = vmul.f32 %v4916_v48, %v3914_v7  ;;  %3428 = vmatprep.subr.msk.mxu1 %vm695_vm2, %v2901_v21  ;;  %v1877_v47 = vrot.slane %v1774_v19, 2 }
 0x1bc   : > { %v1721_v52 = vadd.f32 %v1626_v0, %v1509_v6  ;;  %v1876_v31 = vsel %vm1203_vm3, %v6070_v30, %v1875_v63  ;;  %v2117_v39 = vmul.f32 %v4920_v9, %v3914_v7  ;;  %v5211_v4 = vmul.f32 %v4916_v48, %v3916_v8 }
 0x1bd   : > { %v2213_v33 = vmul.f32 %v4920_v9, %v3916_v8  ;;  %v5217_v17 = vmul.f32 %v4916_v48, %v4697_v23  ;;  %v2428_v6 = vmul.f32 %v4920_v9, %v4697_v23  ;;  %v1878_v21 = vsel %vm1203_vm3, %v1875_v63, %v1877_v47  ;;  %v5230_v63 = vld [vmem:[#allocation2 + $0x60] sm:$0xff]  ;;  %v5239_v47 = vld [vmem:[#allocation2 + $0x148] sm:$0xff] }
 0x1be   : > { %v1997_v19 = vadd.f32 %v1876_v31, %v1721_v52  ;;  %v2429_v0 = vmul.f32 %v4943_v59, %v4697_v23  ;;  %v875_v30 = vmul.f32 %v3896_v58, %v5201_v50  ;;  %v1998_v41 = vadd.f32 %v1878_v21, %v1722_v62 }
 0x1bf   : > { %v6078_v27 = vrot.slane %v5211_v4, 1  ;;  %v2280_v12 = vrot.slane %v2213_v33, 1  ;;  %v6077_v57 = vrot.slane %v5217_v17, 2  ;;  %v2530_v44 = vrot.slane %v2428_v6, 2 }
 0x1c0   : > { %v2164_v48 = vadd.f32 %v2116_v42, %v1997_v19  ;;  %v2532_v15 = vrot.slane %v2429_v0, 2  ;;  %v1088_v9 = vadd.f32 %v992_v16, %v875_v30  ;;  %v2165_v52 = vadd.f32 %v2117_v39, %v1998_v41  ;;  %v5241_v42 = vld [vmem:[#allocation2 + $0x150] sm:$0xff] }
 0x1c1   : > { %v2281_v59 = vsel %vm958_vm4, %v6078_v27, %v2280_v12  ;;  %v1484_v62 = vmul.f32 %v3905_v1, %v4963_v43  ;;  %v2139_v31 = vmul.f32 %v4982_v11, %v3914_v7  ;;  %v2531_v49 = vsel %vm1203_vm3, %v6077_v57, %v2530_v44 }
 0x1c2   : > { %v2376_v33 = vadd.f32 %v2281_v59, %v2164_v48  ;;  %v2533_v16 = vsel %vm1203_vm3, %v2530_v44, %v2532_v15  ;;  %v1365_v41 = vadd.f32 %v1259_v36, %v1088_v9  ;;  %v2377_v30 = vadd.f32 %v2280_v12, %v2165_v52  ;;  %v5261_v15 = vld [vmem:[#allocation2 + $0x158] sm:$0xff] }
 0x1c3   : > { %v851_v39 = vmul.f32 %v3896_v58, %v5230_v63  ;;  %v1460_v11 = vmul.f32 %v3905_v1, %v4977_v54  ;;  %v2115_v6 = vmul.f32 %v4999_v35, %v3914_v7  ;;  %v873_v0 = vmul.f32 %v3896_v58, %v5239_v47 }
 0x1c4   : > { %v2652_v21 = vadd.f32 %v2531_v49, %v2376_v33  ;;  %v1532_v19 = vadd.f32 %v1484_v62, %v1365_v41  ;;  %v874_v44 = vmul.f32 %v3896_v58, %v5241_v42  ;;  %v2653_v38 = vadd.f32 %v2533_v16, %v2377_v30 }
 0x1c5   : > { %v6249_v36 = vrot.slane %v5141_v34, 1  ;;  %v5265_v48 = vmul.f32 %v6190_v18, %v5239_v47  ;;  %v915_v35 = vmul.f32 %v6190_v18, %v5241_v42  ;;  %v6250_v52 = vrot.slane %v5064_v26, 1 }
 0x1c6   : > { %v2707_v9 = vadd.f32 %v5019_v61, %v2652_v21  ;;  %v5274_v62 = vmul.f32 %v6191_v32, %v5239_v47  ;;  %v1138_v34 = vmul.f32 %v6191_v32, %v5241_v42  ;;  %v2708_v33 = vadd.f32 %v5019_v61, %v2653_v38 }
 0x1c7   : > { %v1064_v12 = vadd.f32 %v6249_v36, %v851_v39  ;;  %v1744_v59 = vadd.f32 %v6250_v52, %v1532_v19  ;;  %v6251_v49 = vrot.slane %v5147_v20, 2  ;;  %v989_v41 = vrot.slane %v5265_v48, 1 }
 0x1c8   : > { %v990_v30 = vrot.slane %v915_v35, 1  ;;  %v2755_v39 = vmax.f32 %v2707_v9, 0.0  ;;  %v6252_v21 = vrot.slane %v5073_v22, 2  ;;  %v1139_v19 = vmul.f32 %v6191_v32, %v5261_v15 }
 0x1c9   : > { %v1341_v16 = vadd.f32 %v6251_v49, %v1064_v12  ;;  %v2756_v52 = vmax.f32 %v2708_v33, 0.0  ;;  %v1255_v9 = vrot.slane %v1138_v34, 2  ;;  %v6253_v22 = vrot.slane %v5176_v51, 1 }
 0x1ca   : > { %v2020_v26 = vadd.f32 %v6252_v21, %v1744_v59  ;;  %v991_v38 = vsel %vm958_vm4, %v989_v41, %v990_v30  ;;  %v1087_v20 = vadd.f32 %v990_v30, %v874_v44  ;;  %v5290_v12 = vrot.slane %v2755_v39, 7 }
 0x1cb   : > { %v1508_v57 = vadd.f32 %v1460_v11, %v1341_v16  ;;  %v1086_v35 = vadd.f32 %v991_v38, %v873_v0  ;;  %v2860_v27 = vrot.slane %v2756_v52, 7  ;;  %v1257_v21 = vrot.slane %v1139_v19, 2 }
 0x1cc   : > { %v2187_v49 = vadd.f32 %v2139_v31, %v2020_v26  ;;  %v1482_v36 = vmul.f32 %v3905_v1, %v4989_v37  ;;  %v6254_v11 = vrot.slane %v5103_v28, 1  ;;  %v6255_v16 = vrot.slane %v5274_v62, 2 }
 0x1cd   : > { %v1720_v59 = vadd.f32 %v6253_v22, %v1508_v57  ;;  %v1483_v31 = vmul.f32 %v3905_v1, %v4991_v53  ;;  %v5305_v0 = vmul.f32 %v3912_v5, %v4989_v37  ;;  %v2861_v57 = vsel %vm2841_vm5, %v5290_v12, %v2860_v27 }
 0x1ce   : > { %v2399_v33 = vadd.f32 %v6254_v11, %v2187_v49  ;;  %v1256_v44 = vsel %vm1203_vm3, %v6255_v16, %v1255_v9  ;;  %v6256_v51 = vrot.slane %v5184_v29, 2  ;;  %v1258_v28 = vsel %vm1203_vm3, %v1255_v9, %v1257_v21  ;;  %3429 = vmatpush3.xpose.msk.msra.mxu1 %vm695_vm2, %v2861_v57 }
 0x1cf   : > { %v1363_v30 = vadd.f32 %v1256_v44, %v1086_v35  ;;  %v6257_v39 = vrot.slane %v5111_v55, 2  ;;  %v1364_v19 = vadd.f32 %v1258_v28, %v1087_v20  ;;  %v1572_v52 = vmul.f32 %v3912_v5, %v4991_v53 }
 0x1d0   : > { %v1996_v34 = vadd.f32 %v6256_v51, %v1720_v59  ;;  %v6083_v38 = vrot.slane %v5305_v0, 1  ;;  %v5320_v29 = vmul.f32 %v3878_v46, %v4989_v37  ;;  %v1794_v27 = vmul.f32 %v3878_v46, %v4991_v53 }
 0x1d1   : > { %v2675_v26 = vadd.f32 %v6257_v39, %v2399_v33  ;;  %v1530_v22 = vadd.f32 %v1482_v36, %v1363_v30  ;;  %v1531_v9 = vadd.f32 %v1483_v31, %v1364_v19  ;;  %v1646_v55 = vrot.slane %v1572_v52, 1 }
 0x1d2   : > { %v2163_v49 = vadd.f32 %v2115_v6, %v1996_v34  ;;  %v1795_v20 = vmul.f32 %v3878_v46, %v5023_v3  ;;  %v6258_v59 = vrot.slane %v5211_v4, 1  ;;  %v6082_v6 = vrot.slane %v5320_v29, 2 }
 0x1d3   : > { %v2730_v35 = vadd.f32 %v5019_v61, %v2675_v26  ;;  %v1910_v36 = vrot.slane %v1794_v27, 2  ;;  %v2137_v11 = vmul.f32 %v3914_v7, %v4777_v45  ;;  %v1647_v16 = vsel %vm958_vm4, %v6083_v38, %v1646_v55  ;;  %v5354_v27 = vld [vmem:[#allocation2 + $0x48] sm:$0xff] }
 0x1d4   : > { %v2375_v21 = vadd.f32 %v6258_v59, %v2163_v49  ;;  %v1743_v44 = vadd.f32 %v1646_v55, %v1531_v9  ;;  %v1912_v31 = vrot.slane %v1795_v20, 2  ;;  %v6259_v57 = vrot.slane %v5217_v17, 2 }
 0x1d5   : > { %v2778_v33 = vmax.f32 %v2730_v35, 0.0  ;;  %v1742_v34 = vadd.f32 %v1647_v16, %v1530_v22  ;;  %v1911_v4 = vsel %vm1203_vm3, %v6082_v6, %v1910_v36  ;;  %v2138_v28 = vmul.f32 %v3914_v7, %v4789_v40 }
 0x1d6   : > { %v2651_v51 = vadd.f32 %v6259_v57, %v2375_v21  ;;  %v1913_v39 = vsel %vm1203_vm3, %v1910_v36, %v1912_v31  ;;  %v5345_v26 = vmul.f32 %v3916_v8, %v4777_v45  ;;  %v2227_v19 = vmul.f32 %v3916_v8, %v4789_v40 }
 0x1d7   : > { %v2897_v30 = vrot.slane %v2778_v33, 7  ;;  %v2018_v52 = vadd.f32 %v1911_v4, %v1742_v34  ;;  %v2019_v49 = vadd.f32 %v1913_v39, %v1743_v44  ;;  %v5352_v22 = vmul.f32 %v4697_v23, %v4777_v45  ;;  %v5364_v33 = vld [vmem:[#allocation2 + $0x50] sm:$0xff]  ;;  %v5382_v34 = vld [vmem:[#allocation2 + $0x58] sm:$0xff] }
 0x1d8   : > { %v2706_v17 = vadd.f32 %v5019_v61, %v2651_v51  ;;  %v6080_v9 = vrot.slane %v5345_v26, 1  ;;  %v2301_v55 = vrot.slane %v2227_v19, 1  ;;  %v2449_v20 = vmul.f32 %v4697_v23, %v4789_v40 }
 0x1d9   : > { %v2899_v35 = vsel %vm2841_vm5, %v2897_v30, %v5180_v10  ;;  %v2185_v21 = vadd.f32 %v2137_v11, %v2018_v52  ;;  %v2186_v36 = vadd.f32 %v2138_v28, %v2019_v49  ;;  %v2450_v45 = vmul.f32 %v5080_v14, %v4697_v23  ;;  %v5375_v11 = vld [vmem:[%s6010_s5] sm:$0xff] }
 0x1da   : > { %3430 = vmatprep.subr.msk.mxu1 %vm695_vm2, %v2899_v35  ;;  %v2754_v59 = vmax.f32 %v2706_v17, 0.0  ;;  %v2302_v10 = vsel %vm958_vm4, %v6080_v9, %v2301_v55  ;;  %v6079_v16 = vrot.slane %v5352_v22, 2  ;;  %v2565_v44 = vrot.slane %v2449_v20, 2  ;;  %6260 = vst [vmem:[#allocation11_spill] sm:$0xff] %v5375_v11  ;;  %3444 = vmatprep.mubr.msk.f32.mxu1 %vm695_vm2, %v5375_v11 }
 0x1db   : > { %v849_v40 = vmul.f32 %v3896_v58, %v5354_v27  ;;  %v2397_v57 = vadd.f32 %v2302_v10, %v2185_v21  ;;  %v2398_v23 = vadd.f32 %v2301_v55, %v2186_v36  ;;  %v2567_v14 = vrot.slane %v2450_v45, 2 }
 0x1dc   : > { %v2857_v31 = vrot.slane %v2754_v59, 7  ;;  %v2566_v51 = vsel %vm1203_vm3, %v6079_v16, %v2565_v44  ;;  %v850_v4 = vmul.f32 %v3896_v58, %v5364_v33  ;;  %v5388_v28 = vmul.f32 %v6190_v18, %v5354_v27 }
 0x1dd   : > { %v899_v30 = vmul.f32 %v6190_v18, %v5364_v33  ;;  %v2568_v19 = vsel %vm1203_vm3, %v2565_v44, %v2567_v14  ;;  %v2673_v17 = vadd.f32 %v2566_v51, %v2397_v57  ;;  %v5397_v52 = vmul.f32 %v6191_v32, %v5354_v27 }
 0x1de   : > { %v2859_v39 = vsel %vm2841_vm5, %v2857_v31, %v5290_v12  ;;  %v2674_v49 = vadd.f32 %v2568_v19, %v2398_v23  ;;  %v6086_v35 = vrot.slane %v5388_v28, 1  ;;  %v1114_v20 = vmul.f32 %v6191_v32, %v5364_v33 }
 0x1df   : > { %3431 = vmatpush3.xpose.msk.msra.mxu1 %vm695_vm2, %v2859_v39  ;;  %v966_v55 = vrot.slane %v899_v30, 1  ;;  %v2728_v59 = vadd.f32 %v5019_v61, %v2673_v17  ;;  %v1115_v12 = vmul.f32 %v6191_v32, %v5382_v34  ;;  %v6084_v21 = vrot.slane %v5397_v52, 2 }
 0x1e0   : > { %v1458_v36 = vmul.f32 %v3905_v1, %v5115_v2  ;;  %v2729_v45 = vadd.f32 %v5019_v61, %v2674_v49  ;;  %v1215_v31 = vrot.slane %v1114_v20, 2  ;;  %v1459_v51 = vmul.f32 %v3905_v1, %v5117_v60 }
 0x1e1   : > { %v967_v10 = vsel %vm958_vm4, %v6086_v35, %v966_v55  ;;  %v1063_v44 = vadd.f32 %v966_v55, %v850_v4  ;;  %v2776_v57 = vmax.f32 %v2728_v59, 0.0  ;;  %v1217_v14 = vrot.slane %v1115_v12, 2  ;;  %v5476_v35 = vld [vmem:[#allocation2 + $0x40] sm:$0xff] }
 0x1e2   : > { %v1062_v23 = vadd.f32 %v967_v10, %v849_v40  ;;  %v2777_v30 = vmax.f32 %v2729_v45, 0.0  ;;  %v1216_v39 = vsel %vm1203_vm3, %v6084_v21, %v1215_v31  ;;  %v5420_v19 = vmul.f32 %v3912_v5, %v5115_v2 }
 0x1e3   : > { %v1556_v17 = vmul.f32 %v3912_v5, %v5117_v60  ;;  %v5424_v4 = vrot.slane %v2776_v57, 7  ;;  %v1218_v40 = vsel %vm1203_vm3, %v1215_v31, %v1217_v14  ;;  %v5429_v55 = vmul.f32 %v3878_v46, %v5115_v2 }
 0x1e4   : > { %v1339_v49 = vadd.f32 %v1216_v39, %v1062_v23  ;;  %v2895_v20 = vrot.slane %v2777_v30, 7  ;;  %v1340_v59 = vadd.f32 %v1218_v40, %v1063_v44  ;;  %v6081_v12 = vrot.slane %v5420_v19, 1 }
 0x1e5   : > { %v1622_v45 = vrot.slane %v1556_v17, 1  ;;  %v1770_v16 = vmul.f32 %v3878_v46, %v5117_v60  ;;  %v1771_v57 = vmul.f32 %v3878_v46, %v5128_v25  ;;  %v6085_v9 = vrot.slane %v5429_v55, 2 }
 0x1e6   : > { %v1506_v10 = vadd.f32 %v1458_v36, %v1339_v49  ;;  %v2896_v31 = vsel %vm2841_vm5, %v5424_v4, %v2895_v20  ;;  %v1507_v23 = vadd.f32 %v1459_v51, %v1340_v59  ;;  %v2113_v14 = vmul.f32 %v5158_v24, %v3914_v7  ;;  %v5456_v20 = vld [vmem:[%s6008_s3 + $0x8] ss:$0 sm:$0xff]  ;;  %v5462_v59 = vld [vmem:[#allocation2 + $0x140] sm:$0xff] }
 0x1e7   : > { %v1623_v44 = vsel %vm958_vm4, %v6081_v12, %v1622_v45  ;;  %3432 = vmatprep.subr.msk.mxu1 %vm695_vm2, %v2896_v31  ;;  %v1870_v30 = vrot.slane %v1770_v16, 2  ;;  %v1872_v39 = vrot.slane %v1771_v57, 2  ;;  %v2114_v17 = vmul.f32 %v5166_v13, %v3914_v7 }
 0x1e8   : > { %v1718_v36 = vadd.f32 %v1623_v44, %v1506_v10  ;;  %v1719_v40 = vadd.f32 %v1622_v45, %v1507_v23  ;;  %v5449_v49 = vmul.f32 %v5158_v24, %v3916_v8  ;;  %v2211_v51 = vmul.f32 %v5166_v13, %v3916_v8 }
 0x1e9   : > { %v5460_v16 = vmul.f32 %v5456_v20, %v5158_v24  ;;  %v1871_v45 = vsel %vm1203_vm3, %v6085_v9, %v1870_v30  ;;  %v1873_v10 = vsel %vm1203_vm3, %v1870_v30, %v1872_v39  ;;  %v2425_v57 = vmul.f32 %v5456_v20, %v5166_v13 }
 0x1ea   : > { %v2426_v31 = vmul.f32 %v5456_v20, %v5189_v56  ;;  %v1994_v23 = vadd.f32 %v1871_v45, %v1718_v36  ;;  %v1995_v44 = vadd.f32 %v1873_v10, %v1719_v40  ;;  %v6087_v12 = vrot.slane %v5449_v49, 1  ;;  %v5483_v36 = vld [vmem:[#allocation2 + $0x128] sm:$0xff]  ;;  %v5485_v40 = vld [vmem:[#allocation2 + $0x130] sm:$0xff] }
 0x1eb   : > { %v2277_v24 = vrot.slane %v2211_v51, 1  ;;  %v6088_v6 = vrot.slane %v5460_v16, 2  ;;  %v2525_v38 = vrot.slane %v2425_v57, 2  ;;  %v872_v9 = vmul.f32 %v3896_v58, %v5462_v59  ;;  %6261 = vst [vmem:[#allocation8_spill] sm:$0xff] %v5483_v36  ;;  %6262 = vst [vmem:[#allocation51_spill] sm:$0xff] %v5485_v40 }
 0x1ec   : > { %v2527_v21 = vrot.slane %v2426_v31, 2  ;;  %v2161_v30 = vadd.f32 %v2113_v14, %v1994_v23  ;;  %v2162_v39 = vadd.f32 %v2114_v17, %v1995_v44  ;;  %v1481_v56 = vmul.f32 %v3905_v1, %v5201_v50 }
 0x1ed   : > { %v2278_v13 = vsel %vm958_vm4, %v6087_v12, %v2277_v24  ;;  %v2526_v51 = vsel %vm1203_vm3, %v6088_v6, %v2525_v38  ;;  %v1085_v14 = vadd.f32 %v989_v41, %v872_v9  ;;  %v2136_v17 = vmul.f32 %v3914_v7, %v4963_v43 }
 0x1ee   : > { %v2528_v45 = vsel %vm1203_vm3, %v2525_v38, %v2527_v21  ;;  %v2373_v10 = vadd.f32 %v2278_v13, %v2161_v30  ;;  %v2374_v57 = vadd.f32 %v2277_v24, %v2162_v39  ;;  %v848_v31 = vmul.f32 %v3896_v58, %v5476_v35  ;;  %v5509_v30 = vld [vmem:[#allocation2 + $0x138] sm:$0xff] }
 0x1ef   : > { %v1457_v23 = vmul.f32 %v3905_v1, %v5230_v63  ;;  %v6263_v44 = vrot.slane %v5274_v62, 2  ;;  %v2112_v38 = vmul.f32 %v3914_v7, %v4977_v54  ;;  %v870_v48 = vmul.f32 %v3896_v58, %v5483_v36 }
 0x1f0   : > { %v871_v43 = vmul.f32 %v3896_v58, %v5485_v40  ;;  %v2649_v41 = vadd.f32 %v2526_v51, %v2373_v10  ;;  %v2650_v9 = vadd.f32 %v2528_v45, %v2374_v57  ;;  %v6264_v21 = vrot.slane %v5388_v28, 1 }
 0x1f1   : > { %v1362_v12 = vadd.f32 %v6263_v44, %v1085_v14  ;;  %v5513_v62 = vmul.f32 %v6190_v18, %v5483_v36  ;;  %v913_v54 = vmul.f32 %v6190_v18, %v5485_v40  ;;  %v5519_v13 = vmul.f32 %v6191_v32, %v5483_v36 }
 0x1f2   : > { %v1061_v24 = vadd.f32 %v6264_v21, %v848_v31  ;;  %v1135_v51 = vmul.f32 %v6191_v32, %v5485_v40  ;;  %v2704_v28 = vadd.f32 %v5019_v61, %v2649_v41  ;;  %v2705_v45 = vadd.f32 %v5019_v61, %v2650_v9 }
 0x1f3   : > { %v1529_v39 = vadd.f32 %v1481_v56, %v1362_v12  ;;  %v6265_v14 = vrot.slane %v5397_v52, 2  ;;  %v986_v57 = vrot.slane %v5513_v62, 1  ;;  %v6266_v12 = vrot.slane %v5305_v0, 1 }
 0x1f4   : > { %v987_v31 = vrot.slane %v913_v54, 1  ;;  %v1136_v44 = vmul.f32 %v6191_v32, %v5509_v30  ;;  %v2752_v6 = vmax.f32 %v2704_v28, 0.0  ;;  %v2753_v11 = vmax.f32 %v2705_v45, 0.0 }
 0x1f5   : > { %v1338_v10 = vadd.f32 %v6265_v14, %v1061_v24  ;;  %v1741_v56 = vadd.f32 %v6266_v12, %v1529_v39  ;;  %v1250_v41 = vrot.slane %v1135_v51, 2  ;;  %v6267_v9 = vrot.slane %v5320_v29, 2 }
 0x1f6   : > { %v988_v52 = vsel %vm958_vm4, %v986_v57, %v987_v31  ;;  %v1084_v24 = vadd.f32 %v987_v31, %v871_v43  ;;  %v1252_v0 = vrot.slane %v1136_v44, 2  ;;  %v5538_v39 = vrot.slane %v2752_v6, 7 }
 0x1f7   : > { %v1505_v40 = vadd.f32 %v1457_v23, %v1338_v10  ;;  %v2017_v36 = vadd.f32 %v6267_v9, %v1741_v56  ;;  %v2855_v54 = vrot.slane %v2753_v11, 7  ;;  %v6268_v14 = vrot.slane %v5420_v19, 1 }
 0x1f8   : > { %v1083_v21 = vadd.f32 %v988_v52, %v870_v48  ;;  %v6269_v23 = vrot.slane %v5519_v13, 2  ;;  %v1253_v29 = vsel %vm1203_vm3, %v1250_v41, %v1252_v0  ;;  %v1479_v45 = vmul.f32 %v3905_v1, %v5239_v47 }
 0x1f9   : > { %v1717_v12 = vadd.f32 %v6268_v14, %v1505_v40  ;;  %v2184_v28 = vadd.f32 %v2136_v17, %v2017_v36  ;;  %v2856_v43 = vsel %vm2841_vm5, %v5538_v39, %v2855_v54  ;;  %v6270_v6 = vrot.slane %v5429_v55, 2 }
 0x1fa   : > { %v1251_v51 = vsel %vm1203_vm3, %v6269_v23, %v1250_v41  ;;  %v1361_v19 = vadd.f32 %v1253_v29, %v1084_v24  ;;  %3433 = vmatpush3.xpose.msk.msra.mxu1 %vm695_vm2, %v2856_v43  ;;  %v6271_v36 = vrot.slane %v5345_v26, 1  ;;  %v1480_v17 = vmul.f32 %v3905_v1, %v5241_v42 }
 0x1fb   : > { %v1993_v11 = vadd.f32 %v6270_v6, %v1717_v12  ;;  %v1360_v10 = vadd.f32 %v1251_v51, %v1083_v21  ;;  %v5559_v48 = vmul.f32 %v3912_v5, %v5239_v47  ;;  %v1570_v56 = vmul.f32 %v3912_v5, %v5241_v42 }
 0x1fc   : > { %v2396_v40 = vadd.f32 %v6271_v36, %v2184_v28  ;;  %v5565_v44 = vmul.f32 %v3878_v46, %v5239_v47  ;;  %v1791_v26 = vmul.f32 %v3878_v46, %v5241_v42  ;;  %v6272_v21 = vrot.slane %v5352_v22, 2 }
 0x1fd   : > { %v2160_v31 = vadd.f32 %v2112_v38, %v1993_v11  ;;  %v1527_v55 = vadd.f32 %v1479_v45, %v1360_v10  ;;  %v1528_v9 = vadd.f32 %v1480_v17, %v1361_v19  ;;  %v1642_v52 = vrot.slane %v5559_v48, 1 }
 0x1fe   : > { %v2672_v41 = vadd.f32 %v6272_v21, %v2396_v40  ;;  %v1643_v24 = vrot.slane %v1570_v56, 1  ;;  %v6273_v0 = vrot.slane %v5449_v49, 1  ;;  %v1792_v38 = vmul.f32 %v3878_v46, %v5261_v15 }
 0x1ff   : > { %v1904_v14 = vrot.slane %v5565_v44, 2  ;;  %v1905_v12 = vrot.slane %v1791_v26, 2  ;;  %v2134_v51 = vmul.f32 %v3914_v7, %v4989_v37  ;;  %v6274_v29 = vrot.slane %v5460_v16, 2 }
 0x200   : > { %v2372_v54 = vadd.f32 %v6273_v0, %v2160_v31  ;;  %v2727_v28 = vadd.f32 %v5019_v61, %v2672_v41  ;;  %v1644_v22 = vsel %vm958_vm4, %v1642_v52, %v1643_v24  ;;  %v1740_v23 = vadd.f32 %v1643_v24, %v1528_v9 }
 0x201   : > { %v1739_v45 = vadd.f32 %v1644_v22, %v1527_v55  ;;  %v1906_v43 = vsel %vm1203_vm3, %v1904_v14, %v1905_v12  ;;  %v1907_v6 = vrot.slane %v1792_v38, 2  ;;  %v2135_v10 = vmul.f32 %v3914_v7, %v4991_v53  ;;  %v5609_v38 = vld [vmem:[#allocation2 + $0x30] sm:$0xff] }
 0x202   : > { %v2648_v49 = vadd.f32 %v6274_v29, %v2372_v54  ;;  %v2775_v11 = vmax.f32 %v2727_v28, 0.0  ;;  %v5592_v19 = vmul.f32 %v3916_v8, %v4989_v37  ;;  %v2225_v36 = vmul.f32 %v3916_v8, %v4991_v53  ;;  %v5607_v54 = vld [vmem:[#allocation2 + $0x28] sm:$0xff] }
 0x203   : > { %v1908_v40 = vsel %vm1203_vm3, %v1905_v12, %v1907_v6  ;;  %v2015_v17 = vadd.f32 %v1906_v43, %v1739_v45  ;;  %v5600_v56 = vmul.f32 %v5456_v20, %v4989_v37  ;;  %v2446_v24 = vmul.f32 %v5456_v20, %v4991_v53 }
 0x204   : > { %v2703_v16 = vadd.f32 %v5019_v61, %v2648_v49  ;;  %v2892_v31 = vrot.slane %v2775_v11, 7  ;;  %v2016_v55 = vadd.f32 %v1908_v40, %v1740_v23  ;;  %v6095_v26 = vrot.slane %v5592_v19, 1  ;;  %v5618_v49 = vld [vmem:[#allocation2 + $0x38] sm:$0xff] }
 0x205   : > { %v2298_v21 = vrot.slane %v2225_v36, 1  ;;  %v2182_v9 = vadd.f32 %v2134_v51, %v2015_v17  ;;  %v2447_v0 = vmul.f32 %v5456_v20, %v5023_v3  ;;  %v6094_v22 = vrot.slane %v5600_v56, 2 }
 0x206   : > { %v2751_v41 = vmax.f32 %v2703_v16, 0.0  ;;  %v2894_v37 = vsel %vm2841_vm5, %v2892_v31, %v5424_v4  ;;  %v2183_v12 = vadd.f32 %v2135_v10, %v2016_v55  ;;  %v2560_v51 = vrot.slane %v2446_v24, 2 }
 0x207   : > { %v2299_v28 = vsel %vm958_vm4, %v6095_v26, %v2298_v21  ;;  %3434 = vmatprep.subr.msk.mxu1 %vm695_vm2, %v2894_v37  ;;  %v2562_v3 = vrot.slane %v2447_v0, 2  ;;  %v846_v45 = vmul.f32 %v3896_v58, %v5607_v54  ;;  %v847_v4 = vmul.f32 %v3896_v58, %v5609_v38 }
 0x208   : > { %v2852_v53 = vrot.slane %v2751_v41, 7  ;;  %v2394_v23 = vadd.f32 %v2299_v28, %v2182_v9  ;;  %v2395_v29 = vadd.f32 %v2298_v21, %v2183_v12  ;;  %v5626_v43 = vmul.f32 %v6190_v18, %v5607_v54 }
 0x209   : > { %v2561_v11 = vsel %vm1203_vm3, %v6094_v22, %v2560_v51  ;;  %v2563_v10 = vsel %vm1203_vm3, %v2560_v51, %v2562_v3  ;;  %v897_v36 = vmul.f32 %v6190_v18, %v5609_v38  ;;  %v5640_v31 = vmul.f32 %v6191_v32, %v5607_v54 }
 0x20a   : > { %v2854_v6 = vsel %vm2841_vm5, %v2852_v53, %v5538_v39  ;;  %v2670_v16 = vadd.f32 %v2561_v11, %v2394_v23  ;;  %v2671_v40 = vadd.f32 %v2563_v10, %v2395_v29  ;;  %v962_v17 = vrot.slane %v5626_v43, 1 }
 0x20b   : > { %3435 = vmatpush3.xpose.msk.msra.mxu1 %vm695_vm2, %v2854_v6  ;;  %v963_v39 = vrot.slane %v897_v36, 1  ;;  %v1111_v55 = vmul.f32 %v6191_v32, %v5609_v38  ;;  %v1112_v21 = vmul.f32 %v6191_v32, %v5618_v49  ;;  %v1455_v41 = vmul.f32 %v3905_v1, %v5354_v27 }
 0x20c   : > { %v2725_v9 = vadd.f32 %v5019_v61, %v2670_v16  ;;  %v2726_v24 = vadd.f32 %v5019_v61, %v2671_v40  ;;  %v1209_v0 = vrot.slane %v5640_v31, 2  ;;  %v1456_v37 = vmul.f32 %v3905_v1, %v5364_v33 }
 0x20d   : > { %v964_v12 = vsel %vm958_vm4, %v962_v17, %v963_v39  ;;  %v1060_v28 = vadd.f32 %v963_v39, %v847_v4  ;;  %v1210_v53 = vrot.slane %v1111_v55, 2  ;;  %v1212_v23 = vrot.slane %v1112_v21, 2 }
 0x20e   : > { %v2773_v51 = vmax.f32 %v2725_v9, 0.0  ;;  %v2774_v3 = vmax.f32 %v2726_v24, 0.0  ;;  %v1059_v29 = vadd.f32 %v964_v12, %v846_v45  ;;  %v5658_v6 = vmul.f32 %v3912_v5, %v5354_v27 }
 0x20f   : > { %v1211_v61 = vsel %vm1203_vm3, %v1209_v0, %v1210_v53  ;;  %v1213_v11 = vsel %vm1203_vm3, %v1210_v53, %v1212_v23  ;;  %v1554_v10 = vmul.f32 %v3912_v5, %v5364_v33  ;;  %v5668_v4 = vmul.f32 %v3878_v46, %v5354_v27 }
 0x210   : > { %v5670_v36 = vrot.slane %v2773_v51, 7  ;;  %v2890_v45 = vrot.slane %v2774_v3, 7  ;;  %v1336_v16 = vadd.f32 %v1211_v61, %v1059_v29  ;;  %v1337_v40 = vadd.f32 %v1213_v11, %v1060_v28 }
 0x211   : > { %v1618_v39 = vrot.slane %v5658_v6, 1  ;;  %v1619_v55 = vrot.slane %v1554_v10, 1  ;;  %v1767_v21 = vmul.f32 %v3878_v46, %v5364_v33  ;;  %v1768_v9 = vmul.f32 %v3878_v46, %v5382_v34 }
 0x212   : > { %v2891_v24 = vsel %vm2841_vm5, %v5670_v36, %v2890_v45  ;;  %v1503_v12 = vadd.f32 %v1455_v41, %v1336_v16  ;;  %v1504_v53 = vadd.f32 %v1456_v37, %v1337_v40  ;;  %v1864_v23 = vrot.slane %v5668_v4, 2  ;;  %v5692_v37 = vld [vmem:[#allocation2 + $0x120] sm:$0xff] }
 0x213   : > { %3436 = vmatprep.subr.msk.mxu1 %vm695_vm2, %v2891_v24  ;;  %v1620_v28 = vsel %vm958_vm4, %v1618_v39, %v1619_v55  ;;  %v1865_v51 = vrot.slane %v1767_v21, 2  ;;  %v1867_v3 = vrot.slane %v1768_v9, 2  ;;  %v2110_v29 = vmul.f32 %v3914_v7, %v5115_v2 }
 0x214   : > { %v1715_v61 = vadd.f32 %v1620_v28, %v1503_v12  ;;  %v1716_v11 = vadd.f32 %v1619_v55, %v1504_v53  ;;  %v2111_v10 = vmul.f32 %v3914_v7, %v5117_v60  ;;  %v5690_v41 = vmul.f32 %v3916_v8, %v5115_v2 }
 0x215   : > { %v1866_v45 = vsel %vm1203_vm3, %v1864_v23, %v1865_v51  ;;  %v1868_v16 = vsel %vm1203_vm3, %v1865_v51, %v1867_v3  ;;  %v2209_v40 = vmul.f32 %v3916_v8, %v5117_v60  ;;  %v5702_v55 = vmul.f32 %v5456_v20, %v5115_v2 }
 0x216   : > { %v1991_v21 = vadd.f32 %v1866_v45, %v1715_v61  ;;  %v1992_v9 = vadd.f32 %v1868_v16, %v1716_v11  ;;  %v6097_v24 = vrot.slane %v5690_v41, 1  ;;  %v2422_v12 = vmul.f32 %v5456_v20, %v5117_v60  ;;  %v5721_v16 = vld [vmem:[#allocation2 + $0x20] sm:$0xff] }
 0x217   : > { %v2274_v53 = vrot.slane %v2209_v40, 1  ;;  %v2423_v28 = vmul.f32 %v5456_v20, %v5128_v25  ;;  %v6096_v51 = vrot.slane %v5702_v55, 2  ;;  %v869_v3 = vmul.f32 %v3896_v58, %v5692_v37  ;;  %v807_v40 = vld [vmem:[#allocation2 + $0x108] sm:$0xff] }
 0x218   : > { %v2158_v22 = vadd.f32 %v2110_v29, %v1991_v21  ;;  %v2159_v26 = vadd.f32 %v2111_v10, %v1992_v9  ;;  %v2520_v2 = vrot.slane %v2422_v12, 2  ;;  %v1478_v61 = vmul.f32 %v3905_v1, %v5462_v59  ;;  %v808_v12 = vld [vmem:[#allocation2 + $0x110] sm:$0xff] }
 0x219   : > { %v2275_v11 = vsel %vm958_vm4, %v6097_v24, %v2274_v53  ;;  %v2522_v60 = vrot.slane %v2423_v28, 2  ;;  %v1082_v45 = vadd.f32 %v986_v57, %v869_v3  ;;  %v2133_v25 = vmul.f32 %v3914_v7, %v5201_v50  ;;  %v809_v24 = vld [vmem:[#allocation2 + $0x118] sm:$0xff] }
 0x21a   : > { %v2370_v29 = vadd.f32 %v2275_v11, %v2158_v22  ;;  %v2371_v10 = vadd.f32 %v2274_v53, %v2159_v26  ;;  %v2521_v21 = vsel %vm1203_vm3, %v6096_v51, %v2520_v2  ;;  %v845_v9 = vmul.f32 %v3896_v58, %v5721_v16 }
 0x21b   : > { %v2523_v28 = vsel %vm1203_vm3, %v2520_v2, %v2522_v60  ;;  %v6275_v62 = vrot.slane %v5519_v13, 2  ;;  %v1454_v50 = vmul.f32 %v3905_v1, %v5476_v35  ;;  %v2109_v22 = vmul.f32 %v3914_v7, %v5230_v63  ;;  %v5746_v63 = vld [vmem:[%s6009_s4] ss:$0 sm:$0xff] }
 0x21c   : > { %v2646_v26 = vadd.f32 %v2521_v21, %v2370_v29  ;;  %v2647_v53 = vadd.f32 %v2523_v28, %v2371_v10  ;;  %v1058_v3 = vadd.f32 %v962_v17, %v845_v9  ;;  %v867_v11 = vmul.f32 %v3896_v58, %v807_v40 }
 0x21d   : > { %v1359_v57 = vadd.f32 %v6275_v62, %v1082_v45  ;;  %v868_v2 = vmul.f32 %v3896_v58, %v808_v12  ;;  %v5740_v13 = vmul.f32 %v6190_v18, %v807_v40  ;;  %v911_v60 = vmul.f32 %v6190_v18, %v808_v12 }
 0x21e   : > { %v2701_v45 = vadd.f32 %v5746_v63, %v2646_v26  ;;  %v2702_v43 = vadd.f32 %v5746_v63, %v2647_v53  ;;  %v1335_v17 = vadd.f32 %v1209_v0, %v1058_v3  ;;  %v1132_v9 = vmul.f32 %v6191_v32, %v808_v12 }
 0x21f   : > { %v1526_v51 = vadd.f32 %v1478_v61, %v1359_v57  ;;  %v5753_v61 = vmul.f32 %v6191_v32, %v807_v40  ;;  %v983_v10 = vrot.slane %v5740_v13, 1  ;;  %v984_v21 = vrot.slane %v911_v60, 1  ;;  %v6276_v60 = vld [vmem:[#allocation8_spill] sm:$0xff] }
 0x220   : > { %v2749_v28 = vmax.f32 %v2701_v45, 0.0  ;;  %v2750_v62 = vmax.f32 %v2702_v43, 0.0  ;;  %v1502_v57 = vadd.f32 %v1454_v50, %v1335_v17  ;;  %v1133_v26 = vmul.f32 %v6191_v32, %v809_v24  ;;  %v6277_v45 = vld [vmem:[#allocation51_spill] sm:$0xff] }
 0x221   : > { %v1738_v29 = vadd.f32 %v1642_v52, %v1526_v51  ;;  %v985_v0 = vsel %vm958_vm4, %v983_v10, %v984_v21  ;;  %v1081_v40 = vadd.f32 %v984_v21, %v868_v2  ;;  %v1244_v48 = vrot.slane %v5753_v61, 2 }
 0x222   : > { %v5766_v52 = vrot.slane %v2749_v28, 7  ;;  %v2850_v51 = vrot.slane %v2750_v62, 7  ;;  %v1714_v12 = vadd.f32 %v1618_v39, %v1502_v57  ;;  %v1080_v53 = vadd.f32 %v985_v0, %v867_v11 }
 0x223   : > { %v2014_v31 = vadd.f32 %v1904_v14, %v1738_v29  ;;  %v1245_v3 = vrot.slane %v1132_v9, 2  ;;  %v1247_v24 = vrot.slane %v1133_v26, 2  ;;  %v1476_v44 = vmul.f32 %v3905_v1, %v6276_v60 }
 0x224   : > { %v2851_v14 = vsel %vm2841_vm5, %v5766_v52, %v2850_v51  ;;  %v1990_v2 = vadd.f32 %v1864_v23, %v1714_v12  ;;  %v1477_v43 = vmul.f32 %v3905_v1, %v6277_v45  ;;  %v5780_v6 = vmul.f32 %v3912_v5, %v6276_v60 }
 0x225   : > { %v2181_v50 = vadd.f32 %v2133_v25, %v2014_v31  ;;  %3437 = vmatpush3.xpose.msk.msra.mxu1 %vm695_vm2, %v2851_v14  ;;  %v6278_v39 = vrot.slane %v5592_v19, 1  ;;  %v1246_v11 = vsel %vm1203_vm3, %v1244_v48, %v1245_v3  ;;  %v1248_v17 = vsel %vm1203_vm3, %v1245_v3, %v1247_v24 }
 0x226   : > { %v1568_v4 = vmul.f32 %v3912_v5, %v6277_v45  ;;  %v2157_v23 = vadd.f32 %v2109_v22, %v1990_v2  ;;  %v1357_v29 = vadd.f32 %v1246_v11, %v1080_v53  ;;  %v1358_v21 = vadd.f32 %v1248_v17, %v1081_v40 }
 0x227   : > { %v2393_v25 = vadd.f32 %v6278_v39, %v2181_v50  ;;  %v1639_v9 = vrot.slane %v5780_v6, 1  ;;  %v6279_v28 = vrot.slane %v5600_v56, 2  ;;  %v5796_v19 = vmul.f32 %v3878_v46, %v6276_v60 }
 0x228   : > { %v1640_v57 = vrot.slane %v1568_v4, 1  ;;  %v1788_v26 = vmul.f32 %v3878_v46, %v6277_v45  ;;  %v6280_v31 = vrot.slane %v5690_v41, 1  ;;  %v1524_v51 = vadd.f32 %v1476_v44, %v1357_v29 }
 0x229   : > { %v2669_v62 = vadd.f32 %v6279_v28, %v2393_v25  ;;  %v1525_v22 = vadd.f32 %v1477_v43, %v1358_v21  ;;  %v1789_v40 = vmul.f32 %v3878_v46, %v5509_v30  ;;  %v1899_v53 = vrot.slane %v5796_v19, 2 }
 0x22a   : > { %v2369_v0 = vadd.f32 %v6280_v31, %v2157_v23  ;;  %v1641_v56 = vsel %vm958_vm4, %v1639_v9, %v1640_v57  ;;  %v1900_v50 = vrot.slane %v1788_v26, 2  ;;  %v6281_v3 = vrot.slane %v5702_v55, 2 }
 0x22b   : > { %v2724_v12 = vadd.f32 %v5746_v63, %v2669_v62  ;;  %v1736_v60 = vadd.f32 %v1641_v56, %v1524_v51  ;;  %v1737_v41 = vadd.f32 %v1640_v57, %v1525_v22  ;;  %v1902_v14 = vrot.slane %v1789_v40, 2  ;;  %v775_v51 = vld [vmem:[#allocation2 + $0x8] sm:$0xff] }
 0x22c   : > { %v2645_v24 = vadd.f32 %v6281_v3, %v2369_v0  ;;  %v1901_v30 = vsel %vm1203_vm3, %v1899_v53, %v1900_v50  ;;  %v2131_v2 = vmul.f32 %v3914_v7, %v5239_v47  ;;  %v2132_v45 = vmul.f32 %v3914_v7, %v5241_v42  ;;  %v777_v3 = vld [vmem:[#allocation2 + $0x18] sm:$0xff] }
 0x22d   : > { %v2772_v44 = vmax.f32 %v2724_v12, 0.0  ;;  %v1903_v39 = vsel %vm1203_vm3, %v1900_v50, %v1902_v14  ;;  %v2012_v55 = vadd.f32 %v1901_v30, %v1736_v60  ;;  %v5822_v25 = vmul.f32 %v3916_v8, %v5239_v47  ;;  %v776_v12 = vld [vmem:[#allocation2 + $0x10] sm:$0xff] }
 0x22e   : > { %v2700_v43 = vadd.f32 %v5746_v63, %v2645_v24  ;;  %v2013_v17 = vadd.f32 %v1903_v39, %v1737_v41  ;;  %v2223_v4 = vmul.f32 %v3916_v8, %v5241_v42  ;;  %v5828_v23 = vmul.f32 %v5456_v20, %v5239_v47 }
 0x22f   : > { %v2887_v11 = vrot.slane %v2772_v44, 7  ;;  %v2179_v21 = vadd.f32 %v2131_v2, %v2012_v55  ;;  %v2294_v28 = vrot.slane %v5822_v25, 1  ;;  %v2443_v62 = vmul.f32 %v5456_v20, %v5241_v42 }
 0x230   : > { %v2748_v29 = vmax.f32 %v2700_v43, 0.0  ;;  %v2180_v26 = vadd.f32 %v2132_v45, %v2013_v17  ;;  %v2295_v31 = vrot.slane %v2223_v4, 1  ;;  %v2444_v0 = vmul.f32 %v5456_v20, %v5261_v15 }
 0x231   : > { %v2889_v57 = vsel %vm2841_vm5, %v2887_v11, %v5670_v36  ;;  %v2554_v22 = vrot.slane %v5828_v23, 2  ;;  %v2555_v40 = vrot.slane %v2443_v62, 2  ;;  %v843_v56 = vmul.f32 %v3896_v58, %v775_v51  ;;  %v6282_v23 = vld [vmem:[#allocation11_spill] sm:$0xff] }
 0x232   : > { %3438 = vmatprep.subr.msk.mxu1 %vm695_vm2, %v2889_v57  ;;  %v2847_v47 = vrot.slane %v2748_v29, 7  ;;  %v2296_v42 = vsel %vm958_vm4, %v2294_v28, %v2295_v31  ;;  %v2392_v36 = vadd.f32 %v2295_v31, %v2180_v26  ;;  %v2557_v50 = vrot.slane %v2444_v0, 2 }
 0x233   : > { %v844_v24 = vmul.f32 %v3896_v58, %v776_v12  ;;  %v2391_v60 = vadd.f32 %v2296_v42, %v2179_v21  ;;  %v2556_v41 = vsel %vm1203_vm3, %v2554_v22, %v2555_v40  ;;  %v5850_v14 = vmul.f32 %v6190_v18, %v775_v51 }
 0x234   : > { %v2849_v15 = vsel %vm2841_vm5, %v2847_v47, %v5766_v52  ;;  %v2558_v44 = vsel %vm1203_vm3, %v2555_v40, %v2557_v50  ;;  %v895_v30 = vmul.f32 %v6190_v18, %v776_v12  ;;  %v5856_v2 = vmul.f32 %v6191_v32, %v775_v51 }
 0x235   : > { %3439 = vmatpush3.xpose.msk.msra.mxu1 %vm695_vm2, %v2849_v15  ;;  %v1108_v45 = vmul.f32 %v6191_v32, %v776_v12  ;;  %v2667_v52 = vadd.f32 %v2556_v41, %v2391_v60  ;;  %v2668_v43 = vadd.f32 %v2558_v44, %v2392_v36  ;;  %v959_v39 = vrot.slane %v5850_v14, 1 }
 0x236   : > { %v1109_v55 = vmul.f32 %v6191_v32, %v777_v3  ;;  %v960_v11 = vrot.slane %v895_v30, 1  ;;  %v1204_v17 = vrot.slane %v5856_v2, 2  ;;  %v1452_v29 = vmul.f32 %v3905_v1, %v5607_v54 }
 0x237   : > { %v1205_v4 = vrot.slane %v1108_v45, 2  ;;  %v2722_v18 = vadd.f32 %v5746_v63, %v2667_v52  ;;  %v2723_v21 = vadd.f32 %v5746_v63, %v2668_v43  ;;  %v1453_v57 = vmul.f32 %v3905_v1, %v5609_v38 }
 0x238   : > { %v1207_v62 = vrot.slane %v1109_v55, 2  ;;  %v961_v26 = vsel %vm958_vm4, %v959_v39, %v960_v11  ;;  %v1057_v32 = vadd.f32 %v960_v11, %v844_v24  ;;  %v5876_v0 = vmul.f32 %v3912_v5, %v5607_v54 }
 0x239   : > { %v1206_v31 = vsel %vm1203_vm3, %v1204_v17, %v1205_v4  ;;  %v2770_v51 = vmax.f32 %v2722_v18, 0.0  ;;  %v2771_v47 = vmax.f32 %v2723_v21, 0.0  ;;  %v1056_v40 = vadd.f32 %v961_v26, %v843_v56  ;;  %v806_v21 = vld [vmem:[#allocation2 + $0x100] sm:$0xff] }
 0x23a   : > { %v1208_v12 = vsel %vm1203_vm3, %v1205_v4, %v1207_v62  ;;  %v1552_v36 = vmul.f32 %v3912_v5, %v5609_v38  ;;  %v1615_v50 = vrot.slane %v5876_v0, 1  ;;  %v5884_v3 = vmul.f32 %v3878_v46, %v5607_v54 }
 0x23b   : > { %v1334_v42 = vadd.f32 %v1208_v12, %v1057_v32  ;;  %v5886_v24 = vrot.slane %v2770_v51, 7  ;;  %v2885_v15 = vrot.slane %v2771_v47, 7  ;;  %v1333_v60 = vadd.f32 %v1206_v31, %v1056_v40 }
 0x23c   : > { %v1764_v41 = vmul.f32 %v3878_v46, %v5609_v38  ;;  %v1616_v44 = vrot.slane %v1552_v36, 1  ;;  %v1765_v30 = vmul.f32 %v3878_v46, %v5618_v49  ;;  %v1859_v5 = vrot.slane %v5884_v3, 2 }
 0x23d   : > { %v1501_v56 = vadd.f32 %v1453_v57, %v1334_v42  ;;  %v2886_v45 = vsel %vm2841_vm5, %v5886_v24, %v2885_v15  ;;  %v1500_v52 = vadd.f32 %v1452_v29, %v1333_v60  ;;  %v2107_v43 = vmul.f32 %v3914_v7, %v5354_v27  ;;  %v774_v15 = vld [vmem:[#allocation2] sm:$0xff] }
 0x23e   : > { %v1860_v54 = vrot.slane %v1764_v41, 2  ;;  %3440 = vmatprep.subr.msk.mxu1 %vm695_vm2, %v2886_v45  ;;  %v1617_v38 = vsel %vm958_vm4, %v1615_v50, %v1616_v44  ;;  %v1862_v11 = vrot.slane %v1765_v30, 2  ;;  %v2108_v46 = vmul.f32 %v3914_v7, %v5364_v33  ;;  %v2923_v30 = vld [vmem:[%s6011_s6] sm:$0xff] }
 0x23f   : > { %v1713_v55 = vadd.f32 %v1616_v44, %v1501_v56  ;;  %v1712_v49 = vadd.f32 %v1617_v38, %v1500_v52  ;;  %v2206_v29 = vmul.f32 %v3916_v8, %v5354_v27  ;;  %v2207_v18 = vmul.f32 %v3916_v8, %v5364_v33 }
 0x240   : > { %v1861_v4 = vsel %vm1203_vm3, %v1859_v5, %v1860_v54  ;;  %v1863_v62 = vsel %vm1203_vm3, %v1860_v54, %v1862_v11  ;;  %v2418_v57 = vmul.f32 %v5456_v20, %v5354_v27  ;;  %v2419_v26 = vmul.f32 %v5456_v20, %v5364_v33 }
 0x241   : > { %v2420_v32 = vmul.f32 %v5456_v20, %v5382_v34  ;;  %v1988_v31 = vadd.f32 %v1861_v4, %v1712_v49  ;;  %v1989_v51 = vadd.f32 %v1863_v62, %v1713_v55  ;;  %v2270_v47 = vrot.slane %v2206_v29, 1 }
 0x242   : > { %v2271_v40 = vrot.slane %v2207_v18, 1  ;;  %v2514_v12 = vrot.slane %v2418_v57, 2  ;;  %v2515_v42 = vrot.slane %v2419_v26, 2  ;;  %v866_v8 = vmul.f32 %v3896_v58, %v806_v21 }
 0x243   : > { %v2517_v36 = vrot.slane %v2420_v32, 2  ;;  %v2155_v60 = vadd.f32 %v2107_v43, %v1988_v31  ;;  %v2156_v41 = vadd.f32 %v2108_v46, %v1989_v51  ;;  %v1475_v34 = vmul.f32 %v3905_v1, %v5692_v37 }
 0x244   : > { %v2272_v27 = vsel %vm958_vm4, %v2270_v47, %v2271_v40  ;;  %v1079_v33 = vadd.f32 %v983_v10, %v866_v8  ;;  %v842_v44 = vmul.f32 %v3896_v58, %v774_v15  ;;  %v2516_v45 = vsel %vm1203_vm3, %v2514_v12, %v2515_v42 }
 0x245   : > { %v2367_v20 = vadd.f32 %v2272_v27, %v2155_v60  ;;  %v2368_v56 = vadd.f32 %v2271_v40, %v2156_v41  ;;  %v2518_v52 = vsel %vm1203_vm3, %v2515_v42, %v2517_v36  ;;  %v1451_v43 = vmul.f32 %v3905_v1, %v5721_v16 }
 0x246   : > { %v1356_v54 = vadd.f32 %v1244_v48, %v1079_v33  ;;  %v1055_v37 = vadd.f32 %v959_v39, %v842_v44  ;;  %v3653_v58 = vmov 0   ;;  %v2130_v14 = vmul.f32 %v3914_v7, %v5462_v59 }
 0x247   : > { %v2643_v13 = vadd.f32 %v2516_v45, %v2367_v20  ;;  %v2644_v10 = vadd.f32 %v2518_v52, %v2368_v56  ;;  %3553 = vset.pattern.permute.xlu0 %v3653_v58  ;;  %v2106_v2 = vmul.f32 %v3914_v7, %v5476_v35 }
 0x248   : > { %v1523_v38 = vadd.f32 %v1475_v34, %v1356_v54  ;;  %2926 = vperm.xlu0 %3553, %v2923_v30   ;;  %v1332_v61 = vadd.f32 %v1204_v17, %v1055_v37 }
 0x249   : > { %v2698_v55 = vadd.f32 %v5746_v63, %v2643_v13  ;;  %v2699_v11 = vadd.f32 %v5746_v63, %v2644_v10 }
 0x24a   : > { %v1735_v48 = vadd.f32 %v1639_v9, %v1523_v38  ;;  %v1499_v1 = vadd.f32 %v1451_v43, %v1332_v61 }
 0x24b   : > { %v2746_v39 = vmax.f32 %v2698_v55, 0.0  ;;  %v2747_v46 = vmax.f32 %v2699_v11, 0.0 }
 0x24c   : > { %v2011_v16 = vadd.f32 %v1899_v53, %v1735_v48  ;;  %v1711_v29 = vadd.f32 %v1615_v50, %v1499_v1 }
 0x24d   : > { %v2843_v49 = vrot.slane %v2746_v39, 7  ;;  %v2845_v4 = vrot.slane %v2747_v46, 7 }
 0x24e   : > { %v2178_v17 = vadd.f32 %v2130_v14, %v2011_v16  ;;  %v1987_v59 = vadd.f32 %v1859_v5, %v1711_v29 }
 0x24f   : > { %v2846_v6 = vsel %vm2841_vm5, %v2843_v49, %v2845_v4 }
 0x250   : > { %3441 = vmatpush3.xpose.msk.msra.mxu1 %vm695_vm2, %v2846_v6  ;;  %v2390_v9 = vadd.f32 %v2294_v28, %v2178_v17  ;;  %v2154_v19 = vadd.f32 %v2106_v2, %v1987_v59 }
 0x252   : > { %v2666_v53 = vadd.f32 %v2554_v22, %v2390_v9  ;;  %v2366_v0 = vadd.f32 %v2270_v47, %v2154_v19 }
 0x254   : > { %v2721_v50 = vadd.f32 %v5746_v63, %v2666_v53  ;;  %v2642_v7 = vadd.f32 %v2514_v12, %v2366_v0 }
 0x256   : > { %v2769_v35 = vmax.f32 %v2721_v50, 0.0  ;;  %v2697_v18 = vadd.f32 %v5746_v63, %v2642_v7 }
 0x258   : > { %v2882_v3 = vrot.slane %v2769_v35, 7  ;;  %v2745_v5 = vmax.f32 %v2697_v18, 0.0 }
 0x25a   : > { %v2884_v21 = vsel %vm2841_vm5, %v2882_v3, %v5886_v24  ;;  %v2842_v25 = vrot.slane %v2745_v5, 7 }
 0x25b   : > { %3442 = vmatprep.subr.msk.mxu1 %vm695_vm2, %v2884_v21 }
 0x25c   : > { %v2844_v28 = vsel %vm2841_vm5, %v2842_v25, %v2843_v49 }
 0x25d   : > { %3443 = vmatpush3.xpose.msk.msra.mxu1 %vm695_vm2, %v2844_v28 }
 0x260   : > { %3445 = vmatmul.mubr.msk.f32.vlgmr.msra.gmra.mxu1 %vm695_vm2, %v6282_v23 }
 0x2c3   : > { %v2927_v22 = vpop.permute.xlu0 %2926 }
 0x320   : > { %v3063_v63 = vpop.f32.mrf.mxu1 }
 0x321   : > { %v3064_v62 = vadd.f32 %v3063_v63, %v2927_v22 }
 0x322   : > { %v3065_v24 = vpop.f32.mrf.mxu1 }
 0x323   : > { %3068 = vst [vmem:[%s285_s19] sm:$0xff] %v3064_v62  ;;  %v3066_v57 = vadd.f32 %v3065_v24, %v2927_v22 }
 0x325   : > { %3069 = vst [vmem:[%s285_s19 + $0x8] sm:$0xff] %v3066_v57 }
 0x326   : > { %3587 = shalt.err (!%p3584_p5)
}
 0x327   : > { %s3588_s15 = scalar_lea.hbm %s3085_s23, 256  ;;  %s3592_s18 = scalar_lea.hbm %s6012_s7, 512 }
 0x328   : > { %p3589_p6 = scmp.ne.s32.totalorder %s3085_s23, %s3588_s15  ;;  %p3593_p10 = scmp.lt.s32.totalorder %s3085_s23, %s6012_s7 }
 0x329   : > { %p3594_p11 = scmp.lt.s32.totalorder %s3592_s18, %s3588_s15 }
 0x32a   : > { %p3590_p7 = pnand %p3589_p6, %p3735_p4 }
 0x32b   : > { %p3595_p12 = por %p3594_p11, %p3593_p10 }
 0x32c   : > { %p3591_p9 = pneg %p3590_p7 }
 0x32e   : > { %p3596_p13 = pnand %p3595_p12, %p3591_p9 }
 0x330   : > { %3599 = shalt.err (!%p3596_p13)
}
 0x331   : > { %3496 = dma.vmem_to_hbm [thread:$0]  (%p3735_p4), %s3088_s20, 256, %s3085_s23, %s3071_s30  }
 0x332 PF: > { %p3502_p0 = scmp.ge.s32.totalorder %s3650_s29, 2  ;;  %s3099_s22 = sand.u32 1, %s3630_s24  }
 0x333   : > { %s3100_s8 = scalar_lea.sflag [#allocation4], %s3099_s22 }
 0x334   : > { %p3499_p1 = pnand %p3502_p0, %p3742_p8 }
 0x336   : > { %p3500_p2 = pneg %p3499_p1 }
 0x338   : > { %3625 = dma.done.wait (%p3500_p2), %s3100_s8, 256  }
 0x339   : > { %3627 = vsyncadd (%p3500_p2), %s3100_s8, 4294967040  ;;  %s20_s29 = sadd.s32 1, %s3650_s29   ;;  %s6283_s24 = smov %s3634_s25 }
 0x33a   : > { %p17_p3 = scmp.ge.s32.totalorder %s20_s29, 4   ;;  %s6284_s25 = smov %s3638_s26 }
 0x33b   : > { %s6285_s26 = smov %s3748_s14  ;;  %s6286_s27 = smov %s3646_s28 }
 0x33c   : > { %s6287_s28 = smov %s6289_s9  ;;  %19 = sbr.rel (!%p17_p3) target bundleno = 4 (0x4), region = 92 }
 0x341   :  { %3105 = vsyncpa [#allocation4], 1 }
 0x342   :  { %3107 = vsyncpa [#allocation4 + $0x1], 1 }

</bundles_post_ra>
